<compile_context>
chip_gen: v5e
topology: v5e:2x2
jax: 0.10.0
libtpu: 0.0.40
codegen_flags: <defaults>
</compile_context>

<pallas_src>
import functools
from typing import NamedTuple

import jax
import jax.numpy as jnp
from jax import lax
from jax.experimental import pallas as pl
from jax.experimental.pallas import tpu as pltpu

LANE = 128
SUBLANE = 8
VMEM_LIMIT = 32 * 1024 * 1024          # raises v5e's 16 MiB default; safe on v6e/v7x
_VMEM = pl.BlockSpec(memory_space=pltpu.MemorySpace.VMEM)


def _round_up(x, m):
    return ((x + m - 1) // m) * m


class Seq2SeqConfig(NamedTuple):
    en_vocab: int
    cn_vocab: int
    emb_dim: int
    enc_hid: int      # encoder hidden per direction (real, unpadded)
    n_layers: int


# ----------------------------------------------------------------------------
# GRU step on precomputed input gates (r|z|n packed, lane-padded).
# Padded hidden lanes stay exactly zero (zero weight cols/rows, zero biases).
# ----------------------------------------------------------------------------
def _gru_step(gi_t, h, wh_b, bh, hp):
    gh = jnp.dot(h.astype(jnp.bfloat16), wh_b,
                 preferred_element_type=jnp.float32) + bh
    r = jax.nn.sigmoid(gi_t[:, 0:hp] + gh[:, 0:hp])
    z = jax.nn.sigmoid(gi_t[:, hp:2 * hp] + gh[:, hp:2 * hp])
    n = jnp.tanh(gi_t[:, 2 * hp:3 * hp] + r * gh[:, 2 * hp:3 * hp])
    return (1.0 - z) * n + z * h


# ----------------------------------------------------------------------------
# Fused GRU layer: D independent scans (D=2 -> bidirectional, dir 1 reversed).
# Phase 1: whole-sequence x@W_ih as one MXU matmul.  Phase 2: time recurrence
# in a fori_loop with only h@W_hh inside.
# ----------------------------------------------------------------------------
def gru_seq_layers(xs_flat, wi, wh, bi, bh, h0, *, T, Bp, hp, emit_seq):
    """xs_flat: (T*Bp, Din) f32; wi: (D,Din,3hp) bf16; wh: (D,hp,3hp) bf16;
    bi/bh: (D,1,3hp) f32; h0: (D,Bp,hp) f32.
    Returns (seq (D,T*Bp,hp) f32 or None, h_last (D,Bp,hp) f32)."""
    D, Din, n3 = wi.shape
    TB = T * Bp

    def kernel(x_ref, wi_ref, wh_ref, bi_ref, bh_ref, h0_ref, *rest):
        if emit_seq:
            seq_ref, hlast_ref, gi_scr = rest
        else:
            hlast_ref, gi_scr = rest
        d = pl.program_id(0)

        # Phase 1: hoisted input projection for all time steps at once.
        xb = x_ref[...].astype(jnp.bfloat16)
        gi_scr[...] = (jnp.dot(xb, wi_ref[...],
                               preferred_element_type=jnp.float32) + bi_ref[...])

        wh_b = wh_ref[...]
        bh_v = bh_ref[...]

        # Phase 2: serial recurrence; only h @ W_hh on the critical path.
        def step(t, h):
            tt = t + d * (T - 1 - 2 * t)          # d==0: t    d==1: T-1-t
            row = pl.multiple_of(tt * Bp, SUBLANE)
            gi_t = gi_scr[pl.ds(row, Bp), :]
            h_new = _gru_step(gi_t, h, wh_b, bh_v, hp)
            if emit_seq:
                seq_ref[pl.ds(row, Bp), :] = h_new
            return h_new

        hlast_ref[...] = lax.fori_loop(0, T, step, h0_ref[...])

    in_specs = [
        pl.BlockSpec((TB, Din), lambda d: (0, 0)),
        pl.BlockSpec((None, Din, n3), lambda d: (d, 0, 0)),
        pl.BlockSpec((None, hp, n3), lambda d: (d, 0, 0)),
        pl.BlockSpec((None, 1, n3), lambda d: (d, 0, 0)),
        pl.BlockSpec((None, 1, n3), lambda d: (d, 0, 0)),
        pl.BlockSpec((None, Bp, hp), lambda d: (d, 0, 0)),
    ]
    if emit_seq:
        out_shape = (jax.ShapeDtypeStruct((D, TB, hp), jnp.float32),
                     jax.ShapeDtypeStruct((D, Bp, hp), jnp.float32))
        out_specs = [pl.BlockSpec((None, TB, hp), lambda d: (d, 0, 0)),
                     pl.BlockSpec((None, Bp, hp), lambda d: (d, 0, 0))]
    else:
        out_shape = (jax.ShapeDtypeStruct((D, Bp, hp), jnp.float32),)
        out_specs = [pl.BlockSpec((None, Bp, hp), lambda d: (d, 0, 0))]

    # TODO(synk): pipeline_mode=pl.Buffered(1) on the constant-index weight
    # specs would halve their VMEM footprint on v7x; left at the default here.
    res = pl.pallas_call(
        kernel,
        out_shape=out_shape,
        grid_spec=pltpu.PrefetchScalarGridSpec(
            num_scalar_prefetch=0,
            grid=(D,),
            in_specs=in_specs,
            out_specs=out_specs,
            scratch_shapes=[pltpu.VMEM((TB, n3), jnp.float32)],
        ),
        compiler_params=pltpu.CompilerParams(
            dimension_semantics=("parallel",),
            vmem_limit_bytes=VMEM_LIMIT),
    )(xs_flat, wi, wh, bi, bh, h0)

    if emit_seq:
        return res[0], res[1]
    return None, res[0]


# ----------------------------------------------------------------------------
# Decoder output head: 3 stacked Linear layers, tiled over (rows, vocab).
# ----------------------------------------------------------------------------
def decoder_proj(h_flat, proj):
    M, hp = h_flat.shape
    D1 = proj["w1"].shape[1]
    D2 = proj["w2"].shape[1]
    Vp = proj["w3"].shape[1]

    TM = 256 if M >= 256 else _round_up(M, SUBLANE)
    Mp = _round_up(M, TM)
    if Mp != M:
        h_flat = jnp.pad(h_flat, ((0, Mp - M), (0, 0)))
    if Vp % 512 == 0:
        TV = 512
    elif Vp % 256 == 0:
        TV = 256
    else:
        TV = LANE

    def kernel(h_ref, w1_ref, b1_ref, w2_ref, b2_ref, w3_ref, b3_ref,
               o_ref, y_scr):
        @pl.when(pl.program_id(1) == 0)
        def _():
            y1 = (jnp.dot(h_ref[...].astype(jnp.bfloat16), w1_ref[...],
                          preferred_element_type=jnp.float32) + b1_ref[...])
            y_scr[...] = (jnp.dot(y1.astype(jnp.bfloat16), w2_ref[...],
                                  preferred_element_type=jnp.float32)
                          + b2_ref[...])
        o_ref[...] = (jnp.dot(y_scr[...].astype(jnp.bfloat16), w3_ref[...],
                              preferred_element_type=jnp.float32) + b3_ref[...])

    out = pl.pallas_call(
        kernel,
        out_shape=jax.ShapeDtypeStruct((Mp, Vp), jnp.float32),
        grid_spec=pltpu.PrefetchScalarGridSpec(
            num_scalar_prefetch=0,
            grid=(Mp // TM, Vp // TV),
            in_specs=[
                pl.BlockSpec((TM, hp), lambda i, j: (i, 0)),
                pl.BlockSpec((hp, D1), lambda i, j: (0, 0)),
                pl.BlockSpec((1, D1), lambda i, j: (0, 0)),
                pl.BlockSpec((D1, D2), lambda i, j: (0, 0)),
                pl.BlockSpec((1, D2), lambda i, j: (0, 0)),
                pl.BlockSpec((D2, TV), lambda i, j: (0, j)),
                pl.BlockSpec((1, TV), lambda i, j: (0, j)),
            ],
            out_specs=pl.BlockSpec((TM, TV), lambda i, j: (i, j)),
            scratch_shapes=[pltpu.VMEM((TM, D2), jnp.float32)],
        ),
        compiler_params=pltpu.CompilerParams(
            dimension_semantics=("parallel", "arbitrary"),
            vmem_limit_bytes=VMEM_LIMIT),
    )(h_flat, proj["w1"], proj["b1"], proj["w2"], proj["b2"],
      proj["w3"], proj["b3"])
    return out[:M]


# ----------------------------------------------------------------------------
# Fully fused greedy-feedback decode (teacher_forcing_ratio < 1):
# one pallas_call, all weights resident in VMEM, in-kernel one-hot embedding
# lookup, GRU stack, projection head and argmax feedback for every step.
# ----------------------------------------------------------------------------
def greedy_decode(tok0, h0, emb, layers, proj, *, Tm1, Bp, hp, V, Vp):
    L = len(layers)
    emb_p = jnp.pad(emb, ((0, Vp - emb.shape[0]), (0, 0)))      # (Vp, E) bf16

    def kernel(*refs):
        tok0_ref, h0_ref, emb_ref = refs[0:3]
        w_refs = refs[3:3 + 4 * L]
        (w1_ref, b1_ref, w2_ref, b2_ref,
         w3_ref, b3_ref) = refs[3 + 4 * L:9 + 4 * L]
        out_ref = refs[9 + 4 * L]

        emb_t = emb_ref[...]
        wi = [w_refs[4 * l + 0][...] for l in range(L)]
        wh = [w_refs[4 * l + 1][...] for l in range(L)]
        bi = [w_refs[4 * l + 2][...] for l in range(L)]
        bh = [w_refs[4 * l + 3][...] for l in range(L)]
        w1, b1 = w1_ref[...], b1_ref[...]
        w2, b2 = w2_ref[...], b2_ref[...]
        w3, b3 = w3_ref[...], b3_ref[...]

        iota_v = lax.broadcasted_iota(jnp.int32, (Bp, Vp), 1)
        iota_f = iota_v.astype(jnp.float32)
        valid = iota_v < V

        def gru(x, h, l):
            gi = jnp.dot(x.astype(jnp.bfloat16), wi[l],
                         preferred_element_type=jnp.float32) + bi[l]
            gh = jnp.dot(h.astype(jnp.bfloat16), wh[l],
                         preferred_element_type=jnp.float32) + bh[l]
            r = jax.nn.sigmoid(gi[:, 0:hp] + gh[:, 0:hp])
            z = jax.nn.sigmoid(gi[:, hp:2 * hp] + gh[:, hp:2 * hp])
            n = jnp.tanh(gi[:, 2 * hp:3 * hp] + r * gh[:, 2 * hp:3 * hp])
            return (1.0 - z) * n + z * h

        def step(t, carry):
            tok = carry[0]                       # (Bp, 1) int32
            hs_in = carry[1:]                    # L x (Bp, hp) f32
            onehot = jnp.where(iota_v == tok, 1.0, 0.0).astype(jnp.bfloat16)
            x = jnp.dot(onehot, emb_t, preferred_element_type=jnp.float32)
            hs_out = []
            for l in range(L):
                h_new = gru(x, hs_in[l], l)
                hs_out.append(h_new)
                x = h_new
            y = jnp.dot(x.astype(jnp.bfloat16), w1,
                        preferred_element_type=jnp.float32) + b1
            y = jnp.dot(y.astype(jnp.bfloat16), w2,
                        preferred_element_type=jnp.float32) + b2
            logits = jnp.dot(y.astype(jnp.bfloat16), w3,
                             preferred_element_type=jnp.float32) + b3
            out_ref[t] = logits
            masked = jnp.where(valid, logits, -1e30)
            mx = jnp.max(masked, axis=-1, keepdims=True)
            nxt = jnp.min(jnp.where(masked == mx, iota_f, float(Vp)),
                          axis=-1, keepdims=True).astype(jnp.int32)
            return (nxt,) + tuple(hs_out)

        init = (tok0_ref[...],) + tuple(h0_ref[l] for l in range(L))
        lax.fori_loop(0, Tm1, step, init)

    flat = [tok0, h0, emb_p]
    for lw in layers:
        flat += [lw["wi"], lw["wh"], lw["bi"], lw["bh"]]
    flat += [proj["w1"], proj["b1"], proj["w2"], proj["b2"],
             proj["w3"], proj["b3"]]

    # TODO(synk): for very large vocabularies emb/w3 would need vocab tiling
    # instead of fully-resident VMEM refs.
    return pl.pallas_call(
        kernel,
        out_shape=jax.ShapeDtypeStruct((Tm1, Bp, Vp), jnp.float32),
        in_specs=[_VMEM] * len(flat),
        out_specs=_VMEM,
        compiler_params=pltpu.CompilerParams(vmem_limit_bytes=VMEM_LIMIT),
    )(*flat)


# ----------------------------------------------------------------------------
# Parameter init (deterministic, synthetic): packed (r|z|n) gates, lane-padded
# hidden, bf16 matmul weights / f32 biases.
# ----------------------------------------------------------------------------
def _packed_gru_params(key, in_segments, hid_real, hid_pad, scale=0.1):
    """in_segments: list of (real_rows, padded_rows) input-feature segments;
    real rows go at the start of each padded slot so the layer can consume
    lane-padded inputs directly (padded rows are zero)."""
    ks = jax.random.split(key, 12)

    def rnd(k, shape):
        return jax.random.normal(k, shape, jnp.float32) * scale

    in_real = sum(r for r, _ in in_segments)
    in_pad = sum(p for _, p in in_segments)

    def place_rows(mat):
        out = jnp.zeros((in_pad, hid_pad), jnp.float32)
        r_off = p_off = 0
        for real, pad in in_segments:
            out = out.at[p_off:p_off + real, :hid_real].set(
                mat[r_off:r_off + real])
            r_off += real
            p_off += pad
        return out

    def place_sq(mat):
        return jnp.zeros((hid_pad, hid_pad), jnp.float32
                         ).at[:hid_real, :hid_real].set(mat)

    def pad_bias(b):
        return jnp.pad(b, ((0, 0), (0, hid_pad - hid_real)))

    wi = jnp.concatenate([place_rows(rnd(ks[g], (in_real, hid_real)))
                          for g in range(3)], axis=1)
    wh = jnp.concatenate([place_sq(rnd(ks[3 + g], (hid_real, hid_real)))
                          for g in range(3)], axis=1)
    bi = jnp.concatenate([pad_bias(rnd(ks[6 + g], (1, hid_real)))
                          for g in range(3)], axis=1)
    bh = jnp.concatenate([pad_bias(rnd(ks[9 + g], (1, hid_real)))
                          for g in range(3)], axis=1)
    return {"wi": wi.astype(jnp.bfloat16), "wh": wh.astype(jnp.bfloat16),
            "bi": bi, "bh": bh}


def init_encoder_params(key, en_vocab, emb_dim, hid_dim, n_layers):
    hp = _round_up(hid_dim, LANE)
    keys = jax.random.split(key, 1 + 2 * n_layers)
    emb = jax.random.normal(keys[0], (en_vocab, emb_dim), jnp.float32) * 0.1
    layers = []
    for l in range(n_layers):
        segs = ([(emb_dim, emb_dim)] if l == 0
                else [(hid_dim, hp), (hid_dim, hp)])   # lane-padded fwd||bwd input
        fwd = _packed_gru_params(keys[1 + 2 * l], segs, hid_dim, hp)
        bwd = _packed_gru_params(keys[2 + 2 * l], segs, hid_dim, hp)
        layers.append({k: jnp.stack([fwd[k], bwd[k]], axis=0) for k in fwd})
    return {"embedding": emb, "layers": layers}


def init_decoder_params(key, cn_vocab, emb_dim, enc_hid_dim, n_layers):
    dec_hid = 2 * enc_hid_dim
    hp = _round_up(dec_hid, LANE)
    vp = _round_up(cn_vocab, LANE)
    keys = jax.random.split(key, 2 + n_layers)
    emb = (jax.random.normal(keys[0], (cn_vocab, emb_dim), jnp.float32)
           * 0.1).astype(jnp.bfloat16)
    layers = []
    for l in range(n_layers):
        segs = [(emb_dim, emb_dim)] if l == 0 else [(dec_hid, hp)]
        layers.append(_packed_gru_params(keys[1 + l], segs, dec_hid, hp))

    pk = jax.random.split(keys[-1], 6)

    def rnd(k, shape):
        return jax.random.normal(k, shape, jnp.float32) * 0.1

    d1, d2 = 2 * dec_hid, 4 * dec_hid
    w1 = jnp.zeros((hp, d1), jnp.float32).at[:dec_hid].set(rnd(pk[0], (dec_hid, d1)))
    w3 = jnp.pad(rnd(pk[4], (d2, cn_vocab)), ((0, 0), (0, vp - cn_vocab)))
    b3 = jnp.pad(rnd(pk[5], (1, cn_vocab)), ((0, 0), (0, vp - cn_vocab)))
    proj = {
        "w1": w1.astype(jnp.bfloat16),
        "b1": rnd(pk[1], (1, d1)),
        "w2": rnd(pk[2], (d1, d2)).astype(jnp.bfloat16),
        "b2": rnd(pk[3], (1, d2)),
        "w3": w3.astype(jnp.bfloat16),
        "b3": b3,
    }
    return {"embedding": emb, "layers": layers, "proj": proj}


# ----------------------------------------------------------------------------
# Seq2Seq forward (jitted; config & teacher_force static).
# ----------------------------------------------------------------------------
@functools.partial(jax.jit, static_argnames=("cfg", "teacher_force"))
def _seq2seq_impl(src, tgt, enc_params, dec_params, *, cfg, teacher_force):
    B, T_src = src.shape
    T_tgt = tgt.shape[1]
    H = cfg.enc_hid
    hp_e = _round_up(H, LANE)
    dec_hid = 2 * H
    hp_d = _round_up(dec_hid, LANE)
    V = cfg.cn_vocab
    Vp = _round_up(V, LANE)
    L = cfg.n_layers
    Bp = _round_up(max(B, SUBLANE), SUBLANE)   # pad batch to full sublanes

    # ---------------- Encoder ----------------
    src_emb = jnp.take(enc_params["embedding"], src, axis=0)           # (B,T,E)
    x = jnp.transpose(src_emb, (1, 0, 2)).astype(jnp.float32)          # (T,B,E)
    x = jnp.pad(x, ((0, 0), (0, Bp - B), (0, 0)))                      # (T,Bp,E)
    x = x.reshape(T_src * Bp, -1)

    h0_enc = jnp.zeros((2, Bp, hp_e), jnp.float32)
    dec_h0_layers = []
    # TODO(synk): inter-layer dropout is a no-op at inference; omitted.
    for l in range(L):
        lw = enc_params["layers"][l]
        emit = l < L - 1   # last layer's sequence (encoder_outputs) is never used
        seq, hlast = gru_seq_layers(
            x, lw["wi"], lw["wh"], lw["bi"], lw["bh"], h0_enc,
            T=T_src, Bp=Bp, hp=hp_e, emit_seq=emit)
        if emit:
            # lane-padded fwd||bwd handoff -> next layer, no unaligned slices
            x = jnp.concatenate([seq[0], seq[1]], axis=-1)             # (T*Bp,2hp_e)
        h0l = jnp.concatenate([hlast[0, :, :H], hlast[1, :, :H]], axis=-1)
        dec_h0_layers.append(jnp.pad(h0l, ((0, 0), (0, hp_d - dec_hid))))
    dec_h0 = jnp.stack(dec_h0_layers, axis=0)                          # (L,Bp,hp_d)

    # ---------------- Decoder ----------------
    Tm1 = T_tgt - 1
    if teacher_force:
        dec_ids = tgt[:, :Tm1]
        dec_emb = jnp.take(dec_params["embedding"], dec_ids, axis=0)
        xd = jnp.transpose(dec_emb, (1, 0, 2)).astype(jnp.float32)     # (Tm1,B,E)
        xd = jnp.pad(xd, ((0, 0), (0, Bp - B), (0, 0)))
        xd = xd.reshape(Tm1 * Bp, -1)
        for l in range(L):
            lw = dec_params["layers"][l]
            seq, _ = gru_seq_layers(
                xd, lw["wi"][None], lw["wh"][None], lw["bi"][None],
                lw["bh"][None], dec_h0[l:l + 1],
                T=Tm1, Bp=Bp, hp=hp_d, emit_seq=True)
            xd = seq[0]                                                # (Tm1*Bp,hp_d)
        logits = decoder_proj(xd, dec_params["proj"])                  # (Tm1*Bp,Vp)
        logits = logits.reshape(Tm1, Bp, Vp)[:, :B, :V]
        logits_btv = jnp.transpose(logits, (1, 0, 2))                  # (B,Tm1,V)
    else:
        # TODO(synk): per-step random.random() teacher-forcing coin flips are
        # replaced by a deterministic greedy-feedback rule when ratio < 1.0.
        tok0 = jnp.pad(tgt[:, 0:1], ((0, Bp - B), (0, 0))).astype(jnp.int32)
        logits_all = greedy_decode(
            tok0, dec_h0, dec_params["embedding"], dec_params["layers"],
            dec_params["proj"], Tm1=Tm1, Bp=Bp, hp=hp_d, V=V, Vp=Vp)
        logits_btv = jnp.transpose(logits_all[:, :B, :V], (1, 0, 2))   # (B,Tm1,V)

    outputs = jnp.concatenate(
        [jnp.zeros((B, 1, V), jnp.float32), logits_btv], axis=1)       # (B,T,V)
    preds = jnp.argmax(logits_btv, axis=-1)                            # (B,T-1)
    return outputs, preds


def seq2seq_forward(src, tgt, teacher_forcing_ratio, enc_params, dec_params, cfg):
    # teacher_forcing_ratio must be a Python float (kept static under jit).
    teacher_force = float(teacher_forcing_ratio) >= 1.0
    return _seq2seq_impl(src, tgt, enc_params, dec_params,
                         cfg=cfg, teacher_force=teacher_force)


# ----------------------------------------------------------------------------
if __name__ == "__main__":
    key = jax.random.PRNGKey(0)
    k_enc, k_dec, k_src, k_tgt = jax.random.split(key, 4)

    batch, src_len, tgt_len = 2, 8, 8
    en_vocab, cn_vocab = 50, 60
    emb_dim, hid_dim, n_layers = 16, 32, 2     # decoder hidden = 2*hid_dim = 64

    cfg = Seq2SeqConfig(en_vocab=en_vocab, cn_vocab=cn_vocab, emb_dim=emb_dim,
                        enc_hid=hid_dim, n_layers=n_layers)
    enc_params = init_encoder_params(k_enc, en_vocab, emb_dim, hid_dim, n_layers)
    dec_params = init_decoder_params(k_dec, cn_vocab, emb_dim, hid_dim, n_layers)

    src = jax.random.randint(k_src, (batch, src_len), 0, en_vocab, dtype=jnp.int32)
    tgt = jax.random.randint(k_tgt, (batch, tgt_len), 0, cn_vocab, dtype=jnp.int32)

    # Teacher-forced path (hoisted x@W_ih, fused per-layer recurrences).
    outputs, preds = seq2seq_forward(src, tgt, 1.0, enc_params, dec_params, cfg)
    jax.block_until_ready((outputs, preds))
    assert outputs.shape == (batch, tgt_len, cn_vocab)
    assert preds.shape == (batch, tgt_len - 1)
    assert bool(jnp.all(jnp.isfinite(outputs)))

    # Greedy-feedback path (teacher_forcing_ratio < 1): single fused kernel.
    outputs2, preds2 = seq2seq_forward(src, tgt, 0.0, enc_params, dec_params, cfg)
    jax.block_until_ready((outputs2, preds2))
    assert outputs2.shape == (batch, tgt_len, cn_vocab)
    assert preds2.shape == (batch, tgt_len - 1)
    assert bool(jnp.all(jnp.isfinite(outputs2)))

    print("KERNEL_OK")
</pallas_src>

<mosaic_0001>
module attributes {stable_mosaic.version = 11 : i64} {
  func.func @kernel(%arg0: i32, %arg1: memref<64x16xf32, #tpu.memory_space<vmem>>, %arg2: memref<1x16x384xbf16, #tpu.memory_space<vmem>>, %arg3: memref<1x128x384xbf16, #tpu.memory_space<vmem>>, %arg4: memref<1x1x384xf32, #tpu.memory_space<vmem>>, %arg5: memref<1x1x384xf32, #tpu.memory_space<vmem>>, %arg6: memref<1x8x128xf32, #tpu.memory_space<vmem>>, %arg7: memref<1x64x128xf32, #tpu.memory_space<vmem>>, %arg8: memref<1x8x128xf32, #tpu.memory_space<vmem>>, %arg9: memref<64x384xf32, #tpu.memory_space<vmem>>) attributes {dimension_semantics = [#tpu.dimension_semantics<parallel>], iteration_bounds = array<i64: 2>, scalar_prefetch = 0 : i64, scratch_operands = 1 : i64, tpu.core_type = #tpu.core_type<tc>, window_params = [{pipeline_mode = #tpu.pipeline_mode<synchronous>, transform_indices = @transform_0, window_bounds = array<i64: 64, 16>}, {transform_indices = @transform_1, window_bounds = array<i64: 1, 16, 384>}, {transform_indices = @transform_2, window_bounds = array<i64: 1, 128, 384>}, {transform_indices = @transform_3, window_bounds = array<i64: 1, 1, 384>}, {transform_indices = @transform_4, window_bounds = array<i64: 1, 1, 384>}, {transform_indices = @transform_5, window_bounds = array<i64: 1, 8, 128>}, {transform_indices = @transform_6, window_bounds = array<i64: 1, 64, 128>}, {transform_indices = @transform_7, window_bounds = array<i64: 1, 8, 128>}]} {
    %c0 = arith.constant 0 : index
    %c0_0 = arith.constant 0 : index
    %0 = vector.load %arg1[%c0, %c0_0] : memref<64x16xf32, #tpu.memory_space<vmem>>, vector<64x16xf32>
    %1 = arith.truncf %0 : vector<64x16xf32> to vector<64x16xbf16>
    %c0_1 = arith.constant 0 : index
    %c0_2 = arith.constant 0 : index
    %c0_3 = arith.constant 0 : index
    %2 = vector.load %arg2[%c0_1, %c0_2, %c0_3] : memref<1x16x384xbf16, #tpu.memory_space<vmem>>, vector<1x16x384xbf16>
    %3 = vector.shape_cast %2 : vector<1x16x384xbf16> to vector<16x384xbf16>
    %cst = arith.constant dense<0.000000e+00> : vector<64x384xf32>
    %4 = tpu.matmul %1, %3, %cst {dimension_numbers = #tpu.dot_dimension_numbers<[1], [0], [0], [1], [0, 0, 1, 1], [], []>} : vector<64x16xbf16>, vector<16x384xbf16>, vector<64x384xf32> -> vector<64x384xf32>
    %c0_4 = arith.constant 0 : index
    %c0_5 = arith.constant 0 : index
    %c0_6 = arith.constant 0 : index
    %5 = vector.load %arg4[%c0_4, %c0_5, %c0_6] : memref<1x1x384xf32, #tpu.memory_space<vmem>>, vector<1x1x384xf32>
    %6 = vector.shape_cast %5 : vector<1x1x384xf32> to vector<1x384xf32>
    %7 = vector.broadcast %6 : vector<1x384xf32> to vector<64x384xf32>
    %8 = arith.addf %4, %7 : vector<64x384xf32>
    %c0_7 = arith.constant 0 : index
    %c0_8 = arith.constant 0 : index
    %9 = vector.load %arg9[%c0_7, %c0_8] : memref<64x384xf32, #tpu.memory_space<vmem>>, vector<64x384xf32>
    tpu.vector_store %arg9[%c0_7, %c0_8], %8 {strides = array<i32>} : memref<64x384xf32, #tpu.memory_space<vmem>>, vector<64x384xf32>,
    %c0_9 = arith.constant 0 : index
    %c0_10 = arith.constant 0 : index
    %c0_11 = arith.constant 0 : index
    %10 = vector.load %arg3[%c0_9, %c0_10, %c0_11] : memref<1x128x384xbf16, #tpu.memory_space<vmem>>, vector<1x128x384xbf16>
    %11 = vector.shape_cast %10 : vector<1x128x384xbf16> to vector<128x384xbf16>
    %c0_12 = arith.constant 0 : index
    %c0_13 = arith.constant 0 : index
    %c0_14 = arith.constant 0 : index
    %12 = vector.load %arg5[%c0_12, %c0_13, %c0_14] : memref<1x1x384xf32, #tpu.memory_space<vmem>>, vector<1x1x384xf32>
    %13 = vector.shape_cast %12 : vector<1x1x384xf32> to vector<1x384xf32>
    %c0_15 = arith.constant 0 : index
    %c0_16 = arith.constant 0 : index
    %c0_17 = arith.constant 0 : index
    %14 = vector.load %arg6[%c0_15, %c0_16, %c0_17] : memref<1x8x128xf32, #tpu.memory_space<vmem>>, vector<1x8x128xf32>
    %15 = vector.shape_cast %14 : vector<1x8x128xf32> to vector<8x128xf32>
    %c0_i32 = arith.constant 0 : i32
    %c8_i32 = arith.constant 8 : i32
    %16 = arith.addi %c0_i32, %c8_i32 : i32
    %c1_i32 = arith.constant 1 : i32
    %17 = scf.for %arg10 = %c0_i32 to %16 step %c1_i32 iter_args(%arg11 = %15) -> (vector<8x128xf32>)  : i32 {
      %c2_i32 = arith.constant 2 : i32
      %21 = arith.muli %c2_i32, %arg10 : i32
      %c7_i32 = arith.constant 7 : i32
      %22 = arith.subi %c7_i32, %21 : i32
      %23 = arith.muli %arg0, %22 : i32
      %24 = arith.addi %arg10, %23 : i32
      %c8_i32_22 = arith.constant 8 : i32
      %25 = arith.muli %24, %c8_i32_22 : i32
      %26 = tpu.assume_multiple %25, 8 : i32
      %27 = arith.index_cast %26 : i32 to index
      %c0_23 = arith.constant 0 : index
      %28 = vector.load %arg9[%27, %c0_23] : memref<64x384xf32, #tpu.memory_space<vmem>>, vector<8x384xf32>
      %29 = arith.truncf %arg11 : vector<8x128xf32> to vector<8x128xbf16>
      %cst_24 = arith.constant dense<0.000000e+00> : vector<8x384xf32>
      %30 = tpu.matmul %29, %11, %cst_24 {dimension_numbers = #tpu.dot_dimension_numbers<[1], [0], [0], [1], [0, 0, 1, 1], [], []>} : vector<8x128xbf16>, vector<128x384xbf16>, vector<8x384xf32> -> vector<8x384xf32>
      %31 = vector.broadcast %13 : vector<1x384xf32> to vector<8x384xf32>
      %32 = arith.addf %30, %31 : vector<8x384xf32>
      %33 = vector.extract_strided_slice %28 {offsets = [0, 0], sizes = [8, 128], strides = [1, 1]} : vector<8x384xf32> to vector<8x128xf32>
      %34 = vector.extract_strided_slice %32 {offsets = [0, 0], sizes = [8, 128], strides = [1, 1]} : vector<8x384xf32> to vector<8x128xf32>
      %35 = arith.addf %33, %34 : vector<8x128xf32>
      %36 = arith.negf %35 : vector<8x128xf32>
      %37 = math.exp %36 : vector<8x128xf32>
      %cst_25 = arith.constant 1.000000e+00 : f32
      %38 = vector.broadcast %cst_25 : f32 to vector<8x128xf32>
      %39 = arith.addf %38, %37 : vector<8x128xf32>
      %40 = arith.divf %38, %39 : vector<8x128xf32>
      %41 = vector.extract_strided_slice %28 {offsets = [0, 128], sizes = [8, 128], strides = [1, 1]} : vector<8x384xf32> to vector<8x128xf32>
      %42 = vector.extract_strided_slice %32 {offsets = [0, 128], sizes = [8, 128], strides = [1, 1]} : vector<8x384xf32> to vector<8x128xf32>
      %43 = arith.addf %41, %42 : vector<8x128xf32>
      %44 = arith.negf %43 : vector<8x128xf32>
      %45 = math.exp %44 : vector<8x128xf32>
      %cst_26 = arith.constant 1.000000e+00 : f32
      %46 = vector.broadcast %cst_26 : f32 to vector<8x128xf32>
      %47 = arith.addf %46, %45 : vector<8x128xf32>
      %48 = arith.divf %46, %47 : vector<8x128xf32>
      %49 = vector.extract_strided_slice %28 {offsets = [0, 256], sizes = [8, 128], strides = [1, 1]} : vector<8x384xf32> to vector<8x128xf32>
      %50 = vector.extract_strided_slice %32 {offsets = [0, 256], sizes = [8, 128], strides = [1, 1]} : vector<8x384xf32> to vector<8x128xf32>
      %51 = arith.mulf %40, %50 : vector<8x128xf32>
      %52 = arith.addf %49, %51 : vector<8x128xf32>
      %53 = math.tanh %52 : vector<8x128xf32>
      %cst_27 = arith.constant 1.000000e+00 : f32
      %54 = vector.broadcast %cst_27 : f32 to vector<8x128xf32>
      %55 = arith.subf %54, %48 : vector<8x128xf32>
      %56 = arith.mulf %55, %53 : vector<8x128xf32>
      %57 = arith.mulf %48, %arg11 : vector<8x128xf32>
      %58 = arith.addf %56, %57 : vector<8x128xf32>
      %c0_28 = arith.constant 0 : index
      %59 = arith.index_cast %26 : i32 to index
      %c0_29 = arith.constant 0 : index
      %60 = vector.load %arg7[%c0_28, %59, %c0_29] : memref<1x64x128xf32, #tpu.memory_space<vmem>>, vector<1x8x128xf32>
      %61 = vector.shape_cast %60 : vector<1x8x128xf32> to vector<8x128xf32>
      %62 = vector.shape_cast %58 : vector<8x128xf32> to vector<1x8x128xf32>
      tpu.vector_store %arg7[%c0_28, %59, %c0_29], %62 {strides = array<i32>} : memref<1x64x128xf32, #tpu.memory_space<vmem>>, vector<1x8x128xf32>,
      scf.yield %58 : vector<8x128xf32>
    }
    %c8_i32_18 = arith.constant 8 : i32
    %c0_19 = arith.constant 0 : index
    %c0_20 = arith.constant 0 : index
    %c0_21 = arith.constant 0 : index
    %18 = vector.load %arg8[%c0_19, %c0_20, %c0_21] : memref<1x8x128xf32, #tpu.memory_space<vmem>>, vector<1x8x128xf32>
    %19 = vector.shape_cast %18 : vector<1x8x128xf32> to vector<8x128xf32>
    %20 = vector.shape_cast %17 : vector<8x128xf32> to vector<1x8x128xf32>
    tpu.vector_store %arg8[%c0_19, %c0_20, %c0_21], %20 {strides = array<i32>} : memref<1x8x128xf32, #tpu.memory_space<vmem>>, vector<1x8x128xf32>,
    return
  }
  func.func @transform_0(%arg0: i32) -> (i32, i32) {
    %c0_i32 = arith.constant 0 : i32
    %c0_i32_0 = arith.constant 0 : i32
    %c0_i32_1 = arith.constant 0 : i32
    return %c0_i32, %c0_i32_0 : i32, i32
  }
  func.func @transform_1(%arg0: i32) -> (i32, i32, i32) {
    %c0_i32 = arith.constant 0 : i32
    %c0_i32_0 = arith.constant 0 : i32
    %c0_i32_1 = arith.constant 0 : i32
    return %arg0, %c0_i32, %c0_i32_0 : i32, i32, i32
  }
  func.func @transform_2(%arg0: i32) -> (i32, i32, i32) {
    %c0_i32 = arith.constant 0 : i32
    %c0_i32_0 = arith.constant 0 : i32
    %c0_i32_1 = arith.constant 0 : i32
    return %arg0, %c0_i32, %c0_i32_0 : i32, i32, i32
  }
  func.func @transform_3(%arg0: i32) -> (i32, i32, i32) {
    %c0_i32 = arith.constant 0 : i32
    %c0_i32_0 = arith.constant 0 : i32
    %c0_i32_1 = arith.constant 0 : i32
    return %arg0, %c0_i32, %c0_i32_0 : i32, i32, i32
  }
  func.func @transform_4(%arg0: i32) -> (i32, i32, i32) {
    %c0_i32 = arith.constant 0 : i32
    %c0_i32_0 = arith.constant 0 : i32
    %c0_i32_1 = arith.constant 0 : i32
    return %arg0, %c0_i32, %c0_i32_0 : i32, i32, i32
  }
  func.func @transform_5(%arg0: i32) -> (i32, i32, i32) {
    %c0_i32 = arith.constant 0 : i32
    %c0_i32_0 = arith.constant 0 : i32
    %c0_i32_1 = arith.constant 0 : i32
    return %arg0, %c0_i32, %c0_i32_0 : i32, i32, i32
  }
  func.func @transform_6(%arg0: i32) -> (i32, i32, i32) {
    %c0_i32 = arith.constant 0 : i32
    %c0_i32_0 = arith.constant 0 : i32
    %c0_i32_1 = arith.constant 0 : i32
    return %arg0, %c0_i32, %c0_i32_0 : i32, i32, i32
  }
  func.func @transform_7(%arg0: i32) -> (i32, i32, i32) {
    %c0_i32 = arith.constant 0 : i32
    %c0_i32_0 = arith.constant 0 : i32
    %c0_i32_1 = arith.constant 0 : i32
    return %arg0, %c0_i32, %c0_i32_0 : i32, i32, i32
  }
}

module attributes {stable_mosaic.version = 11 : i64} {
  func.func @kernel(%arg0: i32, %arg1: memref<64x256xf32, #tpu.memory_space<vmem>>, %arg2: memref<1x256x384xbf16, #tpu.memory_space<vmem>>, %arg3: memref<1x128x384xbf16, #tpu.memory_space<vmem>>, %arg4: memref<1x1x384xf32, #tpu.memory_space<vmem>>, %arg5: memref<1x1x384xf32, #tpu.memory_space<vmem>>, %arg6: memref<1x8x128xf32, #tpu.memory_space<vmem>>, %arg7: memref<1x8x128xf32, #tpu.memory_space<vmem>>, %arg8: memref<64x384xf32, #tpu.memory_space<vmem>>) attributes {dimension_semantics = [#tpu.dimension_semantics<parallel>], iteration_bounds = array<i64: 2>, scalar_prefetch = 0 : i64, scratch_operands = 1 : i64, tpu.core_type = #tpu.core_type<tc>, window_params = [{pipeline_mode = #tpu.pipeline_mode<synchronous>, transform_indices = @transform_0, window_bounds = array<i64: 64, 256>}, {transform_indices = @transform_1, window_bounds = array<i64: 1, 256, 384>}, {transform_indices = @transform_2, window_bounds = array<i64: 1, 128, 384>}, {transform_indices = @transform_3, window_bounds = array<i64: 1, 1, 384>}, {transform_indices = @transform_4, window_bounds = array<i64: 1, 1, 384>}, {transform_indices = @transform_5, window_bounds = array<i64: 1, 8, 128>}, {transform_indices = @transform_6, window_bounds = array<i64: 1, 8, 128>}]} {
    %c0 = arith.constant 0 : index
    %c0_0 = arith.constant 0 : index
    %0 = vector.load %arg1[%c0, %c0_0] : memref<64x256xf32, #tpu.memory_space<vmem>>, vector<64x256xf32>
    %1 = arith.truncf %0 : vector<64x256xf32> to vector<64x256xbf16>
    %c0_1 = arith.constant 0 : index
    %c0_2 = arith.constant 0 : index
    %c0_3 = arith.constant 0 : index
    %2 = vector.load %arg2[%c0_1, %c0_2, %c0_3] : memref<1x256x384xbf16, #tpu.memory_space<vmem>>, vector<1x256x384xbf16>
    %3 = vector.shape_cast %2 : vector<1x256x384xbf16> to vector<256x384xbf16>
    %cst = arith.constant dense<0.000000e+00> : vector<64x384xf32>
    %4 = tpu.matmul %1, %3, %cst {dimension_numbers = #tpu.dot_dimension_numbers<[1], [0], [0], [1], [0, 0, 1, 1], [], []>} : vector<64x256xbf16>, vector<256x384xbf16>, vector<64x384xf32> -> vector<64x384xf32>
    %c0_4 = arith.constant 0 : index
    %c0_5 = arith.constant 0 : index
    %c0_6 = arith.constant 0 : index
    %5 = vector.load %arg4[%c0_4, %c0_5, %c0_6] : memref<1x1x384xf32, #tpu.memory_space<vmem>>, vector<1x1x384xf32>
    %6 = vector.shape_cast %5 : vector<1x1x384xf32> to vector<1x384xf32>
    %7 = vector.broadcast %6 : vector<1x384xf32> to vector<64x384xf32>
    %8 = arith.addf %4, %7 : vector<64x384xf32>
    %c0_7 = arith.constant 0 : index
    %c0_8 = arith.constant 0 : index
    %9 = vector.load %arg8[%c0_7, %c0_8] : memref<64x384xf32, #tpu.memory_space<vmem>>, vector<64x384xf32>
    tpu.vector_store %arg8[%c0_7, %c0_8], %8 {strides = array<i32>} : memref<64x384xf32, #tpu.memory_space<vmem>>, vector<64x384xf32>,
    %c0_9 = arith.constant 0 : index
    %c0_10 = arith.constant 0 : index
    %c0_11 = arith.constant 0 : index
    %10 = vector.load %arg3[%c0_9, %c0_10, %c0_11] : memref<1x128x384xbf16, #tpu.memory_space<vmem>>, vector<1x128x384xbf16>
    %11 = vector.shape_cast %10 : vector<1x128x384xbf16> to vector<128x384xbf16>
    %c0_12 = arith.constant 0 : index
    %c0_13 = arith.constant 0 : index
    %c0_14 = arith.constant 0 : index
    %12 = vector.load %arg5[%c0_12, %c0_13, %c0_14] : memref<1x1x384xf32, #tpu.memory_space<vmem>>, vector<1x1x384xf32>
    %13 = vector.shape_cast %12 : vector<1x1x384xf32> to vector<1x384xf32>
    %c0_15 = arith.constant 0 : index
    %c0_16 = arith.constant 0 : index
    %c0_17 = arith.constant 0 : index
    %14 = vector.load %arg6[%c0_15, %c0_16, %c0_17] : memref<1x8x128xf32, #tpu.memory_space<vmem>>, vector<1x8x128xf32>
    %15 = vector.shape_cast %14 : vector<1x8x128xf32> to vector<8x128xf32>
    %c0_i32 = arith.constant 0 : i32
    %c8_i32 = arith.constant 8 : i32
    %16 = arith.addi %c0_i32, %c8_i32 : i32
    %c1_i32 = arith.constant 1 : i32
    %17 = scf.for %arg9 = %c0_i32 to %16 step %c1_i32 iter_args(%arg10 = %15) -> (vector<8x128xf32>)  : i32 {
      %c2_i32 = arith.constant 2 : i32
      %21 = arith.muli %c2_i32, %arg9 : i32
      %c7_i32 = arith.constant 7 : i32
      %22 = arith.subi %c7_i32, %21 : i32
      %23 = arith.muli %arg0, %22 : i32
      %24 = arith.addi %arg9, %23 : i32
      %c8_i32_22 = arith.constant 8 : i32
      %25 = arith.muli %24, %c8_i32_22 : i32
      %26 = tpu.assume_multiple %25, 8 : i32
      %27 = arith.index_cast %26 : i32 to index
      %c0_23 = arith.constant 0 : index
      %28 = vector.load %arg8[%27, %c0_23] : memref<64x384xf32, #tpu.memory_space<vmem>>, vector<8x384xf32>
      %29 = arith.truncf %arg10 : vector<8x128xf32> to vector<8x128xbf16>
      %cst_24 = arith.constant dense<0.000000e+00> : vector<8x384xf32>
      %30 = tpu.matmul %29, %11, %cst_24 {dimension_numbers = #tpu.dot_dimension_numbers<[1], [0], [0], [1], [0, 0, 1, 1], [], []>} : vector<8x128xbf16>, vector<128x384xbf16>, vector<8x384xf32> -> vector<8x384xf32>
      %31 = vector.broadcast %13 : vector<1x384xf32> to vector<8x384xf32>
      %32 = arith.addf %30, %31 : vector<8x384xf32>
      %33 = vector.extract_strided_slice %28 {offsets = [0, 0], sizes = [8, 128], strides = [1, 1]} : vector<8x384xf32> to vector<8x128xf32>
      %34 = vector.extract_strided_slice %32 {offsets = [0, 0], sizes = [8, 128], strides = [1, 1]} : vector<8x384xf32> to vector<8x128xf32>
      %35 = arith.addf %33, %34 : vector<8x128xf32>
      %36 = arith.negf %35 : vector<8x128xf32>
      %37 = math.exp %36 : vector<8x128xf32>
      %cst_25 = arith.constant 1.000000e+00 : f32
      %38 = vector.broadcast %cst_25 : f32 to vector<8x128xf32>
      %39 = arith.addf %38, %37 : vector<8x128xf32>
      %40 = arith.divf %38, %39 : vector<8x128xf32>
      %41 = vector.extract_strided_slice %28 {offsets = [0, 128], sizes = [8, 128], strides = [1, 1]} : vector<8x384xf32> to vector<8x128xf32>
      %42 = vector.extract_strided_slice %32 {offsets = [0, 128], sizes = [8, 128], strides = [1, 1]} : vector<8x384xf32> to vector<8x128xf32>
      %43 = arith.addf %41, %42 : vector<8x128xf32>
      %44 = arith.negf %43 : vector<8x128xf32>
      %45 = math.exp %44 : vector<8x128xf32>
      %cst_26 = arith.constant 1.000000e+00 : f32
      %46 = vector.broadcast %cst_26 : f32 to vector<8x128xf32>
      %47 = arith.addf %46, %45 : vector<8x128xf32>
      %48 = arith.divf %46, %47 : vector<8x128xf32>
      %49 = vector.extract_strided_slice %28 {offsets = [0, 256], sizes = [8, 128], strides = [1, 1]} : vector<8x384xf32> to vector<8x128xf32>
      %50 = vector.extract_strided_slice %32 {offsets = [0, 256], sizes = [8, 128], strides = [1, 1]} : vector<8x384xf32> to vector<8x128xf32>
      %51 = arith.mulf %40, %50 : vector<8x128xf32>
      %52 = arith.addf %49, %51 : vector<8x128xf32>
      %53 = math.tanh %52 : vector<8x128xf32>
      %cst_27 = arith.constant 1.000000e+00 : f32
      %54 = vector.broadcast %cst_27 : f32 to vector<8x128xf32>
      %55 = arith.subf %54, %48 : vector<8x128xf32>
      %56 = arith.mulf %55, %53 : vector<8x128xf32>
      %57 = arith.mulf %48, %arg10 : vector<8x128xf32>
      %58 = arith.addf %56, %57 : vector<8x128xf32>
      scf.yield %58 : vector<8x128xf32>
    }
    %c8_i32_18 = arith.constant 8 : i32
    %c0_19 = arith.constant 0 : index
    %c0_20 = arith.constant 0 : index
    %c0_21 = arith.constant 0 : index
    %18 = vector.load %arg7[%c0_19, %c0_20, %c0_21] : memref<1x8x128xf32, #tpu.memory_space<vmem>>, vector<1x8x128xf32>
    %19 = vector.shape_cast %18 : vector<1x8x128xf32> to vector<8x128xf32>
    %20 = vector.shape_cast %17 : vector<8x128xf32> to vector<1x8x128xf32>
    tpu.vector_store %arg7[%c0_19, %c0_20, %c0_21], %20 {strides = array<i32>} : memref<1x8x128xf32, #tpu.memory_space<vmem>>, vector<1x8x128xf32>,
    return
  }
  func.func @transform_0(%arg0: i32) -> (i32, i32) {
    %c0_i32 = arith.constant 0 : i32
    %c0_i32_0 = arith.constant 0 : i32
    %c0_i32_1 = arith.constant 0 : i32
    return %c0_i32, %c0_i32_0 : i32, i32
  }
  func.func @transform_1(%arg0: i32) -> (i32, i32, i32) {
    %c0_i32 = arith.constant 0 : i32
    %c0_i32_0 = arith.constant 0 : i32
    %c0_i32_1 = arith.constant 0 : i32
    return %arg0, %c0_i32, %c0_i32_0 : i32, i32, i32
  }
  func.func @transform_2(%arg0: i32) -> (i32, i32, i32) {
    %c0_i32 = arith.constant 0 : i32
    %c0_i32_0 = arith.constant 0 : i32
    %c0_i32_1 = arith.constant 0 : i32
    return %arg0, %c0_i32, %c0_i32_0 : i32, i32, i32
  }
  func.func @transform_3(%arg0: i32) -> (i32, i32, i32) {
    %c0_i32 = arith.constant 0 : i32
    %c0_i32_0 = arith.constant 0 : i32
    %c0_i32_1 = arith.constant 0 : i32
    return %arg0, %c0_i32, %c0_i32_0 : i32, i32, i32
  }
  func.func @transform_4(%arg0: i32) -> (i32, i32, i32) {
    %c0_i32 = arith.constant 0 : i32
    %c0_i32_0 = arith.constant 0 : i32
    %c0_i32_1 = arith.constant 0 : i32
    return %arg0, %c0_i32, %c0_i32_0 : i32, i32, i32
  }
  func.func @transform_5(%arg0: i32) -> (i32, i32, i32) {
    %c0_i32 = arith.constant 0 : i32
    %c0_i32_0 = arith.constant 0 : i32
    %c0_i32_1 = arith.constant 0 : i32
    return %arg0, %c0_i32, %c0_i32_0 : i32, i32, i32
  }
  func.func @transform_6(%arg0: i32) -> (i32, i32, i32) {
    %c0_i32 = arith.constant 0 : i32
    %c0_i32_0 = arith.constant 0 : i32
    %c0_i32_1 = arith.constant 0 : i32
    return %arg0, %c0_i32, %c0_i32_0 : i32, i32, i32
  }
}

module attributes {stable_mosaic.version = 11 : i64} {
  func.func @kernel(%arg0: i32, %arg1: memref<56x16xf32, #tpu.memory_space<vmem>>, %arg2: memref<1x16x384xbf16, #tpu.memory_space<vmem>>, %arg3: memref<1x128x384xbf16, #tpu.memory_space<vmem>>, %arg4: memref<1x1x384xf32, #tpu.memory_space<vmem>>, %arg5: memref<1x1x384xf32, #tpu.memory_space<vmem>>, %arg6: memref<1x8x128xf32, #tpu.memory_space<vmem>>, %arg7: memref<1x56x128xf32, #tpu.memory_space<vmem>>, %arg8: memref<1x8x128xf32, #tpu.memory_space<vmem>>, %arg9: memref<56x384xf32, #tpu.memory_space<vmem>>) attributes {dimension_semantics = [#tpu.dimension_semantics<parallel>], iteration_bounds = array<i64: 1>, scalar_prefetch = 0 : i64, scratch_operands = 1 : i64, tpu.core_type = #tpu.core_type<tc>, window_params = [{pipeline_mode = #tpu.pipeline_mode<synchronous>, transform_indices = @transform_0, window_bounds = array<i64: 56, 16>}, {transform_indices = @transform_1, window_bounds = array<i64: 1, 16, 384>}, {transform_indices = @transform_2, window_bounds = array<i64: 1, 128, 384>}, {transform_indices = @transform_3, window_bounds = array<i64: 1, 1, 384>}, {transform_indices = @transform_4, window_bounds = array<i64: 1, 1, 384>}, {transform_indices = @transform_5, window_bounds = array<i64: 1, 8, 128>}, {transform_indices = @transform_6, window_bounds = array<i64: 1, 56, 128>}, {transform_indices = @transform_7, window_bounds = array<i64: 1, 8, 128>}]} {
    %c0 = arith.constant 0 : index
    %c0_0 = arith.constant 0 : index
    %0 = vector.load %arg1[%c0, %c0_0] : memref<56x16xf32, #tpu.memory_space<vmem>>, vector<56x16xf32>
    %1 = arith.truncf %0 : vector<56x16xf32> to vector<56x16xbf16>
    %c0_1 = arith.constant 0 : index
    %c0_2 = arith.constant 0 : index
    %c0_3 = arith.constant 0 : index
    %2 = vector.load %arg2[%c0_1, %c0_2, %c0_3] : memref<1x16x384xbf16, #tpu.memory_space<vmem>>, vector<1x16x384xbf16>
    %3 = vector.shape_cast %2 : vector<1x16x384xbf16> to vector<16x384xbf16>
    %cst = arith.constant dense<0.000000e+00> : vector<56x384xf32>
    %4 = tpu.matmul %1, %3, %cst {dimension_numbers = #tpu.dot_dimension_numbers<[1], [0], [0], [1], [0, 0, 1, 1], [], []>} : vector<56x16xbf16>, vector<16x384xbf16>, vector<56x384xf32> -> vector<56x384xf32>
    %c0_4 = arith.constant 0 : index
    %c0_5 = arith.constant 0 : index
    %c0_6 = arith.constant 0 : index
    %5 = vector.load %arg4[%c0_4, %c0_5, %c0_6] : memref<1x1x384xf32, #tpu.memory_space<vmem>>, vector<1x1x384xf32>
    %6 = vector.shape_cast %5 : vector<1x1x384xf32> to vector<1x384xf32>
    %7 = vector.broadcast %6 : vector<1x384xf32> to vector<56x384xf32>
    %8 = arith.addf %4, %7 : vector<56x384xf32>
    %c0_7 = arith.constant 0 : index
    %c0_8 = arith.constant 0 : index
    %9 = vector.load %arg9[%c0_7, %c0_8] : memref<56x384xf32, #tpu.memory_space<vmem>>, vector<56x384xf32>
    tpu.vector_store %arg9[%c0_7, %c0_8], %8 {strides = array<i32>} : memref<56x384xf32, #tpu.memory_space<vmem>>, vector<56x384xf32>,
    %c0_9 = arith.constant 0 : index
    %c0_10 = arith.constant 0 : index
    %c0_11 = arith.constant 0 : index
    %10 = vector.load %arg3[%c0_9, %c0_10, %c0_11] : memref<1x128x384xbf16, #tpu.memory_space<vmem>>, vector<1x128x384xbf16>
    %11 = vector.shape_cast %10 : vector<1x128x384xbf16> to vector<128x384xbf16>
    %c0_12 = arith.constant 0 : index
    %c0_13 = arith.constant 0 : index
    %c0_14 = arith.constant 0 : index
    %12 = vector.load %arg5[%c0_12, %c0_13, %c0_14] : memref<1x1x384xf32, #tpu.memory_space<vmem>>, vector<1x1x384xf32>
    %13 = vector.shape_cast %12 : vector<1x1x384xf32> to vector<1x384xf32>
    %c0_15 = arith.constant 0 : index
    %c0_16 = arith.constant 0 : index
    %c0_17 = arith.constant 0 : index
    %14 = vector.load %arg6[%c0_15, %c0_16, %c0_17] : memref<1x8x128xf32, #tpu.memory_space<vmem>>, vector<1x8x128xf32>
    %15 = vector.shape_cast %14 : vector<1x8x128xf32> to vector<8x128xf32>
    %c0_i32 = arith.constant 0 : i32
    %c7_i32 = arith.constant 7 : i32
    %16 = arith.addi %c0_i32, %c7_i32 : i32
    %c1_i32 = arith.constant 1 : i32
    %17 = scf.for %arg10 = %c0_i32 to %16 step %c1_i32 iter_args(%arg11 = %15) -> (vector<8x128xf32>)  : i32 {
      %c2_i32 = arith.constant 2 : i32
      %21 = arith.muli %c2_i32, %arg10 : i32
      %c6_i32 = arith.constant 6 : i32
      %22 = arith.subi %c6_i32, %21 : i32
      %23 = arith.muli %arg0, %22 : i32
      %24 = arith.addi %arg10, %23 : i32
      %c8_i32 = arith.constant 8 : i32
      %25 = arith.muli %24, %c8_i32 : i32
      %26 = tpu.assume_multiple %25, 8 : i32
      %27 = arith.index_cast %26 : i32 to index
      %c0_22 = arith.constant 0 : index
      %28 = vector.load %arg9[%27, %c0_22] : memref<56x384xf32, #tpu.memory_space<vmem>>, vector<8x384xf32>
      %29 = arith.truncf %arg11 : vector<8x128xf32> to vector<8x128xbf16>
      %cst_23 = arith.constant dense<0.000000e+00> : vector<8x384xf32>
      %30 = tpu.matmul %29, %11, %cst_23 {dimension_numbers = #tpu.dot_dimension_numbers<[1], [0], [0], [1], [0, 0, 1, 1], [], []>} : vector<8x128xbf16>, vector<128x384xbf16>, vector<8x384xf32> -> vector<8x384xf32>
      %31 = vector.broadcast %13 : vector<1x384xf32> to vector<8x384xf32>
      %32 = arith.addf %30, %31 : vector<8x384xf32>
      %33 = vector.extract_strided_slice %28 {offsets = [0, 0], sizes = [8, 128], strides = [1, 1]} : vector<8x384xf32> to vector<8x128xf32>
      %34 = vector.extract_strided_slice %32 {offsets = [0, 0], sizes = [8, 128], strides = [1, 1]} : vector<8x384xf32> to vector<8x128xf32>
      %35 = arith.addf %33, %34 : vector<8x128xf32>
      %36 = arith.negf %35 : vector<8x128xf32>
      %37 = math.exp %36 : vector<8x128xf32>
      %cst_24 = arith.constant 1.000000e+00 : f32
      %38 = vector.broadcast %cst_24 : f32 to vector<8x128xf32>
      %39 = arith.addf %38, %37 : vector<8x128xf32>
      %40 = arith.divf %38, %39 : vector<8x128xf32>
      %41 = vector.extract_strided_slice %28 {offsets = [0, 128], sizes = [8, 128], strides = [1, 1]} : vector<8x384xf32> to vector<8x128xf32>
      %42 = vector.extract_strided_slice %32 {offsets = [0, 128], sizes = [8, 128], strides = [1, 1]} : vector<8x384xf32> to vector<8x128xf32>
      %43 = arith.addf %41, %42 : vector<8x128xf32>
      %44 = arith.negf %43 : vector<8x128xf32>
      %45 = math.exp %44 : vector<8x128xf32>
      %cst_25 = arith.constant 1.000000e+00 : f32
      %46 = vector.broadcast %cst_25 : f32 to vector<8x128xf32>
      %47 = arith.addf %46, %45 : vector<8x128xf32>
      %48 = arith.divf %46, %47 : vector<8x128xf32>
      %49 = vector.extract_strided_slice %28 {offsets = [0, 256], sizes = [8, 128], strides = [1, 1]} : vector<8x384xf32> to vector<8x128xf32>
      %50 = vector.extract_strided_slice %32 {offsets = [0, 256], sizes = [8, 128], strides = [1, 1]} : vector<8x384xf32> to vector<8x128xf32>
      %51 = arith.mulf %40, %50 : vector<8x128xf32>
      %52 = arith.addf %49, %51 : vector<8x128xf32>
      %53 = math.tanh %52 : vector<8x128xf32>
      %cst_26 = arith.constant 1.000000e+00 : f32
      %54 = vector.broadcast %cst_26 : f32 to vector<8x128xf32>
      %55 = arith.subf %54, %48 : vector<8x128xf32>
      %56 = arith.mulf %55, %53 : vector<8x128xf32>
      %57 = arith.mulf %48, %arg11 : vector<8x128xf32>
      %58 = arith.addf %56, %57 : vector<8x128xf32>
      %c0_27 = arith.constant 0 : index
      %59 = arith.index_cast %26 : i32 to index
      %c0_28 = arith.constant 0 : index
      %60 = vector.load %arg7[%c0_27, %59, %c0_28] : memref<1x56x128xf32, #tpu.memory_space<vmem>>, vector<1x8x128xf32>
      %61 = vector.shape_cast %60 : vector<1x8x128xf32> to vector<8x128xf32>
      %62 = vector.shape_cast %58 : vector<8x128xf32> to vector<1x8x128xf32>
      tpu.vector_store %arg7[%c0_27, %59, %c0_28], %62 {strides = array<i32>} : memref<1x56x128xf32, #tpu.memory_space<vmem>>, vector<1x8x128xf32>,
      scf.yield %58 : vector<8x128xf32>
    }
    %c7_i32_18 = arith.constant 7 : i32
    %c0_19 = arith.constant 0 : index
    %c0_20 = arith.constant 0 : index
    %c0_21 = arith.constant 0 : index
    %18 = vector.load %arg8[%c0_19, %c0_20, %c0_21] : memref<1x8x128xf32, #tpu.memory_space<vmem>>, vector<1x8x128xf32>
    %19 = vector.shape_cast %18 : vector<1x8x128xf32> to vector<8x128xf32>
    %20 = vector.shape_cast %17 : vector<8x128xf32> to vector<1x8x128xf32>
    tpu.vector_store %arg8[%c0_19, %c0_20, %c0_21], %20 {strides = array<i32>} : memref<1x8x128xf32, #tpu.memory_space<vmem>>, vector<1x8x128xf32>,
    return
  }
  func.func @transform_0(%arg0: i32) -> (i32, i32) {
    %c0_i32 = arith.constant 0 : i32
    %c0_i32_0 = arith.constant 0 : i32
    %c0_i32_1 = arith.constant 0 : i32
    return %c0_i32, %c0_i32_0 : i32, i32
  }
  func.func @transform_1(%arg0: i32) -> (i32, i32, i32) {
    %c0_i32 = arith.constant 0 : i32
    %c0_i32_0 = arith.constant 0 : i32
    %c0_i32_1 = arith.constant 0 : i32
    return %arg0, %c0_i32, %c0_i32_0 : i32, i32, i32
  }
  func.func @transform_2(%arg0: i32) -> (i32, i32, i32) {
    %c0_i32 = arith.constant 0 : i32
    %c0_i32_0 = arith.constant 0 : i32
    %c0_i32_1 = arith.constant 0 : i32
    return %arg0, %c0_i32, %c0_i32_0 : i32, i32, i32
  }
  func.func @transform_3(%arg0: i32) -> (i32, i32, i32) {
    %c0_i32 = arith.constant 0 : i32
    %c0_i32_0 = arith.constant 0 : i32
    %c0_i32_1 = arith.constant 0 : i32
    return %arg0, %c0_i32, %c0_i32_0 : i32, i32, i32
  }
  func.func @transform_4(%arg0: i32) -> (i32, i32, i32) {
    %c0_i32 = arith.constant 0 : i32
    %c0_i32_0 = arith.constant 0 : i32
    %c0_i32_1 = arith.constant 0 : i32
    return %arg0, %c0_i32, %c0_i32_0 : i32, i32, i32
  }
  func.func @transform_5(%arg0: i32) -> (i32, i32, i32) {
    %c0_i32 = arith.constant 0 : i32
    %c0_i32_0 = arith.constant 0 : i32
    %c0_i32_1 = arith.constant 0 : i32
    return %arg0, %c0_i32, %c0_i32_0 : i32, i32, i32
  }
  func.func @transform_6(%arg0: i32) -> (i32, i32, i32) {
    %c0_i32 = arith.constant 0 : i32
    %c0_i32_0 = arith.constant 0 : i32
    %c0_i32_1 = arith.constant 0 : i32
    return %arg0, %c0_i32, %c0_i32_0 : i32, i32, i32
  }
  func.func @transform_7(%arg0: i32) -> (i32, i32, i32) {
    %c0_i32 = arith.constant 0 : i32
    %c0_i32_0 = arith.constant 0 : i32
    %c0_i32_1 = arith.constant 0 : i32
    return %arg0, %c0_i32, %c0_i32_0 : i32, i32, i32
  }
}

module attributes {stable_mosaic.version = 11 : i64} {
  func.func @kernel(%arg0: i32, %arg1: memref<56x128xf32, #tpu.memory_space<vmem>>, %arg2: memref<1x128x384xbf16, #tpu.memory_space<vmem>>, %arg3: memref<1x128x384xbf16, #tpu.memory_space<vmem>>, %arg4: memref<1x1x384xf32, #tpu.memory_space<vmem>>, %arg5: memref<1x1x384xf32, #tpu.memory_space<vmem>>, %arg6: memref<1x8x128xf32, #tpu.memory_space<vmem>>, %arg7: memref<1x56x128xf32, #tpu.memory_space<vmem>>, %arg8: memref<1x8x128xf32, #tpu.memory_space<vmem>>, %arg9: memref<56x384xf32, #tpu.memory_space<vmem>>) attributes {dimension_semantics = [#tpu.dimension_semantics<parallel>], iteration_bounds = array<i64: 1>, scalar_prefetch = 0 : i64, scratch_operands = 1 : i64, tpu.core_type = #tpu.core_type<tc>, window_params = [{pipeline_mode = #tpu.pipeline_mode<synchronous>, transform_indices = @transform_0, window_bounds = array<i64: 56, 128>}, {transform_indices = @transform_1, window_bounds = array<i64: 1, 128, 384>}, {transform_indices = @transform_2, window_bounds = array<i64: 1, 128, 384>}, {transform_indices = @transform_3, window_bounds = array<i64: 1, 1, 384>}, {transform_indices = @transform_4, window_bounds = array<i64: 1, 1, 384>}, {transform_indices = @transform_5, window_bounds = array<i64: 1, 8, 128>}, {transform_indices = @transform_6, window_bounds = array<i64: 1, 56, 128>}, {transform_indices = @transform_7, window_bounds = array<i64: 1, 8, 128>}]} {
    %c0 = arith.constant 0 : index
    %c0_0 = arith.constant 0 : index
    %0 = vector.load %arg1[%c0, %c0_0] : memref<56x128xf32, #tpu.memory_space<vmem>>, vector<56x128xf32>
    %1 = arith.truncf %0 : vector<56x128xf32> to vector<56x128xbf16>
    %c0_1 = arith.constant 0 : index
    %c0_2 = arith.constant 0 : index
    %c0_3 = arith.constant 0 : index
    %2 = vector.load %arg2[%c0_1, %c0_2, %c0_3] : memref<1x128x384xbf16, #tpu.memory_space<vmem>>, vector<1x128x384xbf16>
    %3 = vector.shape_cast %2 : vector<1x128x384xbf16> to vector<128x384xbf16>
    %cst = arith.constant dense<0.000000e+00> : vector<56x384xf32>
    %4 = tpu.matmul %1, %3, %cst {dimension_numbers = #tpu.dot_dimension_numbers<[1], [0], [0], [1], [0, 0, 1, 1], [], []>} : vector<56x128xbf16>, vector<128x384xbf16>, vector<56x384xf32> -> vector<56x384xf32>
    %c0_4 = arith.constant 0 : index
    %c0_5 = arith.constant 0 : index
    %c0_6 = arith.constant 0 : index
    %5 = vector.load %arg4[%c0_4, %c0_5, %c0_6] : memref<1x1x384xf32, #tpu.memory_space<vmem>>, vector<1x1x384xf32>
    %6 = vector.shape_cast %5 : vector<1x1x384xf32> to vector<1x384xf32>
    %7 = vector.broadcast %6 : vector<1x384xf32> to vector<56x384xf32>
    %8 = arith.addf %4, %7 : vector<56x384xf32>
    %c0_7 = arith.constant 0 : index
    %c0_8 = arith.constant 0 : index
    %9 = vector.load %arg9[%c0_7, %c0_8] : memref<56x384xf32, #tpu.memory_space<vmem>>, vector<56x384xf32>
    tpu.vector_store %arg9[%c0_7, %c0_8], %8 {strides = array<i32>} : memref<56x384xf32, #tpu.memory_space<vmem>>, vector<56x384xf32>,
    %c0_9 = arith.constant 0 : index
    %c0_10 = arith.constant 0 : index
    %c0_11 = arith.constant 0 : index
    %10 = vector.load %arg3[%c0_9, %c0_10, %c0_11] : memref<1x128x384xbf16, #tpu.memory_space<vmem>>, vector<1x128x384xbf16>
    %11 = vector.shape_cast %10 : vector<1x128x384xbf16> to vector<128x384xbf16>
    %c0_12 = arith.constant 0 : index
    %c0_13 = arith.constant 0 : index
    %c0_14 = arith.constant 0 : index
    %12 = vector.load %arg5[%c0_12, %c0_13, %c0_14] : memref<1x1x384xf32, #tpu.memory_space<vmem>>, vector<1x1x384xf32>
    %13 = vector.shape_cast %12 : vector<1x1x384xf32> to vector<1x384xf32>
    %c0_15 = arith.constant 0 : index
    %c0_16 = arith.constant 0 : index
    %c0_17 = arith.constant 0 : index
    %14 = vector.load %arg6[%c0_15, %c0_16, %c0_17] : memref<1x8x128xf32, #tpu.memory_space<vmem>>, vector<1x8x128xf32>
    %15 = vector.shape_cast %14 : vector<1x8x128xf32> to vector<8x128xf32>
    %c0_i32 = arith.constant 0 : i32
    %c7_i32 = arith.constant 7 : i32
    %16 = arith.addi %c0_i32, %c7_i32 : i32
    %c1_i32 = arith.constant 1 : i32
    %17 = scf.for %arg10 = %c0_i32 to %16 step %c1_i32 iter_args(%arg11 = %15) -> (vector<8x128xf32>)  : i32 {
      %c2_i32 = arith.constant 2 : i32
      %21 = arith.muli %c2_i32, %arg10 : i32
      %c6_i32 = arith.constant 6 : i32
      %22 = arith.subi %c6_i32, %21 : i32
      %23 = arith.muli %arg0, %22 : i32
      %24 = arith.addi %arg10, %23 : i32
      %c8_i32 = arith.constant 8 : i32
      %25 = arith.muli %24, %c8_i32 : i32
      %26 = tpu.assume_multiple %25, 8 : i32
      %27 = arith.index_cast %26 : i32 to index
      %c0_22 = arith.constant 0 : index
      %28 = vector.load %arg9[%27, %c0_22] : memref<56x384xf32, #tpu.memory_space<vmem>>, vector<8x384xf32>
      %29 = arith.truncf %arg11 : vector<8x128xf32> to vector<8x128xbf16>
      %cst_23 = arith.constant dense<0.000000e+00> : vector<8x384xf32>
      %30 = tpu.matmul %29, %11, %cst_23 {dimension_numbers = #tpu.dot_dimension_numbers<[1], [0], [0], [1], [0, 0, 1, 1], [], []>} : vector<8x128xbf16>, vector<128x384xbf16>, vector<8x384xf32> -> vector<8x384xf32>
      %31 = vector.broadcast %13 : vector<1x384xf32> to vector<8x384xf32>
      %32 = arith.addf %30, %31 : vector<8x384xf32>
      %33 = vector.extract_strided_slice %28 {offsets = [0, 0], sizes = [8, 128], strides = [1, 1]} : vector<8x384xf32> to vector<8x128xf32>
      %34 = vector.extract_strided_slice %32 {offsets = [0, 0], sizes = [8, 128], strides = [1, 1]} : vector<8x384xf32> to vector<8x128xf32>
      %35 = arith.addf %33, %34 : vector<8x128xf32>
      %36 = arith.negf %35 : vector<8x128xf32>
      %37 = math.exp %36 : vector<8x128xf32>
      %cst_24 = arith.constant 1.000000e+00 : f32
      %38 = vector.broadcast %cst_24 : f32 to vector<8x128xf32>
      %39 = arith.addf %38, %37 : vector<8x128xf32>
      %40 = arith.divf %38, %39 : vector<8x128xf32>
      %41 = vector.extract_strided_slice %28 {offsets = [0, 128], sizes = [8, 128], strides = [1, 1]} : vector<8x384xf32> to vector<8x128xf32>
      %42 = vector.extract_strided_slice %32 {offsets = [0, 128], sizes = [8, 128], strides = [1, 1]} : vector<8x384xf32> to vector<8x128xf32>
      %43 = arith.addf %41, %42 : vector<8x128xf32>
      %44 = arith.negf %43 : vector<8x128xf32>
      %45 = math.exp %44 : vector<8x128xf32>
      %cst_25 = arith.constant 1.000000e+00 : f32
      %46 = vector.broadcast %cst_25 : f32 to vector<8x128xf32>
      %47 = arith.addf %46, %45 : vector<8x128xf32>
      %48 = arith.divf %46, %47 : vector<8x128xf32>
      %49 = vector.extract_strided_slice %28 {offsets = [0, 256], sizes = [8, 128], strides = [1, 1]} : vector<8x384xf32> to vector<8x128xf32>
      %50 = vector.extract_strided_slice %32 {offsets = [0, 256], sizes = [8, 128], strides = [1, 1]} : vector<8x384xf32> to vector<8x128xf32>
      %51 = arith.mulf %40, %50 : vector<8x128xf32>
      %52 = arith.addf %49, %51 : vector<8x128xf32>
      %53 = math.tanh %52 : vector<8x128xf32>
      %cst_26 = arith.constant 1.000000e+00 : f32
      %54 = vector.broadcast %cst_26 : f32 to vector<8x128xf32>
      %55 = arith.subf %54, %48 : vector<8x128xf32>
      %56 = arith.mulf %55, %53 : vector<8x128xf32>
      %57 = arith.mulf %48, %arg11 : vector<8x128xf32>
      %58 = arith.addf %56, %57 : vector<8x128xf32>
      %c0_27 = arith.constant 0 : index
      %59 = arith.index_cast %26 : i32 to index
      %c0_28 = arith.constant 0 : index
      %60 = vector.load %arg7[%c0_27, %59, %c0_28] : memref<1x56x128xf32, #tpu.memory_space<vmem>>, vector<1x8x128xf32>
      %61 = vector.shape_cast %60 : vector<1x8x128xf32> to vector<8x128xf32>
      %62 = vector.shape_cast %58 : vector<8x128xf32> to vector<1x8x128xf32>
      tpu.vector_store %arg7[%c0_27, %59, %c0_28], %62 {strides = array<i32>} : memref<1x56x128xf32, #tpu.memory_space<vmem>>, vector<1x8x128xf32>,
      scf.yield %58 : vector<8x128xf32>
    }
    %c7_i32_18 = arith.constant 7 : i32
    %c0_19 = arith.constant 0 : index
    %c0_20 = arith.constant 0 : index
    %c0_21 = arith.constant 0 : index
    %18 = vector.load %arg8[%c0_19, %c0_20, %c0_21] : memref<1x8x128xf32, #tpu.memory_space<vmem>>, vector<1x8x128xf32>
    %19 = vector.shape_cast %18 : vector<1x8x128xf32> to vector<8x128xf32>
    %20 = vector.shape_cast %17 : vector<8x128xf32> to vector<1x8x128xf32>
    tpu.vector_store %arg8[%c0_19, %c0_20, %c0_21], %20 {strides = array<i32>} : memref<1x8x128xf32, #tpu.memory_space<vmem>>, vector<1x8x128xf32>,
    return
  }
  func.func @transform_0(%arg0: i32) -> (i32, i32) {
    %c0_i32 = arith.constant 0 : i32
    %c0_i32_0 = arith.constant 0 : i32
    %c0_i32_1 = arith.constant 0 : i32
    return %c0_i32, %c0_i32_0 : i32, i32
  }
  func.func @transform_1(%arg0: i32) -> (i32, i32, i32) {
    %c0_i32 = arith.constant 0 : i32
    %c0_i32_0 = arith.constant 0 : i32
    %c0_i32_1 = arith.constant 0 : i32
    return %arg0, %c0_i32, %c0_i32_0 : i32, i32, i32
  }
  func.func @transform_2(%arg0: i32) -> (i32, i32, i32) {
    %c0_i32 = arith.constant 0 : i32
    %c0_i32_0 = arith.constant 0 : i32
    %c0_i32_1 = arith.constant 0 : i32
    return %arg0, %c0_i32, %c0_i32_0 : i32, i32, i32
  }
  func.func @transform_3(%arg0: i32) -> (i32, i32, i32) {
    %c0_i32 = arith.constant 0 : i32
    %c0_i32_0 = arith.constant 0 : i32
    %c0_i32_1 = arith.constant 0 : i32
    return %arg0, %c0_i32, %c0_i32_0 : i32, i32, i32
  }
  func.func @transform_4(%arg0: i32) -> (i32, i32, i32) {
    %c0_i32 = arith.constant 0 : i32
    %c0_i32_0 = arith.constant 0 : i32
    %c0_i32_1 = arith.constant 0 : i32
    return %arg0, %c0_i32, %c0_i32_0 : i32, i32, i32
  }
  func.func @transform_5(%arg0: i32) -> (i32, i32, i32) {
    %c0_i32 = arith.constant 0 : i32
    %c0_i32_0 = arith.constant 0 : i32
    %c0_i32_1 = arith.constant 0 : i32
    return %arg0, %c0_i32, %c0_i32_0 : i32, i32, i32
  }
  func.func @transform_6(%arg0: i32) -> (i32, i32, i32) {
    %c0_i32 = arith.constant 0 : i32
    %c0_i32_0 = arith.constant 0 : i32
    %c0_i32_1 = arith.constant 0 : i32
    return %arg0, %c0_i32, %c0_i32_0 : i32, i32, i32
  }
  func.func @transform_7(%arg0: i32) -> (i32, i32, i32) {
    %c0_i32 = arith.constant 0 : i32
    %c0_i32_0 = arith.constant 0 : i32
    %c0_i32_1 = arith.constant 0 : i32
    return %arg0, %c0_i32, %c0_i32_0 : i32, i32, i32
  }
}

module attributes {stable_mosaic.version = 11 : i64} {
  func.func @kernel(%arg0: i32, %arg1: i32, %arg2: memref<56x128xf32, #tpu.memory_space<vmem>>, %arg3: memref<128x128xbf16, #tpu.memory_space<vmem>>, %arg4: memref<1x128xf32, #tpu.memory_space<vmem>>, %arg5: memref<128x256xbf16, #tpu.memory_space<vmem>>, %arg6: memref<1x256xf32, #tpu.memory_space<vmem>>, %arg7: memref<256x128xbf16, #tpu.memory_space<vmem>>, %arg8: memref<1x128xf32, #tpu.memory_space<vmem>>, %arg9: memref<56x128xf32, #tpu.memory_space<vmem>>, %arg10: memref<56x256xf32, #tpu.memory_space<vmem>>) attributes {dimension_semantics = [#tpu.dimension_semantics<parallel>, #tpu.dimension_semantics<arbitrary>], iteration_bounds = array<i64: 1, 1>, scalar_prefetch = 0 : i64, scratch_operands = 1 : i64, tpu.core_type = #tpu.core_type<tc>, window_params = [{transform_indices = @transform_0, window_bounds = array<i64: 56, 128>}, {pipeline_mode = #tpu.pipeline_mode<synchronous>, transform_indices = @transform_1, window_bounds = array<i64: 128, 128>}, {pipeline_mode = #tpu.pipeline_mode<synchronous>, transform_indices = @transform_2, window_bounds = array<i64: 1, 128>}, {pipeline_mode = #tpu.pipeline_mode<synchronous>, transform_indices = @transform_3, window_bounds = array<i64: 128, 256>}, {pipeline_mode = #tpu.pipeline_mode<synchronous>, transform_indices = @transform_4, window_bounds = array<i64: 1, 256>}, {transform_indices = @transform_5, window_bounds = array<i64: 256, 128>}, {transform_indices = @transform_6, window_bounds = array<i64: 1, 128>}, {transform_indices = @transform_7, window_bounds = array<i64: 56, 128>}]} {
    %c0_i32 = arith.constant 0 : i32
    %0 = arith.cmpi eq, %arg1, %c0_i32 : i32
    %1 = arith.extui %0 : i1 to i32
    %c0_i32_0 = arith.constant 0 : i32
    %2 = arith.cmpi ne, %1, %c0_i32_0 : i32
    scf.if %2 {
      %c0_8 = arith.constant 0 : index
      %c0_9 = arith.constant 0 : index
      %11 = vector.load %arg2[%c0_8, %c0_9] : memref<56x128xf32, #tpu.memory_space<vmem>>, vector<56x128xf32>
      %12 = arith.truncf %11 : vector<56x128xf32> to vector<56x128xbf16>
      %c0_10 = arith.constant 0 : index
      %c0_11 = arith.constant 0 : index
      %13 = vector.load %arg3[%c0_10, %c0_11] : memref<128x128xbf16, #tpu.memory_space<vmem>>, vector<128x128xbf16>
      %cst_12 = arith.constant dense<0.000000e+00> : vector<56x128xf32>
      %14 = tpu.matmul %12, %13, %cst_12 {dimension_numbers = #tpu.dot_dimension_numbers<[1], [0], [0], [1], [0, 0, 1, 1], [], []>} : vector<56x128xbf16>, vector<128x128xbf16>, vector<56x128xf32> -> vector<56x128xf32>
      %c0_13 = arith.constant 0 : index
      %c0_14 = arith.constant 0 : index
      %15 = vector.load %arg4[%c0_13, %c0_14] : memref<1x128xf32, #tpu.memory_space<vmem>>, vector<1x128xf32>
      %16 = vector.broadcast %15 : vector<1x128xf32> to vector<56x128xf32>
      %17 = arith.addf %14, %16 : vector<56x128xf32>
      %18 = arith.truncf %17 : vector<56x128xf32> to vector<56x128xbf16>
      %c0_15 = arith.constant 0 : index
      %c0_16 = arith.constant 0 : index
      %19 = vector.load %arg5[%c0_15, %c0_16] : memref<128x256xbf16, #tpu.memory_space<vmem>>, vector<128x256xbf16>
      %cst_17 = arith.constant dense<0.000000e+00> : vector<56x256xf32>
      %20 = tpu.matmul %18, %19, %cst_17 {dimension_numbers = #tpu.dot_dimension_numbers<[1], [0], [0], [1], [0, 0, 1, 1], [], []>} : vector<56x128xbf16>, vector<128x256xbf16>, vector<56x256xf32> -> vector<56x256xf32>
      %c0_18 = arith.constant 0 : index
      %c0_19 = arith.constant 0 : index
      %21 = vector.load %arg6[%c0_18, %c0_19] : memref<1x256xf32, #tpu.memory_space<vmem>>, vector<1x256xf32>
      %22 = vector.broadcast %21 : vector<1x256xf32> to vector<56x256xf32>
      %23 = arith.addf %20, %22 : vector<56x256xf32>
      %c0_20 = arith.constant 0 : index
      %c0_21 = arith.constant 0 : index
      %24 = vector.load %arg10[%c0_20, %c0_21] : memref<56x256xf32, #tpu.memory_space<vmem>>, vector<56x256xf32>
      tpu.vector_store %arg10[%c0_20, %c0_21], %23 {strides = array<i32>} : memref<56x256xf32, #tpu.memory_space<vmem>>, vector<56x256xf32>,
    } else {
    }
    %c0 = arith.constant 0 : index
    %c0_1 = arith.constant 0 : index
    %3 = vector.load %arg10[%c0, %c0_1] : memref<56x256xf32, #tpu.memory_space<vmem>>, vector<56x256xf32>
    %4 = arith.truncf %3 : vector<56x256xf32> to vector<56x256xbf16>
    %c0_2 = arith.constant 0 : index
    %c0_3 = arith.constant 0 : index
    %5 = vector.load %arg7[%c0_2, %c0_3] : memref<256x128xbf16, #tpu.memory_space<vmem>>, vector<256x128xbf16>
    %cst = arith.constant dense<0.000000e+00> : vector<56x128xf32>
    %6 = tpu.matmul %4, %5, %cst {dimension_numbers = #tpu.dot_dimension_numbers<[1], [0], [0], [1], [0, 0, 1, 1], [], []>} : vector<56x256xbf16>, vector<256x128xbf16>, vector<56x128xf32> -> vector<56x128xf32>
    %c0_4 = arith.constant 0 : index
    %c0_5 = arith.constant 0 : index
    %7 = vector.load %arg8[%c0_4, %c0_5] : memref<1x128xf32, #tpu.memory_space<vmem>>, vector<1x128xf32>
    %8 = vector.broadcast %7 : vector<1x128xf32> to vector<56x128xf32>
    %9 = arith.addf %6, %8 : vector<56x128xf32>
    %c0_6 = arith.constant 0 : index
    %c0_7 = arith.constant 0 : index
    %10 = vector.load %arg9[%c0_6, %c0_7] : memref<56x128xf32, #tpu.memory_space<vmem>>, vector<56x128xf32>
    tpu.vector_store %arg9[%c0_6, %c0_7], %9 {strides = array<i32>} : memref<56x128xf32, #tpu.memory_space<vmem>>, vector<56x128xf32>,
    return
  }
  func.func @transform_0(%arg0: i32, %arg1: i32) -> (i32, i32) {
    %c0_i32 = arith.constant 0 : i32
    %c0_i32_0 = arith.constant 0 : i32
    return %arg0, %c0_i32 : i32, i32
  }
  func.func @transform_1(%arg0: i32, %arg1: i32) -> (i32, i32) {
    %c0_i32 = arith.constant 0 : i32
    %c0_i32_0 = arith.constant 0 : i32
    %c0_i32_1 = arith.constant 0 : i32
    return %c0_i32, %c0_i32_0 : i32, i32
  }
  func.func @transform_2(%arg0: i32, %arg1: i32) -> (i32, i32) {
    %c0_i32 = arith.constant 0 : i32
    %c0_i32_0 = arith.constant 0 : i32
    %c0_i32_1 = arith.constant 0 : i32
    return %c0_i32, %c0_i32_0 : i32, i32
  }
  func.func @transform_3(%arg0: i32, %arg1: i32) -> (i32, i32) {
    %c0_i32 = arith.constant 0 : i32
    %c0_i32_0 = arith.constant 0 : i32
    %c0_i32_1 = arith.constant 0 : i32
    return %c0_i32, %c0_i32_0 : i32, i32
  }
  func.func @transform_4(%arg0: i32, %arg1: i32) -> (i32, i32) {
    %c0_i32 = arith.constant 0 : i32
    %c0_i32_0 = arith.constant 0 : i32
    %c0_i32_1 = arith.constant 0 : i32
    return %c0_i32, %c0_i32_0 : i32, i32
  }
  func.func @transform_5(%arg0: i32, %arg1: i32) -> (i32, i32) {
    %c0_i32 = arith.constant 0 : i32
    %c0_i32_0 = arith.constant 0 : i32
    return %c0_i32, %arg1 : i32, i32
  }
  func.func @transform_6(%arg0: i32, %arg1: i32) -> (i32, i32) {
    %c0_i32 = arith.constant 0 : i32
    %c0_i32_0 = arith.constant 0 : i32
    return %c0_i32, %arg1 : i32, i32
  }
  func.func @transform_7(%arg0: i32, %arg1: i32) -> (i32, i32) {
    %c0_i32 = arith.constant 0 : i32
    return %arg0, %arg1 : i32, i32
  }
}

</mosaic_0001>

<bundles_post_ra>
// kernel: _seq2seq_impl.7
= control target key start
LH: loop header
LB: loop body
LE: loop exit
PB: predicated region body
PF: predicated region fallthrough
CT: control target
= control target key end

     0   :  { %13 = vsyncpa [#allocation4], 0  ;;  %vm66_vm0 = vcmask 130048   ;;  %s1180_s0 = inlined_call_operand.vmem [shape: f32[56,16], index: 0, kind: input, shape index: {}]   ;;  %s1181_s1 = inlined_call_operand.vmem [shape: bf16[1,16,384], index: 1, kind: input, shape index: {}]   ;;  %s1182_s2 = inlined_call_operand.vmem [shape: bf16[1,128,384], index: 2, kind: input, shape index: {}]   ;;  %s1183_s3 = inlined_call_operand.vmem [shape: f32[1,1,384], index: 3, kind: input, shape index: {}]   ;;  %s1184_s4 = inlined_call_operand.vmem [shape: f32[1,1,384], index: 4, kind: input, shape index: {}]   ;;  %s1185_s5 = inlined_call_operand.vmem [shape: f32[1,8,128], index: 5, kind: input, shape index: {}]   ;;  %s1186_s6 = inlined_call_operand.vmem [shape: f32[1,56,128], index: 6, kind: output, shape index: {0}]   ;;  %s1187_s7 = inlined_call_operand.hbm [shape: f32[1,8,128], index: 7, kind: output, shape index: {1}]  }
   0x1   :  { %v499_v0 = vld [vmem:[%s1181_s1] sm:$0xf]  ;;  %v623_v1 = vld [vmem:[%s1181_s1 + $0x8] sm:$0xf0]  ;;  %v622_v3 = vld [vmem:[%s1181_s1 + $0x4] sm:$0xf] }
   0x2   :  { %v500_v2 = vor.u32 %v623_v1, %v499_v0  ;;  %v501_v4 = vld [vmem:[%s1181_s1 + $0xc] sm:$0xf0]  ;;  %v507_v5 = vld [vmem:[%s1181_s1 + $0x8] sm:$0xf]  ;;  %v624_v7 = vld [vmem:[%s1181_s1 + $0x10] sm:$0xf0] }
   0x3   :  { %v504_v6 = vor.u32 %v622_v3, %v501_v4  ;;  %v27_v8 = vld [vmem:[%s1180_s0] sm:$0xff]  ;;  %v28_v9 = vld [vmem:[%s1180_s0 + $0x8] sm:$0xff]  ;;  %v508_v10 = vor.u32 %v624_v7, %v507_v5  ;;  %v29_v12 = vld [vmem:[%s1180_s0 + $0x10] sm:$0xff] }
   0x4   :  { %86 = vmatpush.bf16.msra.mxu0 %v500_v2  ;;  %650 = vmatpush.bf16.msra.mxu3 %v500_v2  ;;  %v34_v11 = vpack.c.bf16 %v28_v9, %v27_v8  ;;  %v30_v13 = vld [vmem:[%s1180_s0 + $0x18] sm:$0xff]  ;;  %v31_v15 = vld [vmem:[%s1180_s0 + $0x20] sm:$0xff]  ;;  %v32_v16 = vld [vmem:[%s1180_s0 + $0x28] sm:$0xff] }
   0x5   :  { %651 = vmatpush.bf16.msra.mxu1 %v504_v6  ;;  %v35_v14 = vpack.c.bf16 %v30_v13, %v29_v12  ;;  %652 = vmatpush.bf16.msra.mxu2 %v508_v10  ;;  %v36_v17 = vpack.c.bf16 %v32_v16, %v31_v15  ;;  %v33_v18 = vld [vmem:[%s1180_s0 + $0x30] sm:$0xff]  ;;  %v42_v20 = vld [vmem:[%s1183_s3] sm:$0x7]  ;;  %v833_v40 = vld [vmem:[%s1182_s2 + $0x4] sm:$0xf] }
   0x6   :  { %v37_v19 = vpack.c.bf16 %v33_v18, %v33_v18  ;;  %v817_v21 = vperm.slane %v42_v20, 0  ;;  %v819_v22 = vperm.slane %v42_v20, 1  ;;  %v823_v27 = vperm.slane %v42_v20, 2  ;;  %v838_v41 = vld [vmem:[%s1182_s2] sm:$0xf] }
   0x7   :  { %509 = vmatmul.msk.bf16.vlgmr.msra.gmra.mxu0 %vm66_vm0, %v34_v11  ;;  %510 = vmatmul.msk.bf16.vlgmr.msra.gmra.mxu3 %vm66_vm0, %v35_v14  ;;  %v843_v42 = vld [vmem:[%s1182_s2 + $0x8] sm:$0xf]  ;;  %v850_v46 = vld [vmem:[%s1182_s2 + $0xc] sm:$0xf0]  ;;  %v855_v47 = vld [vmem:[%s1182_s2 + $0x8] sm:$0xf0] }
   0x8   :  { %114 = vmatpush.bf16.msrb.mxu0 %v504_v6  ;;  %514 = vmatmul.msk.bf16.vlgmr.msra.gmra.mxu1 %vm66_vm0, %v35_v14  ;;  %v860_v48 = vld [vmem:[%s1185_s5] sm:$0xff]   ;;  %v866_v50 = vld [vmem:[%s1182_s2 + $0x10] sm:$0xf0]  ;;  %v871_v51 = vld [vmem:[%s1182_s2 + $0x1c] sm:$0xf] }
   0x9   :  { %518 = vmatmul.msk.bf16.vlgmr.msra.gmra.mxu2 %vm66_vm0, %v35_v14  ;;  %v876_v52 = vld [vmem:[%s1182_s2 + $0x18] sm:$0xf]  ;;  %v881_v53 = vld [vmem:[%s1182_s2 + $0x20] sm:$0xf]  ;;  %v886_v54 = vld [vmem:[%s1182_s2 + $0x24] sm:$0xf0] }
   0xa   :  { %v891_v55 = vld [vmem:[%s1182_s2 + $0x20] sm:$0xf0]  ;;  %v896_v56 = vld [vmem:[%s1182_s2 + $0x28] sm:$0xf0]  ;;  %v901_v57 = vld [vmem:[%s1182_s2 + $0x34] sm:$0xf] }
   0xb   :  { %v906_v58 = vld [vmem:[%s1182_s2 + $0x30] sm:$0xf]  ;;  %v911_v60 = vld [vmem:[%s1182_s2 + $0x38] sm:$0xf]  ;;  %v916_v61 = vld [vmem:[%s1182_s2 + $0x3c] sm:$0xf0] }
   0xc   :  { %142 = vmatpush.bf16.msra.mxu0 %v508_v10  ;;  %v921_v62 = vld [vmem:[%s1182_s2 + $0x38] sm:$0xf0]  ;;  %v927_v0 = vld [vmem:[%s1182_s2 + $0x40] sm:$0xf0]  ;;  %v932_v1 = vld [vmem:[%s1182_s2 + $0x4c] sm:$0xf] }
   0xd   :  { %1188 = vst [vmem:[#allocation6_spill] sm:$0xff] %v927_v0  ;;  %v937_v2 = vld [vmem:[%s1182_s2 + $0x48] sm:$0xf]  ;;  %v942_v5 = vld [vmem:[%s1182_s2 + $0x50] sm:$0xf] }
   0xe   :  { %1189 = vst [vmem:[#allocation7_spill] sm:$0xff] %v932_v1  ;;  %v947_v6 = vld [vmem:[%s1182_s2 + $0x54] sm:$0xf0]  ;;  %v952_v7 = vld [vmem:[%s1182_s2 + $0x50] sm:$0xf0] }
   0xf   :  { %1190 = vst [vmem:[#allocation8_spill] sm:$0xff] %v937_v2  ;;  %v964_v12 = vld [vmem:[%s1182_s2 + $0x64] sm:$0xf]  ;;  %v970_v14 = vld [vmem:[%s1182_s2 + $0x60] sm:$0xf] }
  0x10   :  { %1191 = vst [vmem:[#allocation9_spill] sm:$0xff] %v942_v5  ;;  %v975_v15 = vld [vmem:[%s1182_s2 + $0x68] sm:$0xf]  ;;  %v980_v16 = vld [vmem:[%s1182_s2 + $0x6c] sm:$0xf0] }
  0x11   :  { %1192 = vst [vmem:[#allocation10_spill] sm:$0xff] %v947_v6  ;;  %v990_v18 = vld [vmem:[%s1182_s2 + $0x70] sm:$0xf0]  ;;  %v1000_v20 = vld [vmem:[%s1182_s2 + $0x78] sm:$0xf] }
  0x12   :  { %1193 = vst [vmem:[#allocation11_spill] sm:$0xff] %v952_v7 }
  0x17   :  { %511 = vmatmul.msk.bf16.gmra.mxu3 %vm66_vm0, %v36_v17  ;;  %513 = vmatmul.msk.bf16.vlgmr.msrb.gmra.mxu0 %vm66_vm0, %v34_v11 }
  0x18   :  { %515 = vmatmul.msk.bf16.gmra.mxu1 %vm66_vm0, %v36_v17 }
  0x19   :  { %519 = vmatmul.msk.bf16.gmra.mxu2 %vm66_vm0, %v36_v17  ;;  %v985_v17 = vld [vmem:[%s1182_s2 + $0x68] sm:$0xf0] }
  0x27   :  { %512 = vmatmul.msk.bf16.gmra.mxu3 %vm66_vm0, %v37_v19  ;;  %517 = vmatmul.msk.bf16.vlgmr.msra.gmra.mxu0 %vm66_vm0, %v34_v11  ;;  %v959_v11 = vld [vmem:[%s1182_s2 + $0x58] sm:$0xf0] }
  0x28   :  { %516 = vmatmul.msk.bf16.gmra.mxu1 %vm66_vm0, %v37_v19  ;;  %1194 = vst [vmem:[#allocation12_spill] sm:$0xff] %v959_v11 }
  0x29   :  { %520 = vmatmul.msk.bf16.gmra.mxu2 %vm66_vm0, %v37_v19  ;;  %v995_v19 = vld [vmem:[%s1182_s2 + $0x7c] sm:$0xf] }
  0x84   :  { %v88_v23 = vpop.f32.mrf.mxu0 }
  0x85   :  { %v89_v24 = vadd.f32 %v88_v23, %v817_v21  ;;  %v121_v25 = vpop.f32.mrf.mxu1  ;;  %v1005_v23 = vld [vmem:[%s1182_s2 + $0x80] sm:$0xf] }
  0x86   :  { %v122_v26 = vadd.f32 %v121_v25, %v819_v22 }
  0x87   :  { %163 = vst [vmem:[#allocation2] sm:$0xff] %v89_v24  ;;  %v1010_v24 = vld [vmem:[%s1182_s2 + $0x84] sm:$0xf0] }
  0x88   :  { %170 = vst [vmem:[#allocation2 + $0x38] sm:$0xff] %v122_v26  ;;  %v1015_v26 = vld [vmem:[%s1182_s2 + $0x80] sm:$0xf0] }
  0x8a   :  { %v93_v28 = vpop.f32.mrf.mxu3 }
  0x8b   :  { %v94_v29 = vadd.f32 %v93_v28, %v817_v21  ;;  %v1020_v28 = vld [vmem:[%s1182_s2 + $0x88] sm:$0xf0] }
  0x8c   :  { %v149_v30 = vpop.f32.mrf.mxu2  ;;  %v90_v31 = vpop.f32.mrf.mxu0 }
  0x8d   :  { %169 = vst [vmem:[#allocation2 + $0x30] sm:$0xff] %v94_v29  ;;  %v150_v32 = vadd.f32 %v149_v30, %v823_v27  ;;  %v91_v33 = vadd.f32 %v90_v31, %v817_v21  ;;  %v123_v34 = vpop.f32.mrf.mxu1  ;;  %v1025_v29 = vld [vmem:[%s1182_s2 + $0x94] sm:$0xf]  ;;  %v1031_v31 = vld [vmem:[%s1182_s2 + $0x90] sm:$0xf] }
  0x8e   :  { %v124_v35 = vadd.f32 %v123_v34, %v819_v22 }
  0x8f   :  { %171 = vst [vmem:[#allocation2 + $0x40] sm:$0xff] %v150_v32  ;;  %v1036_v32 = vld [vmem:[%s1182_s2 + $0x98] sm:$0xf] }
  0x90   :  { %166 = vst [vmem:[#allocation2 + $0x18] sm:$0xff] %v91_v33  ;;  %v1041_v33 = vld [vmem:[%s1182_s2 + $0x9c] sm:$0xf0] }
  0x91   :  { %173 = vst [vmem:[#allocation2 + $0x50] sm:$0xff] %v124_v35 }
  0x92   :  { %v95_v36 = vpop.f32.mrf.mxu3 }
  0x93   :  { %v96_v37 = vadd.f32 %v95_v36, %v817_v21  ;;  %v1046_v36 = vld [vmem:[%s1182_s2 + $0x98] sm:$0xf0] }
  0x94   :  { %v151_v38 = vpop.f32.mrf.mxu2  ;;  %v116_v39 = vpop.f32.mrf.mxu0 }
  0x95   :  { %172 = vst [vmem:[#allocation2 + $0x48] sm:$0xff] %v96_v37  ;;  %v152_v43 = vadd.f32 %v151_v38, %v823_v27  ;;  %v117_v44 = vadd.f32 %v116_v39, %v819_v22  ;;  %v126_v45 = vpop.f32.mrf.mxu1  ;;  %v1051_v37 = vld [vmem:[%s1182_s2 + $0xa0] sm:$0xf0]  ;;  %v1056_v38 = vld [vmem:[%s1182_s2 + $0xac] sm:$0xf] }
  0x96   :  { %v127_v49 = vadd.f32 %v126_v45, %v819_v22  ;;  %v1063_v45 = vld [vmem:[%s1182_s2 + $0xa8] sm:$0xf] }
  0x97   :  { %174 = vst [vmem:[#allocation2 + $0x58] sm:$0xff] %v152_v43 }
  0x98   :  { %164 = vst [vmem:[#allocation2 + $0x8] sm:$0xff] %v117_v44 }
  0x99   :  { %176 = vst [vmem:[#allocation2 + $0x68] sm:$0xff] %v127_v49  ;;  %v1068_v49 = vld [vmem:[%s1182_s2 + $0xb0] sm:$0xf] }
  0x9a   :  { %v98_v59 = vpop.f32.mrf.mxu3 }
  0x9b   :  { %v99_v63 = vadd.f32 %v98_v59, %v817_v21 }
  0x9c   :  { %v154_v3 = vpop.f32.mrf.mxu2  ;;  %v118_v4 = vpop.f32.mrf.mxu0 }
  0x9d   :  { %175 = vst [vmem:[#allocation2 + $0x60] sm:$0xff] %v99_v63  ;;  %v155_v8 = vadd.f32 %v154_v3, %v823_v27  ;;  %v119_v9 = vadd.f32 %v118_v4, %v819_v22  ;;  %v128_v10 = vpop.f32.mrf.mxu1  ;;  %v1074_v63 = vld [vmem:[%s1182_s2 + $0xb4] sm:$0xf0]  ;;  %v1079_v3 = vld [vmem:[%s1182_s2 + $0xb0] sm:$0xf0] }
  0x9e   :  { %v129_v13 = vadd.f32 %v128_v10, %v819_v22  ;;  %1195 = vst [vmem:[#allocation13_spill] sm:$0xff] %v1079_v3  ;;  %v1084_v4 = vld [vmem:[%s1182_s2 + $0xb8] sm:$0xf0]  ;;  %s1097_s2 = smov 0  }
  0x9f   :  { %177 = vst [vmem:[#allocation2 + $0x70] sm:$0xff] %v155_v8 }
  0xa0   :  { %167 = vst [vmem:[#allocation2 + $0x20] sm:$0xff] %v119_v9 }
  0xa1   :  { %179 = vst [vmem:[#allocation2 + $0x80] sm:$0xff] %v129_v13 }
  0xa2   :  { %v100_v25 = vpop.f32.mrf.mxu3  ;;  %1196 = vst [vmem:[#allocation14_spill] sm:$0xff] %v1084_v4 }
  0xa3   :  { %v101_v30 = vadd.f32 %v100_v25, %v817_v21 }
  0xa4   :  { %v156_v34 = vpop.f32.mrf.mxu2  ;;  %v144_v35 = vpop.f32.mrf.mxu0 }
  0xa5   :  { %178 = vst [vmem:[#allocation2 + $0x78] sm:$0xff] %v101_v30  ;;  %v157_v39 = vadd.f32 %v156_v34, %v823_v27  ;;  %v131_v43 = vpop.f32.mrf.mxu1  ;;  %v145_v44 = vadd.f32 %v144_v35, %v823_v27 }
  0xa6   :  { %v132_v59 = vadd.f32 %v131_v43, %v819_v22  ;;  %v1089_v22 = vld [vmem:[%s1184_s4] sm:$0x7] }
  0xa7   :  { %180 = vst [vmem:[#allocation2 + $0x88] sm:$0xff] %v157_v39 }
  0xa8   :  { %182 = vst [vmem:[#allocation2 + $0x98] sm:$0xff] %v132_v59 }
  0xa9   :  { %165 = vst [vmem:[#allocation2 + $0x10] sm:$0xff] %v145_v44 }
  0xaa   :  { %v103_v8 = vpop.f32.mrf.mxu3 }
  0xab   :  { %v104_v9 = vadd.f32 %v103_v8, %v817_v21 }
  0xac   :  { %v159_v10 = vpop.f32.mrf.mxu2  ;;  %v146_v13 = vpop.f32.mrf.mxu0 }
  0xad   :  { %181 = vst [vmem:[#allocation2 + $0x90] sm:$0xff] %v104_v9  ;;  %v160_v25 = vadd.f32 %v159_v10, %v823_v27  ;;  %v133_v30 = vpop.f32.mrf.mxu1  ;;  %v147_v34 = vadd.f32 %v146_v13, %v823_v27 }
  0xaf   :  { %183 = vst [vmem:[#allocation2 + $0xa0] sm:$0xff] %v160_v25 }
  0xb0   :  { %168 = vst [vmem:[#allocation2 + $0x28] sm:$0xff] %v147_v34 }
  0xb2   :  { %v105_v35 = vpop.f32.mrf.mxu3 }
  0xb4   :  { %v161_v39 = vpop.f32.mrf.mxu2 }
  0xb5 LB: > { %v1197_v3 = vld [vmem:[#allocation13_spill] sm:$0xff]  ;;  %v615_v27 = vor.u32 %v1056_v38, %v1074_v63  ;;  %v599_v43 = vor.u32 %v1046_v36, %v1031_v31  ;;  %v603_v44 = vor.u32 %v1025_v29, %v1041_v33  ;;  %v1198_v4 = vld [vmem:[#allocation14_spill] sm:$0xff]  ;;  %v607_v8 = vor.u32 %v1051_v37, %v1036_v32  ;;  %v1199_v2 = vld [vmem:[#allocation8_spill] sm:$0xff]  ;;  %s522_s4 = sshll.u32 %s720_s2, 3  ;;  %s223_s2 = sadd.s32 1, %s720_s2   ;;  %s720_s2 = sphi %s1097_s2, %s223_s2   ;;  %v716_v48 = vphi %v860_v48, %v1206_v48  }
  0xb6   : > { %v611_v21 = vor.u32 %v1197_v3, %v1063_v45  ;;  %v619_v59 = vor.u32 %v1198_v4, %v1068_v49  ;;  %v587_v9 = vor.u32 %v1015_v26, %v1000_v20  ;;  %v591_v10 = vor.u32 %v995_v19, %v1010_v24  ;;  %v1200_v7 = vld [vmem:[#allocation11_spill] sm:$0xff]  ;;  %v1201_v6 = vld [vmem:[#allocation10_spill] sm:$0xff]  ;;  %v1203_v5 = vld [vmem:[#allocation9_spill] sm:$0xff]  ;;  %s230_s1 = sshra.s32 %s522_s4, 3  ;;  %s460_s25 = scalar_lea.vmem %s1186_s6, %s522_s4 }
  0xb7   : > { %387 = vmatpush.bf16.msra.mxu1 %v615_v27  ;;  %v595_v13 = vor.u32 %v1020_v28, %v1005_v23  ;;  %v575_v25 = vor.u32 %v985_v17, %v970_v14  ;;  %v579_v30 = vor.u32 %v964_v12, %v980_v16  ;;  %v583_v34 = vor.u32 %v990_v18, %v975_v15  ;;  %v1202_v1 = vld [vmem:[#allocation7_spill] sm:$0xff]  ;;  %v1204_v11 = vld [vmem:[#allocation12_spill] sm:$0xff]  ;;  %v1205_v0 = vld [vmem:[#allocation6_spill] sm:$0xff]  ;;  %s649_s21 = smul.u32 24, %s230_s1  ;;  %p220_p0 = scmp.ge.s32.totalorder %s223_s2, 7  }
  0xb8   : > { %374 = vmatpush.bf16.msra.mxu0 %v611_v21  ;;  %400 = vmatpush.bf16.msra.mxu2 %v619_v59  ;;  %v563_v35 = vor.u32 %v1200_v7, %v1199_v2  ;;  %v567_v39 = vor.u32 %v1202_v1, %v1201_v6  ;;  %v571_v21 = vor.u32 %v1204_v11, %v1203_v5  ;;  %s472_s0 = sshll.u32 (%p220_p0), %s1187_s7, 4  ;;  %s722_s3 = smov (%p220_p0), [#allocation3]   ;;  %s473_s0 = int_to_ptr.hbm [resolvable:$true] %s472_s0 }
  0xb9   : > { %v551_v27 = vor.u32 %v921_v62, %v906_v58  ;;  %v539_v59 = vor.u32 %v891_v55, %v876_v52  ;;  %s1160_s22 = scalar_lea.vmem [#allocation2], %s649_s21  ;;  %s470_s28 = sshll.u32 (%p220_p0), %s722_s3, 4  ;;  %s471_s28 = int_to_ptr.vmem [resolvable:$true] %s470_s28 }
  0xbb   : > { %388 = vmatpush.bf16.msra.mxu1 %v603_v44  ;;  %v559_v44 = vor.u32 %v1205_v0, %v911_v60 }
  0xbc   : > { %375 = vmatpush.bf16.msra.mxu0 %v599_v43  ;;  %401 = vmatpush.bf16.msra.mxu2 %v607_v8  ;;  %v555_v43 = vor.u32 %v901_v57, %v916_v61  ;;  %v543_v8 = vor.u32 %v871_v51, %v886_v54 }
  0xbf   : > { %389 = vmatpush.bf16.msra.mxu1 %v591_v10  ;;  %v527_v10 = vor.u32 %v855_v47, %v838_v41 }
  0xc0   : > { %376 = vmatpush.bf16.msra.mxu0 %v587_v9  ;;  %402 = vmatpush.bf16.msra.mxu2 %v595_v13  ;;  %v547_v9 = vor.u32 %v896_v56, %v881_v53  ;;  %v531_v13 = vor.u32 %v833_v40, %v850_v46 }
  0xc3   : > { %390 = vmatpush.bf16.msra.mxu1 %v579_v30  ;;  %v238_v30 = vpack.c.bf16 %v716_v48, %v716_v48 }
  0xc4   : > { %377 = vmatpush.bf16.msra.mxu0 %v575_v25  ;;  %403 = vmatpush.bf16.msra.mxu2 %v583_v34  ;;  %v535_v25 = vor.u32 %v866_v50, %v843_v42  ;;  %v240_v34 = vperm.slane %v1089_v22, 0 }
  0xc7   : > { %391 = vmatpush.bf16.msra.mxu1 %v567_v39  ;;  %v235_v39 = vld [vmem:[%s1160_s22] sm:$0xff] }
  0xc8   : > { %378 = vmatpush.bf16.msra.mxu0 %v563_v35  ;;  %404 = vmatpush.bf16.msra.mxu2 %v571_v21  ;;  %v241_v35 = vperm.slane %v1089_v22, 1 }
  0xcb   : > { %392 = vmatpush.bf16.msra.mxu1 %v555_v43 }
  0xcc   : > { %379 = vmatpush.bf16.msra.mxu0 %v551_v27  ;;  %405 = vmatpush.bf16.msra.mxu2 %v559_v44  ;;  %v236_v27 = vld [vmem:[%s1160_s22 + $0x8] sm:$0xff] }
  0xcf   : > { %393 = vmatpush.bf16.msra.mxu1 %v543_v8 }
  0xd0   : > { %380 = vmatpush.bf16.msra.mxu0 %v539_v59  ;;  %406 = vmatpush.bf16.msra.mxu2 %v547_v9 }
  0xd3   : > { %394 = vmatpush.bf16.msra.mxu1 %v531_v13 }
  0xd4   : > { %381 = vmatpush.bf16.msra.mxu0 %v527_v10  ;;  %407 = vmatpush.bf16.msra.mxu2 %v535_v25 }
  0xd6   : > { %395 = vmatmul.bf16.vlgmr.msra.gmra.mxu1 %v238_v30 }
  0xd7   : > { %382 = vmatmul.bf16.vlgmr.msra.gmra.mxu0 %v238_v30  ;;  %408 = vmatmul.bf16.vlgmr.msra.gmra.mxu2 %v238_v30 }
 0x153   : > { %v396_v43 = vpop.f32.mrf.mxu1 }
 0x154   : > { %v383_v21 = vpop.f32.mrf.mxu0  ;;  %v397_v59 = vadd.f32 %v396_v43, %v241_v35 }
 0x155   : > { %v384_v44 = vadd.f32 %v383_v21, %v240_v34 }
 0x156   : > { %v433_v9 = vadd.f32 %v397_v59, %v236_v27 }
 0x157   : > { %v413_v8 = vadd.f32 %v384_v44, %v235_v39  ;;  %v242_v39 = vperm.slane %v1089_v22, 2 }
 0x158   : > { %v621_v13 = vmul.f32 -1.442695, %v433_v9 }
 0x159   : > { %v620_v10 = vmul.f32 -1.442695, %v413_v8 }
 0x15a   : > { %v409_v0 = vpop.f32.mrf.mxu2 }
 0x15b   : > { %670 = vpow2.f32 %v620_v10  ;;  %v398_v30 = vpop.f32.mrf.mxu1  ;;  %v410_v9 = vadd.f32 %v409_v0, %v242_v39  ;;  %v237_v10 = vld [vmem:[%s1160_s22 + $0x10] sm:$0xff] }
 0x15c   : > { %672 = vpow2.f32 %v621_v13  ;;  %v385_v25 = vpop.f32.mrf.mxu0 }
 0x161   : > { %v671_v1 = vpop.eup %670 }
 0x162   : > { %v673_v2 = vpop.eup %672  ;;  %v417_v3 = vadd.f32 1.0, %v671_v1  ;;  %v411_v5 = vpop.f32.mrf.mxu2 }
 0x163   : > { %v437_v4 = vadd.f32 1.0, %v673_v2 }
 0x164   : > { %674 = vrcp.f32 %v417_v3  ;;  %v429_v43 = vand.u32 2147483648, %v417_v3  ;;  %v427_v59 = vand.u32 2147483647, %v417_v3  ;;  %vm423_vm2 = vweird.f32 %v417_v3 }
 0x165   : > { %676 = vrcp.f32 %v437_v4  ;;  %vm443_vm5 = vweird.f32 %v437_v4  ;;  %v449_v30 = vand.u32 2147483648, %v437_v4 }
 0x166   : > { %v430_v2 = vor.u32 1.1754944e-38, %v429_v43  ;;  %vm428_vm4 = vcmp.eq.f32.partialorder %v427_v59, 8.507059e+37 }
 0x16a   : > { %v675_v6 = vpop.eup %674 }
 0x16b   : > { %v677_v7 = vpop.eup %676  ;;  %v419_v34 = vmul.f32 %v675_v6, %v417_v3  ;;  %vm424_vm1 = vweird.f32 %v675_v6 }
 0x16c   : > { %v439_v35 = vmul.f32 %v677_v7, %v437_v4  ;;  %vm425_vm3 = vmor %vm423_vm2, %vm424_vm1  ;;  %vm444_vm6 = vweird.f32 %v677_v7 }
 0x16d   : > { %v420_v21 = vsub.f32 1.0, %v419_v34  ;;  %vm445_vm7 = vmor %vm443_vm5, %vm444_vm6 }
 0x16e   : > { %v440_v27 = vsub.f32 1.0, %v439_v35  ;;  %v447_v35 = vand.u32 2147483647, %v437_v4 }
 0x16f   : > { %v421_v44 = vmul.f32 %v675_v6, %v420_v21 }
 0x170   : > { %v441_v8 = vmul.f32 %v677_v7, %v440_v27  ;;  %v450_v27 = vor.u32 1.1754944e-38, %v449_v30  ;;  %vm448_vm8 = vcmp.eq.f32.partialorder %v447_v35, 8.507059e+37 }
 0x171   : > { %v422_v1 = vadd.f32 %v675_v6, %v421_v44 }
 0x172   : > { %v442_v25 = vadd.f32 %v677_v7, %v441_v8 }
 0x173   : > { %v426_v5 = vsel %vm425_vm3, %v675_v6, %v422_v1 }
 0x174   : > { %v431_v13 = vsel %vm428_vm4, %v430_v2, %v426_v5  ;;  %v446_v11 = vsel %vm445_vm7, %v677_v7, %v442_v25 }
 0x175   : > { %v453_v34 = vmul.f32 %v431_v13, %v410_v9  ;;  %v451_v0 = vsel %vm448_vm8, %v450_v27, %v446_v11 }
 0x176   : > { %v456_v3 = vsub.f32 1.0, %v451_v0  ;;  %v458_v43 = vmul.f32 %v716_v48, %v451_v0 }
 0x177   : > { %v454_v21 = vadd.f32 %v453_v34, %v237_v10 }
 0x179   : > { %678 = vtanh.f32 %v454_v21 }
 0x17f   : > { %v679_v39 = vpop.eup %678 }
 0x180   : > { %v457_v6 = vmul.f32 %v679_v39, %v456_v3  ;;  %222 = sbr.rel (!%p220_p0) target bundleno = 181 (0xb5), region = 61 }
 0x182   : > { %v459_v44 = vadd.f32 %v458_v43, %v457_v6  }
 0x184   : > { %461 = vst [vmem:[%s460_s25] sm:$0xff] %v459_v44  ;;  %v1206_v48 = vmov %v459_v44 }
 0x185   :  { %462 = vst [vmem:[#allocation3] sm:$0xff] %v459_v44 }
 0x186   :  { %475 = dma.vmem_to_hbm [thread:$0]  %s471_s28, 128, %s473_s0, [#allocation4]  }
 0x187   :  { %712 = dma.done.wait [#allocation4], 128  }
 0x188   :  { %713 = vsyncadd [#allocation4], 4294967168 }
 0x189   :  { %482 = vsyncpa [#allocation4], 1 }

// kernel: _seq2seq_impl.5
= control target key start
LH: loop header
LB: loop body
LE: loop exit
PB: predicated region body
PF: predicated region fallthrough
CT: control target
= control target key end

     0   :  { %s1887_s0 = inlined_call_operand.vmem [shape: f32[64,16], index: 0, kind: input, shape index: {}]   ;;  %s1888_s1 = inlined_call_operand.hbm [shape: bf16[2,16,384], index: 1, kind: input, shape index: {}]   ;;  %s1889_s2 = inlined_call_operand.hbm [shape: bf16[2,128,384], index: 2, kind: input, shape index: {}]   ;;  %s1890_s3 = inlined_call_operand.vmem [shape: f32[2,1,384], index: 3, kind: input, shape index: {}]   ;;  %s1891_s4 = inlined_call_operand.vmem [shape: f32[2,1,384], index: 4, kind: input, shape index: {}]   ;;  %s1892_s5 = inlined_call_operand.vmem [shape: f32[2,8,128], index: 5, kind: input, shape index: {}]   ;;  %s1893_s6 = inlined_call_operand.vmem [shape: f32[2,64,128], index: 6, kind: output, shape index: {0}]   ;;  %s1894_s7 = inlined_call_operand.vmem [shape: f32[2,8,128], index: 7, kind: output, shape index: {1}]  }
   0x1   :  { %1897 = sst [smem:[#allocation18_spill]] %s1888_s1 }
   0x2   :  { %13 = vsyncpa [#allocation4], 0 }
   0x3   :  { %15 = vsyncpa [#allocation4 + $0x1], 0 }
   0x4   :  { %16 = vsyncpa [#allocation6], 0 }
   0x5   :  { %18 = vsyncpa [#allocation6 + $0x1], 0  ;;  %s1425_s24 = smov 0   ;;  %s1427_s25 = smov 0  }
   0x6   :  { %s1429_s26 = smov 0   ;;  %s1431_s27 = smov 0  }
   0x7 LB: > { %s1444_s28 = sadd.s32 4294967295, %s1373_s27   ;;  %s1447_s29 = sadd.s32 1, %s1373_s27   ;;  %s1373_s27 = sphi %s1431_s27, %s1925_s27   ;;  %s1369_s26 = sphi %s1429_s26, %s1924_s26   ;;  %s1365_s25 = sphi %s1427_s25, %s1923_s25   ;;  %s1361_s24 = sphi %s1425_s24, %s1922_s24  }
   0x8   : > { %s49_s30 = ssub.s32 %s1373_s27, %s1447_s29  ;;  %s52_s8 = sadd.s32 1, %s1369_s26 }
   0x9   : > { %p50_p0 = scmp.eq.s32.totalorder %s49_s30, 0  ;;  %p59_p1 = scmp.ne.s32.totalorder %s1369_s26, %s1365_s25 }
   0xa   : > { %p60_p2 = scmp.eq.s32.totalorder %s1373_s27, 0  ;;  %p65_p3 = scmp.ne.s32.totalorder %s1365_s25, %s1361_s24 }
   0xb   : > { %s1457_s9 = scalar_select %p50_p0, %s1369_s26, %s52_s8  }
   0xc   : > { %p61_p4 = por %p60_p2, %p59_p1  ;;  %p66_p5 = scmp.eq.s32.totalorder %s1444_s28, 0 }
   0xd   : > { %p1206_p6 = scmp.lt.s32.totalorder %s1373_s27, 2  ;;  %s1466_s11 = sand.u32 1, %s1369_s26  }
   0xe   : > { %p1461_p7 = por %p66_p5, %p65_p3  ;;  %s1188_s12 = smul.u32 24, %s1466_s11 }
   0xf   : > { %s1189_s13 = smul.u32 24, %s1373_s27  ;;  %p1470_p8 = pnand %p1206_p6, %p61_p4 }
  0x10   : > { %s1900_s1 = sld [smem:[#allocation18_spill]]  ;;  %s252_s18 = scalar_lea.vmem [#allocation3], %s1188_s12 }
  0x11   : > { %s260_s19 = sshll.u32 %s252_s18, 4  ;;  %p1024_p9 = scmp.ge.s32.totalorder %s1373_s27, 1  ;;  %s261_s19 = int_to_ptr.vmem [resolvable:$true] %s260_s19 }
  0x12   : > { %s249_s21 = scalar_lea.sflag [#allocation4], %s1466_s11  ;;  %p1271_p11 = pneg %p1470_p8 }
  0x16   : > { %s257_s17 = scalar_lea.hbm %s1900_s1, %s1189_s13  ;;  %s1274_s8 = scalar_lea.hbm %s1900_s1, 48 }
  0x17   : > { %s258_s20 = sshll.u32 %s257_s17, 4  ;;  %s259_s20 = int_to_ptr.hbm [resolvable:$true] %s258_s20 }
  0x18   : > { %s1267_s22 = sshra.s32 %s259_s20, 4  ;;  %s1268_s22 = int_to_ptr.hbm [resolvable:$true] %s1267_s22 }
  0x19   : > { %s1269_s23 = scalar_lea.hbm %s1268_s22, 24  ;;  %p1275_p0 = scmp.lt.s32.totalorder %s1268_s22, %s1900_s1 }
  0x1a   : > { %p1270_p10 = scmp.ne.s32.totalorder %s1268_s22, %s1269_s23  ;;  %p1276_p1 = scmp.lt.s32.totalorder %s1274_s8, %s1269_s23 }
  0x1c   : > { %p1272_p12 = pnand %p1271_p11, %p1270_p10  ;;  %p1277_p2 = por %p1276_p1, %p1275_p0 }
  0x1e   : > { %p1273_p13 = pneg %p1272_p12 }
  0x20   : > { %p1278_p3 = pnand %p1277_p2, %p1273_p13 }
  0x22   : > { %1281 = shalt.err (!%p1278_p3)
}
  0x23   : > { %s1895_s15 = smov 192   ;;  %s1384_s16 = smov 12  }
  0x24   : > { %1202 = dma.hbm_to_vmem [thread:$0]  (!%p1470_p8), %s259_s20, 384, %s261_s19, %s249_s21, %s1895_s15, %s1895_s15, %s1384_s16  }
  0x25   : > { %p311_p4 = scmp.lt.s32.totalorder %s1373_s27, 3  ;;  %s1190_s17 = smul.u32 192, %s1466_s11 }
  0x26   : > { %s1191_s22 = smul.u32 192, %s1373_s27  ;;  %s271_s1 = scalar_lea.sflag [#allocation6], %s1466_s11 }
  0x27   : > { %p1499_p5 = pnand %p1024_p9, %p311_p4  ;;  %s274_s8 = scalar_lea.vmem [#allocation5], %s1190_s17 }
  0x28   : > { %s279_s30 = scalar_lea.hbm %s1889_s2, %s1191_s22  ;;  %s282_s12 = sshll.u32 %s274_s8, 4  ;;  %s283_s12 = int_to_ptr.vmem [resolvable:$true] %s282_s12 }
  0x29   : > { %s280_s13 = sshll.u32 %s279_s30, 4  ;;  %s1304_s15 = scalar_lea.hbm %s1889_s2, 384  ;;  %s281_s13 = int_to_ptr.hbm [resolvable:$true] %s280_s13 }
  0x2a   : > { %s1297_s19 = sshra.s32 %s281_s13, 4  ;;  %s1298_s19 = int_to_ptr.hbm [resolvable:$true] %s1297_s19 }
  0x2b   : > { %s1299_s20 = scalar_lea.hbm %s1298_s19, 192  ;;  %p1305_p12 = scmp.lt.s32.totalorder %s1298_s19, %s1889_s2 }
  0x2c   : > { %p1300_p6 = scmp.ne.s32.totalorder %s1298_s19, %s1299_s20  ;;  %p1306_p13 = scmp.lt.s32.totalorder %s1304_s15, %s1299_s20 }
  0x2e   : > { %p1302_p9 = pnand %p1300_p6, %p1271_p11  ;;  %p1307_p0 = por %p1306_p13, %p1305_p12 }
  0x30   : > { %p1303_p10 = pneg %p1302_p9 }
  0x32   : > { %p1308_p1 = pnand %p1307_p0, %p1303_p10 }
  0x34   : > { %1311 = shalt.err (!%p1308_p1)
}
  0x35   : > { %s1902_s11 = smov 192   ;;  %315 = sbr.rel (%p1499_p5) target bundleno = 478 (0x1de), region = 44 }
  0x36   : > { %1205 = dma.hbm_to_vmem [thread:$0]  (!%p1470_p8), %s281_s13, 3072, %s283_s12, %s271_s1, %s1902_s11, %s1902_s11, %s1384_s16  }
  0x3a   : > { %s317_s17 = sand.u32 1, %s1365_s25  }
  0x3b   : > { %s1192_s24 = smul.u32 24, %s317_s17  ;;  %s318_s30 = scalar_lea.sflag [#allocation4], %s317_s17 }
  0x3d   : > { %s1525_s8 = scalar_lea.vmem [#allocation3], %s1192_s24 }
  0x3e   : > { %1352 = dma.done.wait (%p1461_p7), %s318_s30, 384  }
  0x3f   : > { %1354 = vsyncadd (%p1461_p7), %s318_s30, 4294966912  ;;  %s1193_s14 = smul.u32 192, %s317_s17  ;;  %s328_s15 = scalar_lea.sflag [#allocation6], %s317_s17 }
  0x41   : > { %s1531_s19 = scalar_lea.vmem [#allocation5], %s1193_s14 }
  0x42   : > { %1356 = dma.done.wait (%p1461_p7), %s328_s15, 3072  }
  0x43   : > { %1358 = vsyncadd (%p1461_p7), %s328_s15, 4294964224  ;;  %p384_p8 = scmp.lt.s32.totalorder %s1444_s28, 1  ;;  %v1544_v0 = vld [vmem:[%s1531_s19 + $0x4] sm:$0xf]  ;;  %v1547_v1 = vld [vmem:[%s1531_s19] sm:$0xf] }
  0x44   : > { %1903 = vst [vmem:[#allocation9_spill] sm:$0xff] %v1544_v0  ;;  %v1550_v2 = vld [vmem:[%s1531_s19 + $0x8] sm:$0xf]  ;;  %v1565_v3 = vld [vmem:[%s1531_s19 + $0xc] sm:$0xf0]  ;;  %v407_v58 = vld [vmem:[%s1887_s0 + $0x8] sm:$0xff] }
  0x45   : > { %s1539_s1 = scalar_select %p384_p8, %s1444_s28, 1  ;;  %1904 = vst [vmem:[#allocation10_spill] sm:$0xff] %v1547_v1  ;;  %v1568_v4 = vld [vmem:[%s1531_s19 + $0x8] sm:$0xf0]  ;;  %v1571_v5 = vld [vmem:[%s1531_s19 + $0x10] sm:$0xf0] }
  0x46   : > { %1905 = vst [vmem:[#allocation11_spill] sm:$0xff] %v1550_v2  ;;  %v1574_v6 = vld [vmem:[%s1531_s19 + $0x1c] sm:$0xf]  ;;  %v1577_v7 = vld [vmem:[%s1531_s19 + $0x18] sm:$0xf]  ;;  %v406_v57 = vld [vmem:[%s1887_s0] sm:$0xff] }
  0x47   : > { %s1025_s10 = sshll.u32 %s1539_s1, 3  ;;  %s1156_s16 = sshll.u32 %s1539_s1, 6  ;;  %1906 = vst [vmem:[#allocation12_spill] sm:$0xff] %v1565_v3  ;;  %v1580_v8 = vld [vmem:[%s1531_s19 + $0x20] sm:$0xf]  ;;  %v414_v60 = vpack.c.bf16 %v407_v58, %v406_v57  ;;  %vm446_vm0 = vcmask 130048  }
  0x48   : > { %s1555_s13 = scalar_lea.vmem %s1893_s6, %s1156_s16  ;;  %s1562_s27 = scalar_lea.vmem %s1894_s7, %s1025_s10  ;;  %1907 = vst [vmem:[#allocation13_spill] sm:$0xff] %v1568_v4  ;;  %v1583_v9 = vld [vmem:[%s1531_s19 + $0x24] sm:$0xf0]  ;;  %v1586_v10 = vld [vmem:[%s1531_s19 + $0x20] sm:$0xf0]  ;;  %v410_v63 = vld [vmem:[%s1887_s0 + $0x20] sm:$0xff] }
  0x49   : > { %1908 = vst [vmem:[#allocation14_spill] sm:$0xff] %v1571_v5  ;;  %v1589_v11 = vld [vmem:[%s1531_s19 + $0x28] sm:$0xf0]  ;;  %v1592_v12 = vld [vmem:[%s1531_s19 + $0x34] sm:$0xf]  ;;  %v408_v59 = vld [vmem:[%s1887_s0 + $0x10] sm:$0xff] }
  0x4a   : > { %1909 = vst [vmem:[#allocation15_spill] sm:$0xff] %v1574_v6  ;;  %v1595_v13 = vld [vmem:[%s1531_s19 + $0x30] sm:$0xf]  ;;  %v1598_v14 = vld [vmem:[%s1531_s19 + $0x38] sm:$0xf]  ;;  %v409_v61 = vld [vmem:[%s1887_s0 + $0x18] sm:$0xff] }
  0x4b   : > { %1910 = vst [vmem:[#allocation16_spill] sm:$0xff] %v1577_v7  ;;  %v1601_v15 = vld [vmem:[%s1531_s19 + $0x3c] sm:$0xf0]  ;;  %v1604_v16 = vld [vmem:[%s1531_s19 + $0x38] sm:$0xf0]  ;;  %v415_v62 = vpack.c.bf16 %v409_v61, %v408_v59  ;;  %s1194_s22 = smul.u32 3, %s1539_s1 }
  0x4c   : > { %v1607_v17 = vld [vmem:[%s1531_s19 + $0x40] sm:$0xf0]  ;;  %v1610_v18 = vld [vmem:[%s1531_s19 + $0x4c] sm:$0xf]  ;;  %v1613_v19 = vld [vmem:[%s1531_s19 + $0x48] sm:$0xf] }
  0x4d   : > { %v1616_v20 = vld [vmem:[%s1531_s19 + $0x50] sm:$0xf]  ;;  %v1619_v21 = vld [vmem:[%s1531_s19 + $0x54] sm:$0xf0]  ;;  %v1622_v22 = vld [vmem:[%s1531_s19 + $0x50] sm:$0xf0]  ;;  %s391_s24 = scalar_lea.vmem %s1891_s4, %s1194_s22  ;;  %s387_s16 = scalar_lea.vmem %s1890_s3, %s1194_s22 }
  0x4e   : > { %v1625_v23 = vld [vmem:[%s1531_s19 + $0x58] sm:$0xf0]  ;;  %v1628_v24 = vld [vmem:[%s1531_s19 + $0x64] sm:$0xf]  ;;  %v1631_v25 = vld [vmem:[%s1531_s19 + $0x60] sm:$0xf] }
  0x4f   : > { %v1634_v26 = vld [vmem:[%s1531_s19 + $0x68] sm:$0xf]  ;;  %v1637_v27 = vld [vmem:[%s1531_s19 + $0x6c] sm:$0xf0]  ;;  %v1640_v28 = vld [vmem:[%s1531_s19 + $0x68] sm:$0xf0] }
  0x50   : > { %v1643_v29 = vld [vmem:[%s1531_s19 + $0x70] sm:$0xf0]  ;;  %v1646_v30 = vld [vmem:[%s1531_s19 + $0x7c] sm:$0xf]  ;;  %v1649_v31 = vld [vmem:[%s1531_s19 + $0x78] sm:$0xf] }
  0x51   : > { %v1652_v32 = vld [vmem:[%s1531_s19 + $0x80] sm:$0xf]  ;;  %v1655_v33 = vld [vmem:[%s1531_s19 + $0x84] sm:$0xf0]  ;;  %v1658_v34 = vld [vmem:[%s1531_s19 + $0x80] sm:$0xf0] }
  0x52   : > { %v1661_v35 = vld [vmem:[%s1531_s19 + $0x88] sm:$0xf0]  ;;  %v1664_v36 = vld [vmem:[%s1531_s19 + $0x94] sm:$0xf]  ;;  %v1667_v37 = vld [vmem:[%s1531_s19 + $0x90] sm:$0xf] }
  0x53   : > { %v1670_v38 = vld [vmem:[%s1531_s19 + $0x98] sm:$0xf]  ;;  %v1673_v39 = vld [vmem:[%s1531_s19 + $0x9c] sm:$0xf0]  ;;  %v1676_v40 = vld [vmem:[%s1531_s19 + $0x98] sm:$0xf0] }
  0x54   : > { %v1679_v41 = vld [vmem:[%s1531_s19 + $0xa0] sm:$0xf0]  ;;  %v1682_v42 = vld [vmem:[%s1531_s19 + $0xac] sm:$0xf]  ;;  %v1685_v43 = vld [vmem:[%s1531_s19 + $0xa8] sm:$0xf] }
  0x55   : > { %v1688_v44 = vld [vmem:[%s1531_s19 + $0xb0] sm:$0xf]  ;;  %v1691_v45 = vld [vmem:[%s1531_s19 + $0xb4] sm:$0xf0]  ;;  %v1694_v46 = vld [vmem:[%s1531_s19 + $0xb0] sm:$0xf0] }
  0x56   : > { %v1697_v47 = vld [vmem:[%s1531_s19 + $0xb8] sm:$0xf0]  ;;  %v1031_v48 = vld [vmem:[%s1525_s8] sm:$0xf]  ;;  %v1157_v50 = vld [vmem:[%s1525_s8 + $0x4] sm:$0xf] }
  0x57   : > { %v1158_v49 = vld [vmem:[%s1525_s8 + $0x8] sm:$0xf0]  ;;  %v1033_v52 = vld [vmem:[%s1525_s8 + $0xc] sm:$0xf0]  ;;  %v1039_v53 = vld [vmem:[%s1525_s8 + $0x8] sm:$0xf] }
  0x58   : > { %v1032_v51 = vor.u32 %v1158_v49, %v1031_v48  ;;  %v1159_v54 = vld [vmem:[%s1525_s8 + $0x10] sm:$0xf0]  ;;  %v1036_v55 = vor.u32 %v1157_v50, %v1033_v52  ;;  %s395_s8 = scalar_lea.vmem %s1892_s5, %s1025_s10  ;;  %s1790_s1 = smov 0  }
  0x59   : > { %v1040_v56 = vor.u32 %v1159_v54, %v1039_v53  ;;  %v411_v48 = vld [vmem:[%s1887_s0 + $0x28] sm:$0xff]  ;;  %v412_v50 = vld [vmem:[%s1887_s0 + $0x30] sm:$0xff]  ;;  %v1750_v53 = vld [vmem:[%s391_s24] sm:$0x7] }
  0x5a   : > { %466 = vmatpush.bf16.msra.mxu0 %v1032_v51  ;;  %1185 = vmatpush.bf16.msra.mxu3 %v1032_v51  ;;  %v416_v49 = vpack.c.bf16 %v411_v48, %v410_v63  ;;  %v413_v51 = vld [vmem:[%s1887_s0 + $0x38] sm:$0xff]  ;;  %1911 = vst [vmem:[#allocation17_spill] sm:$0xff] %v1750_v53  ;;  %v1752_v54 = vld [vmem:[%s395_s8] sm:$0xff]  }
  0x5b   : > { %1186 = vmatpush.bf16.msra.mxu1 %v1036_v55  ;;  %1187 = vmatpush.bf16.msra.mxu2 %v1040_v56  ;;  %v417_v52 = vpack.c.bf16 %v413_v51, %v412_v50 }
  0x5d   : > { %1041 = vmatmul.msk.bf16.vlgmr.msra.gmra.mxu0 %vm446_vm0, %v414_v60  ;;  %1042 = vmatmul.msk.bf16.vlgmr.msra.gmra.mxu3 %vm446_vm0, %v415_v62 }
  0x5e   : > { %495 = vmatpush.bf16.msrb.mxu0 %v1036_v55  ;;  %1046 = vmatmul.msk.bf16.vlgmr.msra.gmra.mxu1 %vm446_vm0, %v415_v62  ;;  %v422_v55 = vld [vmem:[%s387_s16] sm:$0x7] }
  0x5f   : > { %1050 = vmatmul.msk.bf16.vlgmr.msra.gmra.mxu2 %vm446_vm0, %v415_v62  ;;  %v1759_v57 = vperm.slane %v422_v55, 1  ;;  %v1763_v62 = vperm.slane %v422_v55, 2 }
  0x62   : > { %524 = vmatpush.bf16.msra.mxu0 %v1040_v56  ;;  %v1757_v56 = vperm.slane %v422_v55, 0 }
  0x6d   : > { %1043 = vmatmul.msk.bf16.gmra.mxu3 %vm446_vm0, %v416_v49  ;;  %1045 = vmatmul.msk.bf16.vlgmr.msrb.gmra.mxu0 %vm446_vm0, %v414_v60 }
  0x6e   : > { %1047 = vmatmul.msk.bf16.gmra.mxu1 %vm446_vm0, %v416_v49 }
  0x6f   : > { %1051 = vmatmul.msk.bf16.gmra.mxu2 %vm446_vm0, %v416_v49 }
  0x7d   : > { %1044 = vmatmul.msk.bf16.gmra.mxu3 %vm446_vm0, %v417_v52  ;;  %1049 = vmatmul.msk.bf16.vlgmr.msra.gmra.mxu0 %vm446_vm0, %v414_v60 }
  0x7e   : > { %1048 = vmatmul.msk.bf16.gmra.mxu1 %vm446_vm0, %v417_v52 }
  0x7f   : > { %1052 = vmatmul.msk.bf16.gmra.mxu2 %vm446_vm0, %v417_v52 }
  0xda   : > { %v468_v58 = vpop.f32.mrf.mxu0 }
  0xdb   : > { %v469_v59 = vadd.f32 %v468_v58, %v1757_v56  ;;  %v502_v60 = vpop.f32.mrf.mxu1 }
  0xdc   : > { %v503_v61 = vadd.f32 %v502_v60, %v1759_v57 }
  0xdd   : > { %546 = vst [vmem:[#allocation2] sm:$0xff] %v469_v59 }
  0xde   : > { %553 = vst [vmem:[#allocation2 + $0x38] sm:$0xff] %v503_v61 }
  0xe0   : > { %v473_v63 = vpop.f32.mrf.mxu3 }
  0xe1   : > { %v474_v48 = vadd.f32 %v473_v63, %v1757_v56 }
  0xe2   : > { %v531_v49 = vpop.f32.mrf.mxu2  ;;  %v470_v51 = vpop.f32.mrf.mxu0 }
  0xe3   : > { %v532_v50 = vadd.f32 %v531_v49, %v1763_v62  ;;  %552 = vst [vmem:[#allocation2 + $0x30] sm:$0xff] %v474_v48  ;;  %v471_v52 = vadd.f32 %v470_v51, %v1757_v56  ;;  %v504_v53 = vpop.f32.mrf.mxu1 }
  0xe4   : > { %v505_v58 = vadd.f32 %v504_v53, %v1759_v57 }
  0xe5   : > { %554 = vst [vmem:[#allocation2 + $0x40] sm:$0xff] %v532_v50 }
  0xe6   : > { %549 = vst [vmem:[#allocation2 + $0x18] sm:$0xff] %v471_v52 }
  0xe7   : > { %556 = vst [vmem:[#allocation2 + $0x50] sm:$0xff] %v505_v58 }
  0xe8   : > { %v475_v59 = vpop.f32.mrf.mxu3 }
  0xe9   : > { %v476_v55 = vadd.f32 %v475_v59, %v1757_v56 }
  0xea   : > { %v533_v60 = vpop.f32.mrf.mxu2  ;;  %v497_v63 = vpop.f32.mrf.mxu0 }
  0xeb   : > { %v534_v61 = vadd.f32 %v533_v60, %v1763_v62  ;;  %555 = vst [vmem:[#allocation2 + $0x48] sm:$0xff] %v476_v55  ;;  %v498_v49 = vadd.f32 %v497_v63, %v1759_v57  ;;  %v507_v5 = vpop.f32.mrf.mxu1 }
  0xec   : > { %v508_v48 = vadd.f32 %v507_v5, %v1759_v57 }
  0xed   : > { %557 = vst [vmem:[#allocation2 + $0x58] sm:$0xff] %v534_v61 }
  0xee   : > { %547 = vst [vmem:[#allocation2 + $0x8] sm:$0xff] %v498_v49 }
  0xef   : > { %559 = vst [vmem:[#allocation2 + $0x68] sm:$0xff] %v508_v48 }
  0xf0   : > { %v478_v50 = vpop.f32.mrf.mxu3 }
  0xf1   : > { %v479_v53 = vadd.f32 %v478_v50, %v1757_v56 }
  0xf2   : > { %v536_v51 = vpop.f32.mrf.mxu2  ;;  %v499_v58 = vpop.f32.mrf.mxu0 }
  0xf3   : > { %v537_v52 = vadd.f32 %v536_v51, %v1763_v62  ;;  %558 = vst [vmem:[#allocation2 + $0x60] sm:$0xff] %v479_v53  ;;  %v500_v59 = vadd.f32 %v499_v58, %v1759_v57  ;;  %v509_v60 = vpop.f32.mrf.mxu1 }
  0xf4   : > { %v510_v55 = vadd.f32 %v509_v60, %v1759_v57 }
  0xf5   : > { %560 = vst [vmem:[#allocation2 + $0x70] sm:$0xff] %v537_v52 }
  0xf6   : > { %550 = vst [vmem:[#allocation2 + $0x20] sm:$0xff] %v500_v59 }
  0xf7   : > { %562 = vst [vmem:[#allocation2 + $0x80] sm:$0xff] %v510_v55 }
  0xf8   : > { %v480_v61 = vpop.f32.mrf.mxu3 }
  0xf9   : > { %v481_v5 = vadd.f32 %v480_v61, %v1757_v56 }
  0xfa   : > { %v538_v63 = vpop.f32.mrf.mxu2  ;;  %v526_v48 = vpop.f32.mrf.mxu0 }
  0xfb   : > { %v539_v49 = vadd.f32 %v538_v63, %v1763_v62  ;;  %561 = vst [vmem:[#allocation2 + $0x78] sm:$0xff] %v481_v5  ;;  %v512_v50 = vpop.f32.mrf.mxu1  ;;  %v527_v51 = vadd.f32 %v526_v48, %v1763_v62 }
  0xfc   : > { %v513_v53 = vadd.f32 %v512_v50, %v1759_v57 }
  0xfd   : > { %563 = vst [vmem:[#allocation2 + $0x88] sm:$0xff] %v539_v49 }
  0xfe   : > { %548 = vst [vmem:[#allocation2 + $0x10] sm:$0xff] %v527_v51 }
  0xff   : > { %565 = vst [vmem:[#allocation2 + $0x98] sm:$0xff] %v513_v53 }
 0x100   : > { %v483_v52 = vpop.f32.mrf.mxu3 }
 0x101   : > { %v484_v58 = vadd.f32 %v483_v52, %v1757_v56 }
 0x102   : > { %v541_v59 = vpop.f32.mrf.mxu2  ;;  %v528_v55 = vpop.f32.mrf.mxu0 }
 0x103   : > { %v542_v60 = vadd.f32 %v541_v59, %v1763_v62  ;;  %564 = vst [vmem:[#allocation2 + $0x90] sm:$0xff] %v484_v58  ;;  %v514_v61 = vpop.f32.mrf.mxu1  ;;  %v529_v63 = vadd.f32 %v528_v55, %v1763_v62 }
 0x104   : > { %v515_v5 = vadd.f32 %v514_v61, %v1759_v57 }
 0x105   : > { %566 = vst [vmem:[#allocation2 + $0xa0] sm:$0xff] %v542_v60 }
 0x106   : > { %551 = vst [vmem:[#allocation2 + $0x28] sm:$0xff] %v529_v63 }
 0x107   : > { %568 = vst [vmem:[#allocation2 + $0xb0] sm:$0xff] %v515_v5 }
 0x108   : > { %v485_v49 = vpop.f32.mrf.mxu3 }
 0x109   : > { %v486_v48 = vadd.f32 %v485_v49, %v1757_v56 }
 0x10a   : > { %v543_v50 = vpop.f32.mrf.mxu2 }
 0x10b   : > { %v544_v51 = vadd.f32 %v543_v50, %v1763_v62  ;;  %567 = vst [vmem:[#allocation2 + $0xa8] sm:$0xff] %v486_v48 }
 0x10d   : > { %569 = vst [vmem:[#allocation2 + $0xb8] sm:$0xff] %v544_v51 }
 0x10e LB: >> { %v1143_v56 = vor.u32 %v1694_v46, %v1685_v43  ;;  %v1147_v57 = vor.u32 %v1682_v42, %v1691_v45  ;;  %v1131_v62 = vor.u32 %v1676_v40, %v1667_v37  ;;  %v1135_v53 = vor.u32 %v1664_v36, %v1673_v39  ;;  %v1912_v7 = vld [vmem:[#allocation16_spill] sm:$0xff]  ;;  %v1913_v6 = vld [vmem:[#allocation15_spill] sm:$0xff]  ;;  %v1914_v1 = vld [vmem:[#allocation10_spill] sm:$0xff]  ;;  %s1053_s10 = sshll.u32 %s1381_s1, 1  ;;  %s1381_s1 = sphi %s1790_s1, %s609_s1   ;;  %v1377_v54 = vphi %v1752_v54, %v1921_v54  }
 0x10f   : >> { %v1151_v52 = vor.u32 %v1697_v47, %v1688_v44  ;;  %v1139_v58 = vor.u32 %v1679_v41, %v1670_v38  ;;  %v1119_v59 = vor.u32 %v1658_v34, %v1649_v31  ;;  %v1123_v60 = vor.u32 %v1646_v30, %v1655_v33  ;;  %v1915_v4 = vld [vmem:[#allocation13_spill] sm:$0xff]  ;;  %v1916_v3 = vld [vmem:[#allocation12_spill] sm:$0xff]  ;;  %v1918_v2 = vld [vmem:[#allocation11_spill] sm:$0xff]  ;;  %s612_s18 = ssub.s32 7, %s1053_s10 }
 0x110   : >> { %760 = vmatpush.bf16.msra.mxu0 %v1143_v56  ;;  %773 = vmatpush.bf16.msra.mxu1 %v1147_v57  ;;  %v1127_v55 = vor.u32 %v1661_v35, %v1652_v32  ;;  %v1107_v61 = vor.u32 %v1640_v28, %v1631_v25  ;;  %v1111_v63 = vor.u32 %v1628_v24, %v1637_v27  ;;  %v1917_v0 = vld [vmem:[#allocation9_spill] sm:$0xff]  ;;  %s613_s12 = smul.u32 %s1444_s28, %s612_s18 }
 0x111   : >> { %786 = vmatpush.bf16.msra.mxu2 %v1151_v52  ;;  %v1115_v5 = vor.u32 %v1643_v29, %v1634_v26  ;;  %v1095_v49 = vor.u32 %v1622_v22, %v1613_v19  ;;  %v1099_v48 = vor.u32 %v1610_v18, %v1619_v21  ;;  %v1103_v50 = vor.u32 %v1625_v23, %v1616_v20 }
 0x112   : >> { %v1083_v51 = vor.u32 %v1604_v16, %v1595_v13  ;;  %v1087_v56 = vor.u32 %v1592_v12, %v1601_v15  ;;  %v1091_v57 = vor.u32 %v1607_v17, %v1598_v14  ;;  %v1079_v52 = vor.u32 %v1589_v11, %v1580_v8  ;;  %s1851_s20 = sadd.s32 %s1381_s1, %s613_s12  ;;  %s609_s1 = sadd.s32 1, %s1381_s1  }
 0x113   : >> { %s1054_s21 = sshll.u32 %s1851_s20, 3  ;;  %p606_p7 = scmp.ge.s32.totalorder %s609_s1, 8  }
 0x114   : >> { %761 = vmatpush.bf16.msra.mxu0 %v1131_v62  ;;  %774 = vmatpush.bf16.msra.mxu1 %v1135_v53  ;;  %v1071_v62 = vor.u32 %v1586_v10, %v1912_v7  ;;  %v1075_v53 = vor.u32 %v1913_v6, %v1583_v9  ;;  %s616_s23 = sshra.s32 %s1054_s21, 3  ;;  %s846_s17 = scalar_lea.vmem %s1555_s13, %s1054_s21 }
 0x115   : >> { %787 = vmatpush.bf16.msra.mxu2 %v1139_v58  ;;  %v1059_v58 = vor.u32 %v1915_v4, %v1914_v1  ;;  %s1184_s22 = smul.u32 24, %s616_s23 }
 0x117   : >> { %s1858_s11 = scalar_lea.vmem [#allocation2], %s1184_s22 }
 0x118   : >> { %762 = vmatpush.bf16.msra.mxu0 %v1119_v59  ;;  %775 = vmatpush.bf16.msra.mxu1 %v1123_v60  ;;  %v1063_v59 = vor.u32 %v1917_v0, %v1916_v3  ;;  %v1919_v60 = vld [vmem:[#allocation14_spill] sm:$0xff] }
 0x119   : >> { %788 = vmatpush.bf16.msra.mxu2 %v1127_v55  ;;  %v1067_v55 = vor.u32 %v1919_v60, %v1918_v2 }
 0x11c   : >> { %763 = vmatpush.bf16.msra.mxu0 %v1107_v61  ;;  %776 = vmatpush.bf16.msra.mxu1 %v1111_v63  ;;  %v624_v61 = vpack.c.bf16 %v1377_v54, %v1377_v54  ;;  %v1920_v63 = vld [vmem:[#allocation17_spill] sm:$0xff] }
 0x11d   : >> { %789 = vmatpush.bf16.msra.mxu2 %v1115_v5  ;;  %v626_v5 = vperm.slane %v1920_v63, 0 }
 0x120   : >> { %764 = vmatpush.bf16.msra.mxu0 %v1095_v49  ;;  %777 = vmatpush.bf16.msra.mxu1 %v1099_v48  ;;  %v627_v49 = vperm.slane %v1920_v63, 1  ;;  %v621_v48 = vld [vmem:[%s1858_s11] sm:$0xff] }
 0x121   : >> { %790 = vmatpush.bf16.msra.mxu2 %v1103_v50 }
 0x124   : >> { %765 = vmatpush.bf16.msra.mxu0 %v1083_v51  ;;  %778 = vmatpush.bf16.msra.mxu1 %v1087_v56  ;;  %v622_v51 = vld [vmem:[%s1858_s11 + $0x8] sm:$0xff] }
 0x125   : >> { %791 = vmatpush.bf16.msra.mxu2 %v1091_v57 }
 0x128   : >> { %766 = vmatpush.bf16.msra.mxu0 %v1071_v62  ;;  %779 = vmatpush.bf16.msra.mxu1 %v1075_v53 }
 0x129   : >> { %792 = vmatpush.bf16.msra.mxu2 %v1079_v52 }
 0x12c   : >> { %767 = vmatpush.bf16.msra.mxu0 %v1059_v58  ;;  %780 = vmatpush.bf16.msra.mxu1 %v1063_v59 }
 0x12d   : >> { %793 = vmatpush.bf16.msra.mxu2 %v1067_v55 }
 0x12f   : >> { %768 = vmatmul.bf16.vlgmr.msra.gmra.mxu0 %v624_v61  ;;  %781 = vmatmul.bf16.vlgmr.msra.gmra.mxu1 %v624_v61 }
 0x130   : >> { %794 = vmatmul.bf16.vlgmr.msra.gmra.mxu2 %v624_v61 }
 0x1ac   : >> { %v769_v50 = vpop.f32.mrf.mxu0  ;;  %v782_v56 = vpop.f32.mrf.mxu1 }
 0x1ad   : >> { %v770_v57 = vadd.f32 %v769_v50, %v626_v5  ;;  %v783_v62 = vadd.f32 %v782_v56, %v627_v49 }
 0x1af   : >> { %v799_v53 = vadd.f32 %v770_v57, %v621_v48  ;;  %v819_v52 = vadd.f32 %v783_v62, %v622_v51  ;;  %v628_v48 = vperm.slane %v1920_v63, 2 }
 0x1b1   : >> { %v1152_v58 = vmul.f32 -1.442695, %v799_v53  ;;  %v1153_v59 = vmul.f32 -1.442695, %v819_v52 }
 0x1b3   : >> { %1257 = vpow2.f32 %v1152_v58  ;;  %v795_v61 = vpop.f32.mrf.mxu2  ;;  %v623_v58 = vld [vmem:[%s1858_s11 + $0x10] sm:$0xff] }
 0x1b4   : >> { %1259 = vpow2.f32 %v1153_v59  ;;  %v771_v60 = vpop.f32.mrf.mxu0  ;;  %v784_v55 = vpop.f32.mrf.mxu1  ;;  %v796_v52 = vadd.f32 %v795_v61, %v628_v48 }
 0x1b9   : >> { %v1258_v0 = vpop.eup %1257 }
 0x1ba   : >> { %v1260_v1 = vpop.eup %1259  ;;  %v803_v2 = vadd.f32 1.0, %v1258_v0 }
 0x1bb   : >> { %v823_v3 = vadd.f32 1.0, %v1260_v1  ;;  %v797_v4 = vpop.f32.mrf.mxu2 }
 0x1bc   : >> { %1261 = vrcp.f32 %v803_v2  ;;  %v815_v56 = vand.u32 2147483648, %v803_v2  ;;  %v813_v62 = vand.u32 2147483647, %v803_v2  ;;  %vm809_vm2 = vweird.f32 %v803_v2 }
 0x1bd   : >> { %1263 = vrcp.f32 %v823_v3  ;;  %vm829_vm5 = vweird.f32 %v823_v3  ;;  %v835_v55 = vand.u32 2147483648, %v823_v3 }
 0x1be   : >> { %v816_v1 = vor.u32 1.1754944e-38, %v815_v56  ;;  %vm814_vm4 = vcmp.eq.f32.partialorder %v813_v62, 8.507059e+37 }
 0x1bf   : >> { %v836_v61 = vor.u32 1.1754944e-38, %v835_v55 }
 0x1c2   : >> { %v1262_v6 = vpop.eup %1261 }
 0x1c3   : >> { %v1264_v7 = vpop.eup %1263  ;;  %v805_v5 = vmul.f32 %v1262_v6, %v803_v2  ;;  %vm810_vm1 = vweird.f32 %v1262_v6 }
 0x1c4   : >> { %v825_v49 = vmul.f32 %v1264_v7, %v823_v3  ;;  %vm811_vm3 = vmor %vm809_vm2, %vm810_vm1  ;;  %vm830_vm6 = vweird.f32 %v1264_v7 }
 0x1c5   : >> { %v806_v50 = vsub.f32 1.0, %v805_v5  ;;  %vm831_vm7 = vmor %vm829_vm5, %vm830_vm6 }
 0x1c6   : >> { %v826_v51 = vsub.f32 1.0, %v825_v49  ;;  %v833_v49 = vand.u32 2147483647, %v823_v3 }
 0x1c7   : >> { %v807_v57 = vmul.f32 %v1262_v6, %v806_v50 }
 0x1c8   : >> { %v827_v53 = vmul.f32 %v1264_v7, %v826_v51  ;;  %vm834_vm8 = vcmp.eq.f32.partialorder %v833_v49, 8.507059e+37 }
 0x1c9   : >> { %v808_v0 = vadd.f32 %v1262_v6, %v807_v57 }
 0x1ca   : >> { %v828_v60 = vadd.f32 %v1264_v7, %v827_v53 }
 0x1cb   : >> { %v812_v4 = vsel %vm811_vm3, %v1262_v6, %v808_v0 }
 0x1cc   : >> { %v817_v59 = vsel %vm814_vm4, %v816_v1, %v812_v4  ;;  %v832_v51 = vsel %vm831_vm7, %v1264_v7, %v828_v60 }
 0x1cd   : >> { %v839_v5 = vmul.f32 %v817_v59, %v796_v52  ;;  %v837_v2 = vsel %vm834_vm8, %v836_v61, %v832_v51 }
 0x1ce   : >> { %v842_v48 = vsub.f32 1.0, %v837_v2  ;;  %v844_v57 = vmul.f32 %v1377_v54, %v837_v2 }
 0x1cf   : >> { %v840_v50 = vadd.f32 %v839_v5, %v623_v58 }
 0x1d1   : >> { %1265 = vtanh.f32 %v840_v50 }
 0x1d7   : >> { %v1266_v6 = vpop.eup %1265 }
 0x1d8   : >> { %v843_v56 = vmul.f32 %v1266_v6, %v842_v48  ;;  %608 = sbr.rel (!%p606_p7) target bundleno = 270 (0x10e), region = 127 }
 0x1da   : >> { %v845_v62 = vadd.f32 %v844_v57, %v843_v56  }
 0x1dc   : >> { %847 = vst [vmem:[%s846_s17] sm:$0xff] %v845_v62  ;;  %v1921_v54 = vmov %v845_v62 }
 0x1dd   : > { %848 = vst [vmem:[%s1562_s27] sm:$0xff] %v845_v62 }
 0x1de PF: > { %p21_p11 = scmp.ge.s32.totalorder %s1447_s29, 4   ;;  %s1922_s24 = smov %s1365_s25 }
 0x1df   : > { %s1923_s25 = smov %s1369_s26  ;;  %s1924_s26 = smov %s1457_s9 }
 0x1e0   : > { %s1925_s27 = smov %s1447_s29  ;;  %23 = sbr.rel (!%p21_p11) target bundleno = 7 (0x7), region = 138 }
 0x1e5   :  { %884 = vsyncpa [#allocation4], 1 }
 0x1e6   :  { %886 = vsyncpa [#allocation4 + $0x1], 1 }
 0x1e7   :  { %887 = vsyncpa [#allocation6], 1 }
 0x1e8   :  { %889 = vsyncpa [#allocation6 + $0x1], 1 }

// kernel: _seq2seq_impl.8
= control target key start
LH: loop header
LB: loop body
LE: loop exit
PB: predicated region body
PF: predicated region fallthrough
CT: control target
= control target key end

     0   :  { %13 = vsyncpa [#allocation4], 0  ;;  %s1399_s0 = inlined_call_operand.vmem [shape: f32[56,128], index: 0, kind: input, shape index: {}]   ;;  %s1400_s1 = inlined_call_operand.vmem [shape: bf16[1,128,384], index: 1, kind: input, shape index: {}]   ;;  %s1401_s2 = inlined_call_operand.hbm [shape: bf16[1,128,384], index: 2, kind: input, shape index: {}]   ;;  %s1402_s3 = inlined_call_operand.vmem [shape: f32[1,1,384], index: 3, kind: input, shape index: {}]   ;;  %s1403_s4 = inlined_call_operand.vmem [shape: f32[1,1,384], index: 4, kind: input, shape index: {}]   ;;  %s1404_s5 = inlined_call_operand.vmem [shape: f32[1,8,128], index: 5, kind: input, shape index: {}]   ;;  %s1405_s6 = inlined_call_operand.vmem [shape: f32[1,56,128], index: 6, kind: output, shape index: {0}]   ;;  %s1406_s7 = inlined_call_operand.hbm [shape: f32[1,8,128], index: 7, kind: output, shape index: {1}]  }
   0x1   :  { %14 = vsyncpa [#allocation5], 0  ;;  %s23_s26 = sshll.u32 %s1401_s2, 4  ;;  %s992_s27 = smov [#allocation3]   ;;  %s24_s26 = int_to_ptr.hbm [resolvable:$true] %s23_s26 }
   0x2   :  { %s25_s28 = sshll.u32 %s992_s27, 4  ;;  %s993_s29 = smov 192   ;;  %s26_s28 = int_to_ptr.vmem [resolvable:$true] %s25_s28 }
   0x3   :  { %s994_s30 = smov 12  }
   0x4   :  { %31 = dma.hbm_to_vmem [thread:$0]  %s24_s26, 3072, %s26_s28, [#allocation4], %s993_s29, %s993_s29, %s994_s30  }
   0x5   :  { %980 = dma.done.wait [#allocation4], 3072  }
   0x6   :  { %981 = vsyncadd [#allocation4], 4294964224  ;;  %v1039_v0 = vld [vmem:[#allocation3 + $0x4] sm:$0xf]  ;;  %v1041_v1 = vld [vmem:[#allocation3] sm:$0xf] }
   0x7   :  { %1408 = vst [vmem:[#allocation9_spill] sm:$0xff] %v1039_v0  ;;  %v1043_v2 = vld [vmem:[#allocation3 + $0x8] sm:$0xf]  ;;  %v1045_v3 = vld [vmem:[#allocation3 + $0xc] sm:$0xf0]  ;;  %v1143_v49 = vld [vmem:[%s1404_s5] sm:$0xff]  }
   0x8   :  { %1409 = vst [vmem:[#allocation10_spill] sm:$0xff] %v1041_v1  ;;  %v1047_v4 = vld [vmem:[#allocation3 + $0x8] sm:$0xf0]  ;;  %v1049_v5 = vld [vmem:[#allocation3 + $0x10] sm:$0xf0] }
   0x9   :  { %1410 = vst [vmem:[#allocation11_spill] sm:$0xff] %v1043_v2  ;;  %v1051_v6 = vld [vmem:[#allocation3 + $0x1c] sm:$0xf]  ;;  %v1053_v7 = vld [vmem:[#allocation3 + $0x18] sm:$0xf] }
   0xa   :  { %1411 = vst [vmem:[#allocation12_spill] sm:$0xff] %v1045_v3  ;;  %v1055_v8 = vld [vmem:[#allocation3 + $0x20] sm:$0xf]  ;;  %v1057_v9 = vld [vmem:[#allocation3 + $0x24] sm:$0xf0] }
   0xb   :  { %1412 = vst [vmem:[#allocation13_spill] sm:$0xff] %v1047_v4  ;;  %v1059_v10 = vld [vmem:[#allocation3 + $0x20] sm:$0xf0]  ;;  %v1061_v11 = vld [vmem:[#allocation3 + $0x28] sm:$0xf0] }
   0xc   :  { %1413 = vst [vmem:[#allocation14_spill] sm:$0xff] %v1049_v5  ;;  %v1063_v12 = vld [vmem:[#allocation3 + $0x34] sm:$0xf]  ;;  %v1065_v13 = vld [vmem:[#allocation3 + $0x30] sm:$0xf] }
   0xd   :  { %1414 = vst [vmem:[#allocation15_spill] sm:$0xff] %v1051_v6  ;;  %v1067_v14 = vld [vmem:[#allocation3 + $0x38] sm:$0xf]  ;;  %v1069_v15 = vld [vmem:[#allocation3 + $0x3c] sm:$0xf0] }
   0xe   :  { %1415 = vst [vmem:[#allocation16_spill] sm:$0xff] %v1053_v7  ;;  %v1071_v16 = vld [vmem:[#allocation3 + $0x38] sm:$0xf0]  ;;  %v1073_v17 = vld [vmem:[#allocation3 + $0x40] sm:$0xf0] }
   0xf   :  { %1416 = vst [vmem:[#allocation17_spill] sm:$0xff] %v1055_v8  ;;  %v1075_v18 = vld [vmem:[#allocation3 + $0x4c] sm:$0xf]  ;;  %v1077_v19 = vld [vmem:[#allocation3 + $0x48] sm:$0xf] }
  0x10   :  { %v1079_v20 = vld [vmem:[#allocation3 + $0x50] sm:$0xf]  ;;  %v1081_v21 = vld [vmem:[#allocation3 + $0x54] sm:$0xf0]  ;;  %v1083_v22 = vld [vmem:[#allocation3 + $0x50] sm:$0xf0] }
  0x11   :  { %v1085_v23 = vld [vmem:[#allocation3 + $0x58] sm:$0xf0]  ;;  %v1087_v24 = vld [vmem:[#allocation3 + $0x64] sm:$0xf]  ;;  %v1089_v25 = vld [vmem:[#allocation3 + $0x60] sm:$0xf] }
  0x12   :  { %v1091_v26 = vld [vmem:[#allocation3 + $0x68] sm:$0xf]  ;;  %v1093_v27 = vld [vmem:[#allocation3 + $0x6c] sm:$0xf0]  ;;  %v1095_v28 = vld [vmem:[#allocation3 + $0x68] sm:$0xf0] }
  0x13   :  { %v1097_v29 = vld [vmem:[#allocation3 + $0x70] sm:$0xf0]  ;;  %v1099_v30 = vld [vmem:[#allocation3 + $0x7c] sm:$0xf]  ;;  %v1101_v31 = vld [vmem:[#allocation3 + $0x78] sm:$0xf] }
  0x14   :  { %v1103_v32 = vld [vmem:[#allocation3 + $0x80] sm:$0xf]  ;;  %v1105_v33 = vld [vmem:[#allocation3 + $0x84] sm:$0xf0]  ;;  %v1107_v34 = vld [vmem:[#allocation3 + $0x80] sm:$0xf0] }
  0x15   :  { %v1109_v35 = vld [vmem:[#allocation3 + $0x88] sm:$0xf0]  ;;  %v1111_v36 = vld [vmem:[#allocation3 + $0x94] sm:$0xf]  ;;  %v1113_v37 = vld [vmem:[#allocation3 + $0x90] sm:$0xf] }
  0x16   :  { %v1115_v38 = vld [vmem:[#allocation3 + $0x98] sm:$0xf]  ;;  %v1117_v39 = vld [vmem:[#allocation3 + $0x9c] sm:$0xf0]  ;;  %v1119_v40 = vld [vmem:[#allocation3 + $0x98] sm:$0xf0] }
  0x17   :  { %v1121_v41 = vld [vmem:[#allocation3 + $0xa0] sm:$0xf0]  ;;  %v1123_v42 = vld [vmem:[#allocation3 + $0xac] sm:$0xf]  ;;  %v1125_v43 = vld [vmem:[#allocation3 + $0xa8] sm:$0xf] }
  0x18   :  { %v1127_v44 = vld [vmem:[#allocation3 + $0xb0] sm:$0xf]  ;;  %v1129_v45 = vld [vmem:[#allocation3 + $0xb4] sm:$0xf0]  ;;  %v1131_v46 = vld [vmem:[#allocation3 + $0xb0] sm:$0xf0] }
  0x19   :  { %v1133_v47 = vld [vmem:[#allocation3 + $0xb8] sm:$0xf0]  ;;  %v1138_v48 = vld [vmem:[%s1403_s4] sm:$0x7]  ;;  %v858_v50 = vld [vmem:[%s1400_s1 + $0xac] sm:$0xf] }
  0x1a   :  { %1417 = vst [vmem:[#allocation18_spill] sm:$0xff] %v1138_v48  ;;  %v728_v51 = vld [vmem:[%s1400_s1 + $0xb4] sm:$0xf0]  ;;  %v734_v52 = vld [vmem:[%s1400_s1 + $0xb0] sm:$0xf] }
  0x1b   :  { %v860_v53 = vld [vmem:[%s1400_s1 + $0xb8] sm:$0xf0]  ;;  %v731_v54 = vor.u32 %v858_v50, %v728_v51  ;;  %v855_v56 = vld [vmem:[%s1400_s1 + $0x94] sm:$0xf]  ;;  %v716_v57 = vld [vmem:[%s1400_s1 + $0x9c] sm:$0xf0] }
  0x1c   :  { %v735_v55 = vor.u32 %v860_v53, %v734_v52  ;;  %v722_v58 = vld [vmem:[%s1400_s1 + $0x98] sm:$0xf]  ;;  %v857_v59 = vld [vmem:[%s1400_s1 + $0xa0] sm:$0xf0]  ;;  %v726_v60 = vld [vmem:[%s1400_s1 + $0xa8] sm:$0xf]  ;;  %v719_v62 = vor.u32 %v855_v56, %v716_v57 }
  0x1d   :  { %v859_v61 = vld [vmem:[%s1400_s1 + $0xb0] sm:$0xf0]  ;;  %249 = vmatpush.bf16.msra.mxu1 %v731_v54  ;;  %v723_v63 = vor.u32 %v857_v59, %v722_v58  ;;  %v852_v51 = vld [vmem:[%s1400_s1 + $0x7c] sm:$0xf]  ;;  %v704_v52 = vld [vmem:[%s1400_s1 + $0x84] sm:$0xf0] }
  0x1e   :  { %277 = vmatpush.bf16.msra.mxu2 %v735_v55  ;;  %v727_v50 = vor.u32 %v859_v61, %v726_v60  ;;  %v710_v53 = vld [vmem:[%s1400_s1 + $0x80] sm:$0xf]  ;;  %v854_v54 = vld [vmem:[%s1400_s1 + $0x88] sm:$0xf0]  ;;  %v714_v55 = vld [vmem:[%s1400_s1 + $0x90] sm:$0xf]  ;;  %v707_v60 = vor.u32 %v852_v51, %v704_v52 }
  0x1f   :  { %v856_v56 = vld [vmem:[%s1400_s1 + $0x98] sm:$0xf0]  ;;  %v702_v58 = vld [vmem:[%s1400_s1 + $0x78] sm:$0xf]  ;;  %v853_v59 = vld [vmem:[%s1400_s1 + $0x80] sm:$0xf0]  ;;  %v711_v61 = vor.u32 %v854_v54, %v710_v53 }
  0x20   :  { %886 = vmatpush.bf16.msra.mxu3 %v727_v50  ;;  %v715_v57 = vor.u32 %v856_v56, %v714_v55  ;;  %221 = vmatpush.bf16.msra.mxu0 %v727_v50  ;;  %v849_v48 = vld [vmem:[%s1400_s1 + $0x64] sm:$0xf]  ;;  %v692_v50 = vld [vmem:[%s1400_s1 + $0x6c] sm:$0xf0]  ;;  %v698_v55 = vld [vmem:[%s1400_s1 + $0x68] sm:$0xf] }
  0x21   :  { %250 = vmatpush.bf16.msra.mxu1 %v719_v62  ;;  %v851_v56 = vld [vmem:[%s1400_s1 + $0x70] sm:$0xf0]  ;;  %v703_v62 = vor.u32 %v853_v59, %v702_v58  ;;  %v850_v51 = vld [vmem:[%s1400_s1 + $0x68] sm:$0xf0]  ;;  %v695_v52 = vor.u32 %v849_v48, %v692_v50  ;;  %v686_v58 = vld [vmem:[%s1400_s1 + $0x50] sm:$0xf] }
  0x22   :  { %278 = vmatpush.bf16.msra.mxu2 %v723_v63  ;;  %v690_v63 = vld [vmem:[%s1400_s1 + $0x60] sm:$0xf]  ;;  %v699_v53 = vor.u32 %v851_v56, %v698_v55  ;;  %v846_v54 = vld [vmem:[%s1400_s1 + $0x4c] sm:$0xf]  ;;  %v848_v59 = vld [vmem:[%s1400_s1 + $0x58] sm:$0xf0] }
  0x23   :  { %v678_v48 = vld [vmem:[%s1400_s1 + $0x48] sm:$0xf]  ;;  %v687_v55 = vor.u32 %v848_v59, %v686_v58  ;;  %v843_v56 = vld [vmem:[%s1400_s1 + $0x34] sm:$0xf]  ;;  %v840_v59 = vld [vmem:[%s1400_s1 + $0x1c] sm:$0xf] }
  0x24   :  { %887 = vmatpush.bf16.msra.mxu3 %v715_v57  ;;  %222 = vmatpush.bf16.msra.mxu0 %v715_v57  ;;  %v680_v57 = vld [vmem:[%s1400_s1 + $0x54] sm:$0xf0] }
  0x25   :  { %251 = vmatpush.bf16.msra.mxu1 %v707_v60  ;;  %v691_v60 = vor.u32 %v850_v51, %v690_v63  ;;  %v683_v50 = vor.u32 %v846_v54, %v680_v57  ;;  %v674_v63 = vld [vmem:[%s1400_s1 + $0x38] sm:$0xf]  ;;  %v845_v51 = vld [vmem:[%s1400_s1 + $0x40] sm:$0xf0]  ;;  %v844_v54 = vld [vmem:[%s1400_s1 + $0x38] sm:$0xf0] }
  0x26   :  { %279 = vmatpush.bf16.msra.mxu2 %v711_v61  ;;  %v847_v61 = vld [vmem:[%s1400_s1 + $0x50] sm:$0xf0]  ;;  %v675_v58 = vor.u32 %v845_v51, %v674_v63  ;;  %v837_v51 = vld [vmem:[%s1400_s1 + $0x4] sm:$0xf] }
  0x28   :  { %888 = vmatpush.bf16.msra.mxu3 %v703_v62  ;;  %223 = vmatpush.bf16.msra.mxu0 %v703_v62  ;;  %v668_v62 = vld [vmem:[%s1400_s1 + $0x3c] sm:$0xf0] }
  0x29   :  { %252 = vmatpush.bf16.msra.mxu1 %v695_v52  ;;  %v679_v52 = vor.u32 %v847_v61, %v678_v48  ;;  %v671_v57 = vor.u32 %v843_v56, %v668_v62  ;;  %v662_v48 = vld [vmem:[%s1400_s1 + $0x20] sm:$0xf]  ;;  %v842_v61 = vld [vmem:[%s1400_s1 + $0x28] sm:$0xf0]  ;;  %v841_v56 = vld [vmem:[%s1400_s1 + $0x20] sm:$0xf0] }
  0x2a   :  { %280 = vmatpush.bf16.msra.mxu2 %v699_v53  ;;  %v666_v53 = vld [vmem:[%s1400_s1 + $0x30] sm:$0xf]  ;;  %v663_v63 = vor.u32 %v842_v61, %v662_v48  ;;  %v42_v61 = vld [vmem:[%s1399_s0] sm:$0xff] }
  0x2c   :  { %889 = vmatpush.bf16.msra.mxu3 %v691_v60  ;;  %224 = vmatpush.bf16.msra.mxu0 %v691_v60  ;;  %v656_v60 = vld [vmem:[%s1400_s1 + $0x24] sm:$0xf0] }
  0x2d   :  { %253 = vmatpush.bf16.msra.mxu1 %v683_v50  ;;  %v667_v50 = vor.u32 %v844_v54, %v666_v53  ;;  %v659_v62 = vor.u32 %v840_v59, %v656_v60  ;;  %v650_v53 = vld [vmem:[%s1400_s1 + $0x8] sm:$0xf]  ;;  %v839_v54 = vld [vmem:[%s1400_s1 + $0x10] sm:$0xf0]  ;;  %v838_v59 = vld [vmem:[%s1400_s1 + $0x8] sm:$0xf0] }
  0x2e   :  { %281 = vmatpush.bf16.msra.mxu2 %v687_v55  ;;  %v654_v55 = vld [vmem:[%s1400_s1 + $0x18] sm:$0xf]  ;;  %v651_v48 = vor.u32 %v839_v54, %v650_v53  ;;  %v47_v53 = vld [vmem:[%s1399_s0 + $0x28] sm:$0xff] }
  0x30   :  { %890 = vmatpush.bf16.msra.mxu3 %v679_v52  ;;  %225 = vmatpush.bf16.msra.mxu0 %v679_v52  ;;  %v644_v52 = vld [vmem:[%s1400_s1 + $0xc] sm:$0xf0] }
  0x31   :  { %254 = vmatpush.bf16.msra.mxu1 %v671_v57  ;;  %v655_v57 = vor.u32 %v841_v56, %v654_v55  ;;  %v647_v60 = vor.u32 %v837_v51, %v644_v52  ;;  %v44_v56 = vld [vmem:[%s1399_s0 + $0x10] sm:$0xff]  ;;  %v46_v52 = vld [vmem:[%s1399_s0 + $0x20] sm:$0xff] }
  0x32   :  { %282 = vmatpush.bf16.msra.mxu2 %v675_v58  ;;  %v642_v58 = vld [vmem:[%s1400_s1] sm:$0xf]  ;;  %v51_v54 = vpack.c.bf16 %v47_v53, %v46_v52 }
  0x33   :  { %v643_v55 = vor.u32 %v838_v59, %v642_v58  ;;  %v85_v59 = vld [vmem:[%s1402_s3] sm:$0x7] }
  0x34   :  { %891 = vmatpush.bf16.msra.mxu3 %v667_v50  ;;  %226 = vmatpush.bf16.msra.mxu0 %v667_v50  ;;  %v43_v50 = vld [vmem:[%s1399_s0 + $0x8] sm:$0xff] }
  0x35   :  { %255 = vmatpush.bf16.msra.mxu1 %v659_v62  ;;  %v45_v62 = vld [vmem:[%s1399_s0 + $0x18] sm:$0xff] }
  0x36   :  { %283 = vmatpush.bf16.msra.mxu2 %v663_v63  ;;  %v49_v63 = vpack.c.bf16 %v43_v50, %v42_v61  ;;  %v50_v51 = vpack.c.bf16 %v45_v62, %v44_v56  ;;  %v89_v50 = vperm.slane %v85_v59, 2 }
  0x38   :  { %892 = vmatpush.bf16.msra.mxu3 %v655_v57  ;;  %227 = vmatpush.bf16.msra.mxu0 %v655_v57  ;;  %v48_v57 = vld [vmem:[%s1399_s0 + $0x30] sm:$0xff]  ;;  %s1316_s0 = smov 0  }
  0x39   :  { %256 = vmatpush.bf16.msra.mxu1 %v647_v60  ;;  %v52_v58 = vpack.c.bf16 %v48_v57, %v48_v57  ;;  %v88_v60 = vperm.slane %v85_v59, 1 }
  0x3a   :  { %284 = vmatpush.bf16.msra.mxu2 %v651_v48 }
  0x3c   :  { %893 = vmatpush.bf16.msra.mxu3 %v643_v55  ;;  %228 = vmatpush.bf16.msra.mxu0 %v643_v55  ;;  %v87_v55 = vperm.slane %v85_v59, 0 }
  0x3d   :  { %257 = vmatmul.bf16.vlgmr.msra.gmra.mxu1 %v49_v63  ;;  %285 = vmatmul.bf16.vlgmr.msra.gmra.mxu2 %v49_v63 }
  0x3f   :  { %234 = vmatmul.bf16.vlgmr.msra.gmra.mxu3 %v50_v51  ;;  %229 = vmatmul.bf16.vlgmr.msra.gmra.mxu0 %v49_v63 }
  0x4d   :  { %262 = vmatmul.bf16.gmra.mxu1 %v50_v51  ;;  %290 = vmatmul.bf16.gmra.mxu2 %v50_v51 }
  0x4f   :  { %239 = vmatmul.bf16.gmra.mxu3 %v51_v54 }
  0x5d   :  { %267 = vmatmul.bf16.gmra.mxu1 %v51_v54  ;;  %295 = vmatmul.bf16.gmra.mxu2 %v51_v54 }
  0x5f   :  { %244 = vmatmul.bf16.gmra.mxu3 %v52_v58 }
  0x6d   :  { %272 = vmatmul.bf16.gmra.mxu1 %v52_v58  ;;  %300 = vmatmul.bf16.gmra.mxu2 %v52_v58 }
  0xba   :  { %v258_v48 = vpop.f32.mrf.mxu1 }
  0xbb   :  { %v259_v61 = vadd.f32 %v258_v48, %v88_v60 }
  0xbc   :  { %v230_v54 = vpop.f32.mrf.mxu0 }
  0xbd   :  { %306 = vst [vmem:[#allocation2 + $0x8] sm:$0xff] %v259_v61  ;;  %v231_v57 = vadd.f32 %v230_v54, %v87_v55 }
  0xbf   :  { %305 = vst [vmem:[#allocation2] sm:$0xff] %v231_v57 }
  0xc0   :  { %v286_v56 = vpop.f32.mrf.mxu2 }
  0xc1   :  { %v287_v62 = vadd.f32 %v286_v56, %v89_v50 }
  0xc2   :  { %v260_v63 = vpop.f32.mrf.mxu1  ;;  %v235_v51 = vpop.f32.mrf.mxu3 }
  0xc3   :  { %307 = vst [vmem:[#allocation2 + $0x10] sm:$0xff] %v287_v62  ;;  %v261_v52 = vadd.f32 %v260_v63, %v88_v60  ;;  %v236_v53 = vadd.f32 %v235_v51, %v87_v55 }
  0xc4   :  { %v232_v59 = vpop.f32.mrf.mxu0 }
  0xc5   :  { %309 = vst [vmem:[#allocation2 + $0x20] sm:$0xff] %v261_v52  ;;  %v233_v56 = vadd.f32 %v232_v59, %v87_v55 }
  0xc6   :  { %311 = vst [vmem:[#allocation2 + $0x30] sm:$0xff] %v236_v53 }
  0xc7   :  { %308 = vst [vmem:[#allocation2 + $0x18] sm:$0xff] %v233_v56 }
  0xc8   :  { %v288_v58 = vpop.f32.mrf.mxu2 }
  0xc9   :  { %v289_v5 = vadd.f32 %v288_v58, %v89_v50 }
  0xca   :  { %v263_v2 = vpop.f32.mrf.mxu1  ;;  %v237_v0 = vpop.f32.mrf.mxu3 }
  0xcb   :  { %310 = vst [vmem:[#allocation2 + $0x28] sm:$0xff] %v289_v5  ;;  %v264_v48 = vadd.f32 %v263_v2, %v88_v60  ;;  %v238_v61 = vadd.f32 %v237_v0, %v87_v55 }
  0xcd   :  { %312 = vst [vmem:[#allocation2 + $0x38] sm:$0xff] %v264_v48 }
  0xce   :  { %314 = vst [vmem:[#allocation2 + $0x48] sm:$0xff] %v238_v61 }
  0xd0   :  { %v291_v3 = vpop.f32.mrf.mxu2 }
  0xd1   :  { %v292_v62 = vadd.f32 %v291_v3, %v89_v50 }
  0xd2   :  { %v265_v63 = vpop.f32.mrf.mxu1  ;;  %v240_v51 = vpop.f32.mrf.mxu3 }
  0xd3   :  { %313 = vst [vmem:[#allocation2 + $0x40] sm:$0xff] %v292_v62  ;;  %v266_v52 = vadd.f32 %v265_v63, %v88_v60  ;;  %v241_v53 = vadd.f32 %v240_v51, %v87_v55 }
  0xd5   :  { %315 = vst [vmem:[#allocation2 + $0x50] sm:$0xff] %v266_v52 }
  0xd6   :  { %317 = vst [vmem:[#allocation2 + $0x60] sm:$0xff] %v241_v53 }
  0xd8   :  { %v293_v54 = vpop.f32.mrf.mxu2 }
  0xd9   :  { %v294_v57 = vadd.f32 %v293_v54, %v89_v50 }
  0xda   :  { %v268_v58 = vpop.f32.mrf.mxu1  ;;  %v242_v5 = vpop.f32.mrf.mxu3 }
  0xdb   :  { %316 = vst [vmem:[#allocation2 + $0x58] sm:$0xff] %v294_v57  ;;  %v269_v0 = vadd.f32 %v268_v58, %v88_v60  ;;  %v243_v2 = vadd.f32 %v242_v5, %v87_v55 }
  0xdd   :  { %318 = vst [vmem:[#allocation2 + $0x68] sm:$0xff] %v269_v0 }
  0xde   :  { %320 = vst [vmem:[#allocation2 + $0x78] sm:$0xff] %v243_v2 }
  0xe0   :  { %v296_v48 = vpop.f32.mrf.mxu2 }
  0xe1   :  { %v297_v61 = vadd.f32 %v296_v48, %v89_v50 }
  0xe2   :  { %v270_v59 = vpop.f32.mrf.mxu1  ;;  %v245_v3 = vpop.f32.mrf.mxu3 }
  0xe3   :  { %319 = vst [vmem:[#allocation2 + $0x70] sm:$0xff] %v297_v61  ;;  %v271_v56 = vadd.f32 %v270_v59, %v88_v60  ;;  %v246_v62 = vadd.f32 %v245_v3, %v87_v55 }
  0xe5   :  { %321 = vst [vmem:[#allocation2 + $0x80] sm:$0xff] %v271_v56 }
  0xe6   :  { %323 = vst [vmem:[#allocation2 + $0x90] sm:$0xff] %v246_v62 }
  0xe8   :  { %v298_v63 = vpop.f32.mrf.mxu2 }
  0xe9   :  { %v299_v51 = vadd.f32 %v298_v63, %v89_v50 }
  0xea   :  { %v273_v52 = vpop.f32.mrf.mxu1  ;;  %v247_v53 = vpop.f32.mrf.mxu3 }
  0xeb   :  { %322 = vst [vmem:[#allocation2 + $0x88] sm:$0xff] %v299_v51  ;;  %v274_v54 = vadd.f32 %v273_v52, %v88_v60 }
  0xed   :  { %324 = vst [vmem:[#allocation2 + $0x98] sm:$0xff] %v274_v54 }
  0xf0   :  { %v301_v57 = vpop.f32.mrf.mxu2 }
  0xf1   :  { %v302_v58 = vadd.f32 %v301_v57, %v89_v50 }
  0xf2   :  { %v275_v5 = vpop.f32.mrf.mxu1 }
  0xf3   :  { %325 = vst [vmem:[#allocation2 + $0xa0] sm:$0xff] %v302_v58 }
  0xf8   :  { %v303_v0 = vpop.f32.mrf.mxu2 }
  0xf9 LB: > { %v826_v60 = vor.u32 %v1131_v46, %v1125_v43  ;;  %v830_v50 = vor.u32 %v1123_v42, %v1129_v45  ;;  %v814_v55 = vor.u32 %v1119_v40, %v1113_v37  ;;  %v818_v2 = vor.u32 %v1111_v36, %v1117_v39  ;;  %v1418_v7 = vld [vmem:[#allocation16_spill] sm:$0xff]  ;;  %v1419_v6 = vld [vmem:[#allocation15_spill] sm:$0xff]  ;;  %v1420_v8 = vld [vmem:[#allocation17_spill] sm:$0xff]  ;;  %s737_s3 = sshll.u32 %s990_s0, 3  ;;  %s365_s0 = sadd.s32 1, %s990_s0   ;;  %s990_s0 = sphi %s1316_s0, %s365_s0   ;;  %v986_v49 = vphi %v1143_v49, %v1428_v49  }
  0xfa   : > { %v834_v48 = vor.u32 %v1133_v47, %v1127_v44  ;;  %v822_v61 = vor.u32 %v1121_v41, %v1115_v38  ;;  %v802_v59 = vor.u32 %v1107_v34, %v1101_v31  ;;  %v806_v3 = vor.u32 %v1099_v30, %v1105_v33  ;;  %v1421_v1 = vld [vmem:[#allocation10_spill] sm:$0xff]  ;;  %v1422_v4 = vld [vmem:[#allocation13_spill] sm:$0xff]  ;;  %s372_s4 = sshra.s32 %s737_s3, 3  ;;  %s602_s21 = scalar_lea.vmem %s1405_s6, %s737_s3 }
  0xfb   : > { %516 = vmatpush.bf16.msra.mxu0 %v826_v60  ;;  %529 = vmatpush.bf16.msra.mxu1 %v830_v50  ;;  %v810_v56 = vor.u32 %v1109_v35, %v1103_v32  ;;  %v790_v62 = vor.u32 %v1095_v28, %v1089_v25  ;;  %v794_v63 = vor.u32 %v1087_v24, %v1093_v27  ;;  %s885_s5 = smul.u32 24, %s372_s4  ;;  %p362_p0 = scmp.ge.s32.totalorder %s365_s0, 7  }
  0xfc   : > { %542 = vmatpush.bf16.msra.mxu2 %v834_v48  ;;  %v798_v51 = vor.u32 %v1097_v29, %v1091_v26  ;;  %v778_v52 = vor.u32 %v1083_v22, %v1077_v19  ;;  %v782_v53 = vor.u32 %v1075_v18, %v1081_v21  ;;  %v786_v54 = vor.u32 %v1085_v23, %v1079_v20  ;;  %v1424_v48 = vld [vmem:[#allocation9_spill] sm:$0xff]  ;;  %s614_s24 = sshll.u32 (%p362_p0), %s1406_s7, 4  ;;  %s995_s25 = smov (%p362_p0), [#allocation6]   ;;  %s615_s24 = int_to_ptr.hbm [resolvable:$true] %s614_s24 }
  0xfd   : > { %v766_v57 = vor.u32 %v1071_v16, %v1065_v13  ;;  %v770_v58 = vor.u32 %v1063_v12, %v1069_v15  ;;  %v774_v5 = vor.u32 %v1073_v17, %v1067_v14  ;;  %v754_v0 = vor.u32 %v1059_v10, %v1418_v7  ;;  %s1379_s18 = scalar_lea.vmem [#allocation2], %s885_s5  ;;  %s612_s26 = sshll.u32 (%p362_p0), %s995_s25, 4  ;;  %s613_s26 = int_to_ptr.vmem [resolvable:$true] %s612_s26 }
  0xfe   : > { %v758_v60 = vor.u32 %v1419_v6, %v1057_v9  ;;  %v762_v50 = vor.u32 %v1061_v11, %v1420_v8 }
  0xff   : > { %517 = vmatpush.bf16.msra.mxu0 %v814_v55  ;;  %530 = vmatpush.bf16.msra.mxu1 %v818_v2  ;;  %v742_v55 = vor.u32 %v1422_v4, %v1421_v1  ;;  %v1423_v2 = vld [vmem:[#allocation12_spill] sm:$0xff] }
 0x100   : > { %543 = vmatpush.bf16.msra.mxu2 %v822_v61  ;;  %v746_v61 = vor.u32 %v1424_v48, %v1423_v2 }
 0x103   : > { %518 = vmatpush.bf16.msra.mxu0 %v802_v59  ;;  %531 = vmatpush.bf16.msra.mxu1 %v806_v3  ;;  %v1425_v59 = vld [vmem:[#allocation11_spill] sm:$0xff]  ;;  %v1426_v3 = vld [vmem:[#allocation14_spill] sm:$0xff] }
 0x104   : > { %544 = vmatpush.bf16.msra.mxu2 %v810_v56  ;;  %v750_v56 = vor.u32 %v1426_v3, %v1425_v59 }
 0x107   : > { %519 = vmatpush.bf16.msra.mxu0 %v790_v62  ;;  %532 = vmatpush.bf16.msra.mxu1 %v794_v63  ;;  %v380_v62 = vpack.c.bf16 %v986_v49, %v986_v49  ;;  %v1427_v63 = vld [vmem:[#allocation18_spill] sm:$0xff] }
 0x108   : > { %545 = vmatpush.bf16.msra.mxu2 %v798_v51  ;;  %v382_v51 = vperm.slane %v1427_v63, 0 }
 0x10b   : > { %520 = vmatpush.bf16.msra.mxu0 %v778_v52  ;;  %533 = vmatpush.bf16.msra.mxu1 %v782_v53  ;;  %v383_v52 = vperm.slane %v1427_v63, 1  ;;  %v377_v53 = vld [vmem:[%s1379_s18] sm:$0xff] }
 0x10c   : > { %546 = vmatpush.bf16.msra.mxu2 %v786_v54 }
 0x10f   : > { %521 = vmatpush.bf16.msra.mxu0 %v766_v57  ;;  %534 = vmatpush.bf16.msra.mxu1 %v770_v58  ;;  %v378_v57 = vld [vmem:[%s1379_s18 + $0x8] sm:$0xff] }
 0x110   : > { %547 = vmatpush.bf16.msra.mxu2 %v774_v5 }
 0x113   : > { %522 = vmatpush.bf16.msra.mxu0 %v754_v0  ;;  %535 = vmatpush.bf16.msra.mxu1 %v758_v60 }
 0x114   : > { %548 = vmatpush.bf16.msra.mxu2 %v762_v50 }
 0x117   : > { %523 = vmatpush.bf16.msra.mxu0 %v742_v55  ;;  %536 = vmatpush.bf16.msra.mxu1 %v746_v61 }
 0x118   : > { %549 = vmatpush.bf16.msra.mxu2 %v750_v56 }
 0x11a   : > { %524 = vmatmul.bf16.vlgmr.msra.gmra.mxu0 %v380_v62  ;;  %537 = vmatmul.bf16.vlgmr.msra.gmra.mxu1 %v380_v62 }
 0x11b   : > { %550 = vmatmul.bf16.vlgmr.msra.gmra.mxu2 %v380_v62 }
 0x197   : > { %v525_v54 = vpop.f32.mrf.mxu0  ;;  %v538_v58 = vpop.f32.mrf.mxu1 }
 0x198   : > { %v526_v5 = vadd.f32 %v525_v54, %v382_v51  ;;  %v539_v0 = vadd.f32 %v538_v58, %v383_v52 }
 0x19a   : > { %v555_v60 = vadd.f32 %v526_v5, %v377_v53  ;;  %v575_v50 = vadd.f32 %v539_v0, %v378_v57  ;;  %v384_v53 = vperm.slane %v1427_v63, 2 }
 0x19c   : > { %v835_v55 = vmul.f32 -1.442695, %v555_v60  ;;  %v836_v2 = vmul.f32 -1.442695, %v575_v50 }
 0x19e   : > { %914 = vpow2.f32 %v835_v55  ;;  %v551_v59 = vpop.f32.mrf.mxu2 }
 0x19f   : > { %916 = vpow2.f32 %v836_v2  ;;  %v527_v48 = vpop.f32.mrf.mxu0  ;;  %v540_v61 = vpop.f32.mrf.mxu1  ;;  %v552_v50 = vadd.f32 %v551_v59, %v384_v53 }
 0x1a0   : > { %v379_v48 = vld [vmem:[%s1379_s18 + $0x10] sm:$0xff] }
 0x1a4   : > { %v915_v3 = vpop.eup %914 }
 0x1a5   : > { %v917_v56 = vpop.eup %916  ;;  %v559_v62 = vadd.f32 1.0, %v915_v3 }
 0x1a6   : > { %v579_v1 = vadd.f32 1.0, %v917_v56  ;;  %v553_v4 = vpop.f32.mrf.mxu2 }
 0x1a7   : > { %918 = vrcp.f32 %v559_v62  ;;  %v571_v58 = vand.u32 2147483648, %v559_v62  ;;  %v569_v0 = vand.u32 2147483647, %v559_v62  ;;  %vm565_vm1 = vweird.f32 %v559_v62 }
 0x1a8   : > { %920 = vrcp.f32 %v579_v1  ;;  %vm585_vm4 = vweird.f32 %v579_v1  ;;  %v591_v56 = vand.u32 2147483648, %v579_v1 }
 0x1a9   : > { %v572_v2 = vor.u32 1.1754944e-38, %v571_v58  ;;  %vm570_vm3 = vcmp.eq.f32.partialorder %v569_v0, 8.507059e+37 }
 0x1ad   : > { %v919_v6 = vpop.eup %918 }
 0x1ae   : > { %v921_v7 = vpop.eup %920  ;;  %v561_v51 = vmul.f32 %v919_v6, %v559_v62  ;;  %vm566_vm0 = vweird.f32 %v919_v6 }
 0x1af   : > { %v581_v52 = vmul.f32 %v921_v7, %v579_v1  ;;  %vm567_vm2 = vmor %vm565_vm1, %vm566_vm0  ;;  %vm586_vm5 = vweird.f32 %v921_v7 }
 0x1b0   : > { %v562_v54 = vsub.f32 1.0, %v561_v51  ;;  %vm587_vm6 = vmor %vm585_vm4, %vm586_vm5 }
 0x1b1   : > { %v582_v57 = vsub.f32 1.0, %v581_v52  ;;  %v589_v52 = vand.u32 2147483647, %v579_v1 }
 0x1b2   : > { %v563_v5 = vmul.f32 %v919_v6, %v562_v54 }
 0x1b3   : > { %v583_v60 = vmul.f32 %v921_v7, %v582_v57  ;;  %v592_v57 = vor.u32 1.1754944e-38, %v591_v56  ;;  %vm590_vm7 = vcmp.eq.f32.partialorder %v589_v52, 8.507059e+37 }
 0x1b4   : > { %v564_v55 = vadd.f32 %v919_v6, %v563_v5 }
 0x1b5   : > { %v584_v3 = vadd.f32 %v921_v7, %v583_v60 }
 0x1b6   : > { %v568_v4 = vsel %vm567_vm2, %v919_v6, %v564_v55 }
 0x1b7   : > { %v573_v61 = vsel %vm570_vm3, %v572_v2, %v568_v4  ;;  %v588_v8 = vsel %vm587_vm6, %v921_v7, %v584_v3 }
 0x1b8   : > { %v595_v51 = vmul.f32 %v573_v61, %v552_v50  ;;  %v593_v59 = vsel %vm590_vm7, %v592_v57, %v588_v8 }
 0x1b9   : > { %v598_v62 = vsub.f32 1.0, %v593_v59  ;;  %v600_v58 = vmul.f32 %v986_v49, %v593_v59 }
 0x1ba   : > { %v596_v54 = vadd.f32 %v595_v51, %v379_v48 }
 0x1bc   : > { %922 = vtanh.f32 %v596_v54 }
 0x1c2   : > { %v923_v53 = vpop.eup %922 }
 0x1c3   : > { %v599_v6 = vmul.f32 %v923_v53, %v598_v62  ;;  %364 = sbr.rel (!%p362_p0) target bundleno = 249 (0xf9), region = 65 }
 0x1c5   : > { %v601_v5 = vadd.f32 %v600_v58, %v599_v6  }
 0x1c7   : > { %603 = vst [vmem:[%s602_s21] sm:$0xff] %v601_v5  ;;  %v1428_v49 = vmov %v601_v5 }
 0x1c8   :  { %604 = vst [vmem:[#allocation6] sm:$0xff] %v601_v5 }
 0x1c9   :  { %617 = dma.vmem_to_hbm [thread:$0]  %s613_s26, 128, %s615_s24, [#allocation5]  }
 0x1ca   :  { %982 = dma.done.wait [#allocation5], 128  }
 0x1cb   :  { %983 = vsyncadd [#allocation5], 4294967168 }
 0x1cc   :  { %624 = vsyncpa [#allocation4], 1 }
 0x1cd   :  { %625 = vsyncpa [#allocation5], 1 }

// kernel: _seq2seq_impl.6
= control target key start
LH: loop header
LB: loop body
LE: loop exit
PB: predicated region body
PF: predicated region fallthrough
CT: control target
= control target key end

     0   :  { %11 = vsyncpa [#allocation4], 0  ;;  %s2422_s0 = inlined_call_operand.vmem [shape: f32[64,256], index: 0, kind: input, shape index: {}]   ;;  %s2423_s1 = inlined_call_operand.vmem [shape: bf16[2,256,384], index: 1, kind: input, shape index: {}]   ;;  %s2424_s2 = inlined_call_operand.hbm [shape: bf16[2,128,384], index: 2, kind: input, shape index: {}]   ;;  %s2425_s3 = inlined_call_operand.vmem [shape: f32[2,1,384], index: 3, kind: input, shape index: {}]   ;;  %s2426_s4 = inlined_call_operand.vmem [shape: f32[2,1,384], index: 4, kind: input, shape index: {}]   ;;  %s2427_s5 = inlined_call_operand.vmem [shape: f32[2,8,128], index: 5, kind: input, shape index: {}]   ;;  %s2428_s6 = inlined_call_operand.vmem [shape: f32[2,8,128], index: 6, kind: output, shape index: {}]  }
   0x1   :  { %13 = vsyncpa [#allocation4 + $0x1], 0  ;;  %s1876_s21 = smov 0   ;;  %s1878_s22 = smov 0  }
   0x2   :  { %s1880_s23 = smov 0   ;;  %s1882_s24 = smov 0  }
   0x3 LB: > { %s1895_s25 = sadd.s32 4294967295, %s1829_s24   ;;  %s1898_s26 = sadd.s32 1, %s1829_s24   ;;  %s1829_s24 = sphi %s1882_s24, %s2471_s24   ;;  %s1825_s23 = sphi %s1880_s23, %s2470_s23   ;;  %s1821_s22 = sphi %s1878_s22, %s2469_s22   ;;  %s1817_s21 = sphi %s1876_s21, %s2468_s21  }
   0x4   : > { %s70_s27 = ssub.s32 %s1829_s24, %s1898_s26  ;;  %s73_s28 = sadd.s32 1, %s1825_s23 }
   0x5   : > { %p71_p0 = scmp.eq.s32.totalorder %s70_s27, 0  ;;  %p80_p1 = scmp.ne.s32.totalorder %s1825_s23, %s1821_s22 }
   0x6   : > { %p81_p2 = scmp.eq.s32.totalorder %s1829_s24, 0  ;;  %p86_p3 = scmp.ne.s32.totalorder %s1821_s22, %s1817_s21 }
   0x7   : > { %s1908_s29 = scalar_select %p71_p0, %s1825_s23, %s73_s28  }
   0x8   : > { %p82_p4 = por %p81_p2, %p80_p1  ;;  %p87_p5 = scmp.eq.s32.totalorder %s1895_s25, 0 }
   0x9   : > { %p1696_p6 = scmp.lt.s32.totalorder %s1829_s24, 2  ;;  %s225_s7 = sand.u32 1, %s1825_s23  }
   0xa   : > { %p1912_p7 = por %p87_p5, %p86_p3  ;;  %s1685_s8 = smul.u32 192, %s225_s7 }
   0xb   : > { %s1686_s9 = smul.u32 192, %s1829_s24  ;;  %p1918_p8 = pnand %p1696_p6, %p82_p4 }
   0xc   : > { %s229_s14 = scalar_lea.vmem [#allocation3], %s1685_s8  ;;  %p1297_p9 = scmp.ge.s32.totalorder %s1829_s24, 1 }
   0xd   : > { %s234_s13 = scalar_lea.hbm %s2424_s2, %s1686_s9  ;;  %s237_s15 = sshll.u32 %s229_s14, 4  ;;  %s238_s15 = int_to_ptr.vmem [resolvable:$true] %s237_s15 }
   0xe   : > { %s235_s16 = sshll.u32 %s234_s13, 4  ;;  %s226_s17 = scalar_lea.sflag [#allocation4], %s225_s7  ;;  %s236_s16 = int_to_ptr.hbm [resolvable:$true] %s235_s16 }
   0xf   : > { %s1757_s18 = sshra.s32 %s236_s16, 4  ;;  %p1761_p11 = pneg %p1918_p8  ;;  %s1758_s18 = int_to_ptr.hbm [resolvable:$true] %s1757_s18 }
  0x10   : > { %s1759_s19 = scalar_lea.hbm %s1758_s18, 192  ;;  %s1764_s27 = scalar_lea.hbm %s2424_s2, 384 }
  0x11   : > { %p1760_p10 = scmp.ne.s32.totalorder %s1758_s18, %s1759_s19  ;;  %p1765_p0 = scmp.lt.s32.totalorder %s1758_s18, %s2424_s2 }
  0x12   : > { %p1766_p1 = scmp.lt.s32.totalorder %s1764_s27, %s1759_s19 }
  0x13   : > { %p1762_p12 = pnand %p1761_p11, %p1760_p10 }
  0x14   : > { %p1767_p2 = por %p1766_p1, %p1765_p0 }
  0x15   : > { %p1763_p13 = pneg %p1762_p12 }
  0x17   : > { %p1768_p3 = pnand %p1767_p2, %p1763_p13 }
  0x19   : > { %1771 = shalt.err (!%p1768_p3)
}
  0x1a   : > { %s1839_s7 = smov 192   ;;  %s1840_s9 = smov 12  }
  0x1b   : > { %1695 = dma.hbm_to_vmem [thread:$0]  (!%p1918_p8), %s236_s16, 3072, %s238_s15, %s226_s17, %s1839_s7, %s1839_s7, %s1840_s9  }
  0x1c   : > { %p266_p4 = scmp.lt.s32.totalorder %s1829_s24, 3 }
  0x1e   : > { %p267_p5 = pnand %p1297_p9, %p266_p4 }
  0x20   : > { %270 = sbr.rel (%p267_p5) target bundleno = 532 (0x214), region = 44 }
  0x25   : > { %s272_s11 = sand.u32 1, %s1821_s22  }
  0x26   : > { %s1687_s12 = smul.u32 192, %s272_s11  ;;  %s273_s13 = scalar_lea.sflag [#allocation4], %s272_s11 }
  0x28   : > { %s1940_s14 = scalar_lea.vmem [#allocation3], %s1687_s12 }
  0x29   : > { %1812 = dma.done.wait (%p1912_p7), %s273_s13, 3072  }
  0x2a   : > { %1814 = vsyncadd (%p1912_p7), %s273_s13, 4294964224  ;;  %p322_p6 = scmp.lt.s32.totalorder %s1895_s25, 1  ;;  %v1960_v0 = vld [vmem:[%s1940_s14 + $0x4] sm:$0xf]  ;;  %v1963_v1 = vld [vmem:[%s1940_s14] sm:$0xf] }
  0x2b   : > { %2431 = vst [vmem:[#allocation6_spill] sm:$0xff] %v1960_v0  ;;  %v1966_v2 = vld [vmem:[%s1940_s14 + $0x8] sm:$0xf]  ;;  %v1969_v3 = vld [vmem:[%s1940_s14 + $0xc] sm:$0xf0] }
  0x2c   : > { %s1948_s24 = scalar_select %p322_p6, %s1895_s25, 1  ;;  %2432 = vst [vmem:[#allocation7_spill] sm:$0xff] %v1963_v1  ;;  %v1972_v4 = vld [vmem:[%s1940_s14 + $0x8] sm:$0xf0]  ;;  %v1975_v5 = vld [vmem:[%s1940_s14 + $0x10] sm:$0xf0] }
  0x2d   : > { %2433 = vst [vmem:[#allocation8_spill] sm:$0xff] %v1966_v2  ;;  %v1978_v6 = vld [vmem:[%s1940_s14 + $0x1c] sm:$0xf]  ;;  %v1981_v7 = vld [vmem:[%s1940_s14 + $0x18] sm:$0xf]  ;;  %v352_v0 = vld [vmem:[%s2422_s0 + $0x48] sm:$0xff] }
  0x2e   : > { %s1299_s30 = sshll.u32 %s1948_s24, 3  ;;  %s1688_s17 = smul.u32 384, %s1948_s24  ;;  %2434 = vst [vmem:[#allocation9_spill] sm:$0xff] %v1969_v3  ;;  %v1984_v8 = vld [vmem:[%s1940_s14 + $0x20] sm:$0xf]  ;;  %v346_v2 = vld [vmem:[%s2422_s0 + $0x18] sm:$0xff] }
  0x2f   : > { %s1956_s16 = scalar_lea.vmem %s2428_s6, %s1299_s30  ;;  %2435 = vst [vmem:[#allocation10_spill] sm:$0xff] %v1972_v4  ;;  %v1987_v9 = vld [vmem:[%s1940_s14 + $0x24] sm:$0xf0]  ;;  %v1990_v10 = vld [vmem:[%s1940_s14 + $0x20] sm:$0xf0]  ;;  %s338_s28 = scalar_lea.vmem %s2427_s5, %s1299_s30 }
  0x30   : > { %2436 = vst [vmem:[#allocation11_spill] sm:$0xff] %v1975_v5  ;;  %v1993_v11 = vld [vmem:[%s1940_s14 + $0x28] sm:$0xf0]  ;;  %v1996_v12 = vld [vmem:[%s1940_s14 + $0x34] sm:$0xf]  ;;  %s2090_s20 = scalar_lea.vmem %s2423_s1, %s1688_s17  ;;  %v2117_v50 = vld [vmem:[%s338_s28] sm:$0xff]  }
  0x31   : > { %2437 = vst [vmem:[#allocation12_spill] sm:$0xff] %v1978_v6  ;;  %v1999_v13 = vld [vmem:[%s1940_s14 + $0x30] sm:$0xf]  ;;  %v2002_v14 = vld [vmem:[%s1940_s14 + $0x38] sm:$0xf]  ;;  %v344_v5 = vld [vmem:[%s2422_s0 + $0x8] sm:$0xff] }
  0x32   : > { %2438 = vst [vmem:[#allocation13_spill] sm:$0xff] %v1981_v7  ;;  %v2005_v15 = vld [vmem:[%s1940_s14 + $0x3c] sm:$0xf0]  ;;  %v2008_v16 = vld [vmem:[%s1940_s14 + $0x38] sm:$0xf0] }
  0x33   : > { %2439 = vst [vmem:[#allocation14_spill] sm:$0xff] %v1984_v8  ;;  %v2011_v17 = vld [vmem:[%s1940_s14 + $0x40] sm:$0xf0]  ;;  %v2014_v18 = vld [vmem:[%s1940_s14 + $0x4c] sm:$0xf] }
  0x34   : > { %2440 = vst [vmem:[#allocation15_spill] sm:$0xff] %v1987_v9  ;;  %v2017_v19 = vld [vmem:[%s1940_s14 + $0x48] sm:$0xf]  ;;  %v2020_v20 = vld [vmem:[%s1940_s14 + $0x50] sm:$0xf] }
  0x35   : > { %2441 = vst [vmem:[#allocation16_spill] sm:$0xff] %v1990_v10  ;;  %v2023_v21 = vld [vmem:[%s1940_s14 + $0x54] sm:$0xf0]  ;;  %v2026_v22 = vld [vmem:[%s1940_s14 + $0x50] sm:$0xf0] }
  0x36   : > { %2442 = vst [vmem:[#allocation17_spill] sm:$0xff] %v1993_v11  ;;  %v2029_v23 = vld [vmem:[%s1940_s14 + $0x58] sm:$0xf0]  ;;  %v2032_v24 = vld [vmem:[%s1940_s14 + $0x64] sm:$0xf] }
  0x37   : > { %2443 = vst [vmem:[#allocation18_spill] sm:$0xff] %v1996_v12  ;;  %v2035_v25 = vld [vmem:[%s1940_s14 + $0x60] sm:$0xf]  ;;  %v2038_v26 = vld [vmem:[%s1940_s14 + $0x68] sm:$0xf] }
  0x38   : > { %2444 = vst [vmem:[#allocation19_spill] sm:$0xff] %v1999_v13  ;;  %v2041_v27 = vld [vmem:[%s1940_s14 + $0x6c] sm:$0xf0]  ;;  %v2044_v28 = vld [vmem:[%s1940_s14 + $0x68] sm:$0xf0] }
  0x39   : > { %2445 = vst [vmem:[#allocation20_spill] sm:$0xff] %v2002_v14  ;;  %v2047_v29 = vld [vmem:[%s1940_s14 + $0x70] sm:$0xf0]  ;;  %v2050_v30 = vld [vmem:[%s1940_s14 + $0x7c] sm:$0xf] }
  0x3a   : > { %2446 = vst [vmem:[#allocation21_spill] sm:$0xff] %v2005_v15  ;;  %v2053_v31 = vld [vmem:[%s1940_s14 + $0x78] sm:$0xf]  ;;  %v2056_v32 = vld [vmem:[%s1940_s14 + $0x80] sm:$0xf] }
  0x3b   : > { %2447 = vst [vmem:[#allocation22_spill] sm:$0xff] %v2008_v16  ;;  %v2059_v33 = vld [vmem:[%s1940_s14 + $0x84] sm:$0xf0]  ;;  %v2062_v34 = vld [vmem:[%s1940_s14 + $0x80] sm:$0xf0] }
  0x3c   : > { %2448 = vst [vmem:[#allocation23_spill] sm:$0xff] %v2011_v17  ;;  %v2065_v35 = vld [vmem:[%s1940_s14 + $0x88] sm:$0xf0]  ;;  %v2068_v36 = vld [vmem:[%s1940_s14 + $0x94] sm:$0xf] }
  0x3d   : > { %v2071_v37 = vld [vmem:[%s1940_s14 + $0x90] sm:$0xf]  ;;  %v2074_v38 = vld [vmem:[%s1940_s14 + $0x98] sm:$0xf]  ;;  %v2077_v39 = vld [vmem:[%s1940_s14 + $0x9c] sm:$0xf0] }
  0x3e   : > { %v2080_v40 = vld [vmem:[%s1940_s14 + $0x98] sm:$0xf0]  ;;  %v2083_v41 = vld [vmem:[%s1940_s14 + $0xa0] sm:$0xf0]  ;;  %v2098_v42 = vld [vmem:[%s1940_s14 + $0xac] sm:$0xf] }
  0x3f   : > { %v2101_v43 = vld [vmem:[%s1940_s14 + $0xa8] sm:$0xf]  ;;  %v2104_v44 = vld [vmem:[%s1940_s14 + $0xb0] sm:$0xf]  ;;  %v2107_v45 = vld [vmem:[%s1940_s14 + $0xb4] sm:$0xf0] }
  0x40   : > { %v2110_v46 = vld [vmem:[%s1940_s14 + $0xb0] sm:$0xf0]  ;;  %v2113_v47 = vld [vmem:[%s1940_s14 + $0xb8] sm:$0xf0]  ;;  %v1387_v48 = vld [vmem:[%s2090_s20 + $0xa8] sm:$0xf] }
  0x41   : > { %v1618_v49 = vld [vmem:[%s2090_s20 + $0xb0] sm:$0xf0]  ;;  %v1483_v52 = vld [vmem:[%s2090_s20 + $0x168] sm:$0xf]  ;;  %v1375_v54 = vld [vmem:[%s2090_s20 + $0x90] sm:$0xf] }
  0x42   : > { %v1388_v51 = vor.u32 %v1618_v49, %v1387_v48  ;;  %v1642_v53 = vld [vmem:[%s2090_s20 + $0x170] sm:$0xf0]  ;;  %v1615_v56 = vld [vmem:[%s2090_s20 + $0x98] sm:$0xf0]  ;;  %v1471_v57 = vld [vmem:[%s2090_s20 + $0x150] sm:$0xf] }
  0x43   : > { %v1484_v55 = vor.u32 %v1642_v53, %v1483_v52  ;;  %v1639_v58 = vld [vmem:[%s2090_s20 + $0x158] sm:$0xf0]  ;;  %v1376_v59 = vor.u32 %v1615_v56, %v1375_v54  ;;  %v1363_v61 = vld [vmem:[%s2090_s20 + $0x78] sm:$0xf]  ;;  %v1612_v62 = vld [vmem:[%s2090_s20 + $0x80] sm:$0xf0] }
  0x44   : > { %695 = vmatpush.bf16.msra.mxu0 %v1388_v51  ;;  %1669 = vmatpush.bf16.msra.mxu2 %v1388_v51  ;;  %v1472_v60 = vor.u32 %v1639_v58, %v1471_v57  ;;  %v1459_v63 = vld [vmem:[%s2090_s20 + $0x138] sm:$0xf]  ;;  %v1636_v48 = vld [vmem:[%s2090_s20 + $0x140] sm:$0xf0]  ;;  %v1364_v49 = vor.u32 %v1612_v62, %v1363_v61  ;;  %v1351_v52 = vld [vmem:[%s2090_s20 + $0x60] sm:$0xf] }
  0x45   : > { %724 = vmatpush.bf16.msra.mxu1 %v1484_v55  ;;  %1677 = vmatpush.bf16.msra.mxu3 %v1484_v55  ;;  %v1460_v51 = vor.u32 %v1636_v48, %v1459_v63  ;;  %v1609_v53 = vld [vmem:[%s2090_s20 + $0x68] sm:$0xf0]  ;;  %v1447_v54 = vld [vmem:[%s2090_s20 + $0x120] sm:$0xf]  ;;  %v1339_v58 = vld [vmem:[%s2090_s20 + $0x48] sm:$0xf] }
  0x46   : > { %v1633_v56 = vld [vmem:[%s2090_s20 + $0x128] sm:$0xf0]  ;;  %v1352_v55 = vor.u32 %v1609_v53, %v1351_v52  ;;  %v1435_v61 = vld [vmem:[%s2090_s20 + $0x108] sm:$0xf]  ;;  %v1630_v62 = vld [vmem:[%s2090_s20 + $0x110] sm:$0xf0] }
  0x47   : > { %v1448_v57 = vor.u32 %v1633_v56, %v1447_v54  ;;  %v1436_v63 = vor.u32 %v1630_v62, %v1435_v61  ;;  %v1327_v48 = vld [vmem:[%s2090_s20 + $0x30] sm:$0xf]  ;;  %v1315_v56 = vld [vmem:[%s2090_s20 + $0x18] sm:$0xf]  ;;  %v1303_v61 = vld [vmem:[%s2090_s20] sm:$0xf] }
  0x48   : > { %696 = vmatpush.bf16.msra.mxu0 %v1376_v59  ;;  %1670 = vmatpush.bf16.msra.mxu2 %v1376_v59  ;;  %v1606_v59 = vld [vmem:[%s2090_s20 + $0x50] sm:$0xf0]  ;;  %v1423_v52 = vld [vmem:[%s2090_s20 + $0xf0] sm:$0xf]  ;;  %v1643_v8 = vld [vmem:[%s2090_s20 + $0x178] sm:$0xf0] }
  0x49   : > { %725 = vmatpush.bf16.msra.mxu1 %v1472_v60  ;;  %1678 = vmatpush.bf16.msra.mxu3 %v1472_v60  ;;  %v1340_v60 = vor.u32 %v1606_v59, %v1339_v58  ;;  %v1411_v58 = vld [vmem:[%s2090_s20 + $0xd8] sm:$0xf]  ;;  %v1491_v11 = vld [vmem:[%s2090_s20 + $0x170] sm:$0xf]  ;;  %v1614_v6 = vld [vmem:[%s2090_s20 + $0x94] sm:$0xf] }
  0x4a   : > { %v1377_v7 = vld [vmem:[%s2090_s20 + $0x9c] sm:$0xf0]  ;;  %v1449_v17 = vld [vmem:[%s2090_s20 + $0x12c] sm:$0xf0]  ;;  %v1602_v16 = vld [vmem:[%s2090_s20 + $0x34] sm:$0xf] }
  0x4b   : > { %v1443_v15 = vld [vmem:[%s2090_s20 + $0x110] sm:$0xf] }
  0x4c   : > { %697 = vmatpush.bf16.msra.mxu0 %v1364_v49  ;;  %1671 = vmatpush.bf16.msra.mxu2 %v1364_v49  ;;  %v1603_v49 = vld [vmem:[%s2090_s20 + $0x38] sm:$0xf0] }
  0x4d   : > { %726 = vmatpush.bf16.msra.mxu1 %v1460_v51  ;;  %1679 = vmatpush.bf16.msra.mxu3 %v1460_v51  ;;  %v1627_v51 = vld [vmem:[%s2090_s20 + $0xf8] sm:$0xf0]  ;;  %v1328_v53 = vor.u32 %v1603_v49, %v1327_v48  ;;  %v1399_v48 = vld [vmem:[%s2090_s20 + $0xc0] sm:$0xf]  ;;  %v1621_v49 = vld [vmem:[%s2090_s20 + $0xc8] sm:$0xf0] }
  0x4e   : > { %v1424_v54 = vor.u32 %v1627_v51, %v1423_v52  ;;  %v345_v52 = vld [vmem:[%s2422_s0 + $0x10] sm:$0xff]  ;;  %v351_v51 = vld [vmem:[%s2422_s0 + $0x40] sm:$0xff]  ;;  %v1400_v3 = vor.u32 %v1621_v49, %v1399_v48  ;;  %v2189_v49 = vpack.c.bf16 %v346_v2, %v344_v5  ;;  %v1611_v5 = vld [vmem:[%s2090_s20 + $0x7c] sm:$0xf] }
  0x4f   : > { %v1473_v48 = vld [vmem:[%s2090_s20 + $0x15c] sm:$0xf0]  ;;  %v1640_v2 = vld [vmem:[%s2090_s20 + $0x160] sm:$0xf0] }
  0x50   : > { %698 = vmatpush.bf16.msra.mxu0 %v1352_v55  ;;  %1672 = vmatpush.bf16.msra.mxu2 %v1352_v55  ;;  %v1600_v55 = vld [vmem:[%s2090_s20 + $0x20] sm:$0xf0] }
  0x51   : > { %727 = vmatpush.bf16.msra.mxu1 %v1448_v57  ;;  %1680 = vmatpush.bf16.msra.mxu3 %v1448_v57  ;;  %v1624_v57 = vld [vmem:[%s2090_s20 + $0xe0] sm:$0xf0]  ;;  %v1316_v59 = vor.u32 %v1600_v55, %v1315_v56  ;;  %v1389_v56 = vld [vmem:[%s2090_s20 + $0xb4] sm:$0xf0]  ;;  %v1641_v55 = vld [vmem:[%s2090_s20 + $0x16c] sm:$0xf] }
  0x52   : > { %v1412_v62 = vor.u32 %v1624_v57, %v1411_v58  ;;  %v1485_v58 = vld [vmem:[%s2090_s20 + $0x174] sm:$0xf0] }
  0x53   : > { %v1488_v1 = vor.u32 %v1641_v55, %v1485_v58  ;;  %v1479_v58 = vld [vmem:[%s2090_s20 + $0x158] sm:$0xf] }
  0x54   : > { %699 = vmatpush.bf16.msra.mxu0 %v1340_v60  ;;  %1673 = vmatpush.bf16.msra.mxu2 %v1340_v60  ;;  %v1597_v60 = vld [vmem:[%s2090_s20 + $0x8] sm:$0xf0] }
  0x55   : > { %728 = vmatpush.bf16.msra.mxu1 %v1436_v63  ;;  %1681 = vmatpush.bf16.msra.mxu3 %v1436_v63  ;;  %v343_v63 = vld [vmem:[%s2422_s0] sm:$0xff]  ;;  %v1304_v57 = vor.u32 %v1597_v60, %v1303_v61  ;;  %v1395_v61 = vld [vmem:[%s2090_s20 + $0xb0] sm:$0xf]  ;;  %v1619_v60 = vld [vmem:[%s2090_s20 + $0xb8] sm:$0xf0] }
  0x56   : > { %v2182_v9 = vpack.c.bf16 %v345_v52, %v343_v63  ;;  %v1396_v63 = vor.u32 %v1619_v60, %v1395_v61  ;;  %v1492_v52 = vor.u32 %v1643_v8, %v1491_v11  ;;  %v1461_v8 = vld [vmem:[%s2090_s20 + $0x144] sm:$0xf0]  ;;  %v1637_v61 = vld [vmem:[%s2090_s20 + $0x148] sm:$0xf0]  ;;  %v1608_v60 = vld [vmem:[%s2090_s20 + $0x64] sm:$0xf] }
  0x58   : > { %700 = vmatpush.bf16.msra.mxu0 %v1328_v53  ;;  %1674 = vmatpush.bf16.msra.mxu2 %v1328_v53  ;;  %v353_v53 = vld [vmem:[%s2422_s0 + $0x50] sm:$0xff] }
  0x59   : > { %729 = vmatpush.bf16.msra.mxu1 %v1424_v54  ;;  %1682 = vmatpush.bf16.msra.mxu3 %v1424_v54  ;;  %v1617_v54 = vld [vmem:[%s2090_s20 + $0xac] sm:$0xf]  ;;  %v2184_v10 = vpack.c.bf16 %v353_v53, %v351_v51  ;;  %v1383_v51 = vld [vmem:[%s2090_s20 + $0x98] sm:$0xf]  ;;  %v1616_v53 = vld [vmem:[%s2090_s20 + $0xa0] sm:$0xf0] }
  0x5a   : > { %v1392_v4 = vor.u32 %v1617_v54, %v1389_v56  ;;  %v1380_v56 = vor.u32 %v1614_v6, %v1377_v7  ;;  %v1371_v6 = vld [vmem:[%s2090_s20 + $0x80] sm:$0xf]  ;;  %v1613_v7 = vld [vmem:[%s2090_s20 + $0x88] sm:$0xf0] }
  0x5c   : > { %701 = vmatpush.bf16.msra.mxu0 %v1316_v59  ;;  %1675 = vmatpush.bf16.msra.mxu2 %v1316_v59  ;;  %v354_v59 = vld [vmem:[%s2422_s0 + $0x58] sm:$0xff] }
  0x5d   : > { %730 = vmatpush.bf16.msra.mxu1 %v1412_v62  ;;  %1683 = vmatpush.bf16.msra.mxu3 %v1412_v62  ;;  %v1638_v62 = vld [vmem:[%s2090_s20 + $0x154] sm:$0xf]  ;;  %v2191_v54 = vpack.c.bf16 %v354_v59, %v352_v0  ;;  %v1365_v0 = vld [vmem:[%s2090_s20 + $0x84] sm:$0xf0]  ;;  %v1467_v59 = vld [vmem:[%s2090_s20 + $0x140] sm:$0xf] }
  0x5e   : > { %v1476_v55 = vor.u32 %v1638_v62, %v1473_v48  ;;  %v1368_v11 = vor.u32 %v1611_v5, %v1365_v0  ;;  %v1353_v62 = vld [vmem:[%s2090_s20 + $0x6c] sm:$0xf0]  ;;  %v1632_v48 = vld [vmem:[%s2090_s20 + $0x124] sm:$0xf] }
  0x5f   : > { %v347_v5 = vld [vmem:[%s2422_s0 + $0x20] sm:$0xff]  ;;  %v349_v0 = vld [vmem:[%s2422_s0 + $0x30] sm:$0xff] }
  0x60   : > { %702 = vmatpush.bf16.msra.mxu0 %v1304_v57  ;;  %1676 = vmatpush.bf16.msra.mxu2 %v1304_v57 }
  0x61   : > { %731 = vmatpush.bf16.msra.mxu1 %v1400_v3  ;;  %1684 = vmatpush.bf16.msra.mxu3 %v1400_v3  ;;  %v1635_v3 = vld [vmem:[%s2090_s20 + $0x13c] sm:$0xf] }
  0x62   : > { %v1464_v57 = vor.u32 %v1635_v3, %v1461_v8  ;;  %v355_v3 = vld [vmem:[%s2422_s0 + $0x60] sm:$0xff]  ;;  %v357_v8 = vld [vmem:[%s2422_s0 + $0x70] sm:$0xff] }
  0x63   : > { %703 = vmatmul.bf16.vlgmr.msra.gmra.mxu0 %v2182_v9  ;;  %713 = vmatmul.bf16.vlgmr.msra.gmra.mxu2 %v2184_v10 }
  0x64   : > { %753 = vmatpush.bf16.msrb.mxu2 %v1392_v4  ;;  %732 = vmatmul.bf16.vlgmr.msra.gmra.mxu1 %v2189_v49  ;;  %v1480_v4 = vor.u32 %v1640_v2, %v1479_v58  ;;  %v1356_v58 = vor.u32 %v1608_v60, %v1353_v62  ;;  %v1452_v2 = vor.u32 %v1632_v48, %v1449_v17  ;;  %v1341_v17 = vld [vmem:[%s2090_s20 + $0x54] sm:$0xf0]  ;;  %v1347_v62 = vld [vmem:[%s2090_s20 + $0x50] sm:$0xf]  ;;  %v1607_v48 = vld [vmem:[%s2090_s20 + $0x58] sm:$0xf0] }
  0x65   : > { %782 = vmatpush.bf16.msrb.mxu3 %v1488_v1  ;;  %811 = vmatpush.bf16.msrb.mxu0 %v1396_v63  ;;  %v1384_v1 = vor.u32 %v1616_v53, %v1383_v51  ;;  %v1359_v63 = vld [vmem:[%s2090_s20 + $0x68] sm:$0xf]  ;;  %v1468_v51 = vor.u32 %v1637_v61, %v1467_v59  ;;  %v1610_v53 = vld [vmem:[%s2090_s20 + $0x70] sm:$0xf0]  ;;  %v358_v60 = vld [vmem:[%s2422_s0 + $0x78] sm:$0xff] }
  0x66   : > { %742 = vmatmul.bf16.vlgmr.msra.gmra.mxu3 %v2191_v54  ;;  %840 = vmatpush.bf16.msrb.mxu1 %v1492_v52  ;;  %v1372_v52 = vor.u32 %v1613_v7, %v1371_v6  ;;  %v1437_v6 = vld [vmem:[%s2090_s20 + $0x114] sm:$0xf0]  ;;  %v348_v7 = vld [vmem:[%s2422_s0 + $0x28] sm:$0xff]  ;;  %v1360_v59 = vor.u32 %v1610_v53, %v1359_v63  ;;  %v2252_v63 = vpack.c.bf16 %v357_v8, %v355_v3  ;;  %v1329_v53 = vld [vmem:[%s2090_s20 + $0x3c] sm:$0xf0] }
  0x67   : > { %v1604_v3 = vld [vmem:[%s2090_s20 + $0x40] sm:$0xf0]  ;;  %v1332_v8 = vor.u32 %v1602_v16, %v1329_v53  ;;  %v1323_v16 = vld [vmem:[%s2090_s20 + $0x20] sm:$0xf] }
  0x68   : > { %754 = vmatpush.bf16.msrb.mxu2 %v1380_v56  ;;  %v1455_v56 = vld [vmem:[%s2090_s20 + $0x128] sm:$0xf]  ;;  %v1620_v53 = vld [vmem:[%s2090_s20 + $0xc4] sm:$0xf] }
  0x69   : > { %783 = vmatpush.bf16.msrb.mxu3 %v1476_v55  ;;  %812 = vmatpush.bf16.msrb.mxu0 %v1384_v1  ;;  %v1634_v55 = vld [vmem:[%s2090_s20 + $0x130] sm:$0xf0]  ;;  %v1605_v1 = vld [vmem:[%s2090_s20 + $0x4c] sm:$0xf] }
  0x6a   : > { %841 = vmatpush.bf16.msrb.mxu1 %v1480_v4  ;;  %v1629_v4 = vld [vmem:[%s2090_s20 + $0x10c] sm:$0xf]  ;;  %v1456_v61 = vor.u32 %v1634_v55, %v1455_v56  ;;  %v1344_v14 = vor.u32 %v1605_v1, %v1341_v17  ;;  %v1626_v56 = vld [vmem:[%s2090_s20 + $0xf4] sm:$0xf]  ;;  %v1425_v55 = vld [vmem:[%s2090_s20 + $0xfc] sm:$0xf0] }
  0x6b   : > { %v1440_v12 = vor.u32 %v1629_v4, %v1437_v6  ;;  %v1428_v1 = vor.u32 %v1626_v56, %v1425_v55  ;;  %v1431_v17 = vld [vmem:[%s2090_s20 + $0xf8] sm:$0xf]  ;;  %v1628_v4 = vld [vmem:[%s2090_s20 + $0x100] sm:$0xf0]  ;;  %v1599_v6 = vld [vmem:[%s2090_s20 + $0x1c] sm:$0xf] }
  0x6c   : > { %755 = vmatpush.bf16.msrb.mxu2 %v1368_v11  ;;  %v350_v11 = vld [vmem:[%s2422_s0 + $0x38] sm:$0xff]  ;;  %v1401_v56 = vld [vmem:[%s2090_s20 + $0xcc] sm:$0xf0] }
  0x6d   : > { %784 = vmatpush.bf16.msrb.mxu3 %v1464_v57  ;;  %v356_v57 = vld [vmem:[%s2422_s0 + $0x68] sm:$0xff]  ;;  %813 = vmatpush.bf16.msrb.mxu0 %v1372_v52  ;;  %v1631_v52 = vld [vmem:[%s2090_s20 + $0x118] sm:$0xf0]  ;;  %v2257_v13 = vpack.c.bf16 %v350_v11, %v348_v7 }
  0x6e   : > { %842 = vmatpush.bf16.msrb.mxu1 %v1468_v51  ;;  %v2250_v51 = vpack.c.bf16 %v349_v0, %v347_v5  ;;  %v1444_v5 = vor.u32 %v1631_v52, %v1443_v15  ;;  %v1335_v0 = vld [vmem:[%s2090_s20 + $0x38] sm:$0xf]  ;;  %v1317_v7 = vld [vmem:[%s2090_s20 + $0x24] sm:$0xf0]  ;;  %v1623_v11 = vld [vmem:[%s2090_s20 + $0xdc] sm:$0xf] }
  0x6f   : > { %v1413_v15 = vld [vmem:[%s2090_s20 + $0xe4] sm:$0xf0]  ;;  %v1305_v52 = vld [vmem:[%s2090_s20 + $0xc] sm:$0xf0] }
  0x70   : > { %756 = vmatpush.bf16.msrb.mxu2 %v1356_v58  ;;  %v2259_v58 = vpack.c.bf16 %v358_v60, %v356_v57  ;;  %v1601_v57 = vld [vmem:[%s2090_s20 + $0x28] sm:$0xf0]  ;;  %v1419_v60 = vld [vmem:[%s2090_s20 + $0xe0] sm:$0xf] }
  0x71   : > { %785 = vmatpush.bf16.msrb.mxu3 %v1452_v2  ;;  %814 = vmatpush.bf16.msrb.mxu0 %v1360_v59  ;;  %v1348_v2 = vor.u32 %v1607_v48, %v1347_v62  ;;  %v1320_v59 = vor.u32 %v1599_v6, %v1317_v7  ;;  %v1625_v62 = vld [vmem:[%s2090_s20 + $0xe8] sm:$0xf0]  ;;  %v1596_v48 = vld [vmem:[%s2090_s20 + $0x4] sm:$0xf]  ;;  %v1324_v55 = vor.u32 %v1601_v57, %v1323_v16 }
  0x72   : > { %843 = vmatpush.bf16.msrb.mxu1 %v1456_v61  ;;  %v1416_v61 = vor.u32 %v1623_v11, %v1413_v15 }
  0x73   : > { %708 = vmatmul.bf16.gmra.mxu0 %v2250_v51  ;;  %718 = vmatmul.bf16.gmra.mxu2 %v2252_v63 }
  0x74   : > { %757 = vmatpush.bf16.msrb.mxu2 %v1344_v14  ;;  %737 = vmatmul.bf16.gmra.mxu1 %v2257_v13  ;;  %v1432_v14 = vor.u32 %v1628_v4, %v1431_v17  ;;  %v1622_v17 = vld [vmem:[%s2090_s20 + $0xd0] sm:$0xf0] }
  0x75   : > { %786 = vmatpush.bf16.msrb.mxu3 %v1440_v12  ;;  %815 = vmatpush.bf16.msrb.mxu0 %v1348_v2  ;;  %v1336_v12 = vor.u32 %v1604_v3, %v1335_v0  ;;  %v1420_v2 = vor.u32 %v1625_v62, %v1419_v60  ;;  %v1308_v0 = vor.u32 %v1596_v48, %v1305_v52 }
  0x76   : > { %747 = vmatmul.bf16.gmra.mxu3 %v2259_v58  ;;  %844 = vmatpush.bf16.msrb.mxu1 %v1444_v5  ;;  %v1311_v5 = vld [vmem:[%s2090_s20 + $0x8] sm:$0xf]  ;;  %v1404_v3 = vor.u32 %v1620_v53, %v1401_v56 }
  0x78   : > { %758 = vmatpush.bf16.msrb.mxu2 %v1332_v8  ;;  %v1598_v8 = vld [vmem:[%s2090_s20 + $0x10] sm:$0xf0] }
  0x79   : > { %787 = vmatpush.bf16.msrb.mxu3 %v1428_v1  ;;  %816 = vmatpush.bf16.msrb.mxu0 %v1336_v12  ;;  %v1407_v1 = vld [vmem:[%s2090_s20 + $0xc8] sm:$0xf]  ;;  %v1312_v4 = vor.u32 %v1598_v8, %v1311_v5  ;;  %s1689_s20 = smul.u32 3, %s1948_s24  ;;  %s2333_s24 = smov 0  }
  0x7a   : > { %845 = vmatpush.bf16.msrb.mxu1 %v1432_v14  ;;  %v1408_v6 = vor.u32 %v1622_v17, %v1407_v1 }
  0x7b   : > { %s334_s9 = scalar_lea.vmem %s2426_s4, %s1689_s20  ;;  %s330_s13 = scalar_lea.vmem %s2425_s3, %s1689_s20 }
  0x7c   : > { %759 = vmatpush.bf16.msrb.mxu2 %v1320_v59 }
  0x7d   : > { %788 = vmatpush.bf16.msrb.mxu3 %v1416_v61  ;;  %817 = vmatpush.bf16.msrb.mxu0 %v1324_v55 }
  0x7e   : > { %846 = vmatpush.bf16.msrb.mxu1 %v1420_v2 }
  0x80   : > { %760 = vmatpush.bf16.msrb.mxu2 %v1308_v0 }
  0x81   : > { %789 = vmatpush.bf16.msrb.mxu3 %v1404_v3  ;;  %818 = vmatpush.bf16.msrb.mxu0 %v1312_v4 }
  0x82   : > { %847 = vmatpush.bf16.msrb.mxu1 %v1408_v6 }
  0x83   : > { %761 = vmatmul.bf16.vlgmr.msrb.gmra.mxu2 %v2182_v9 }
  0x84   : > { %819 = vmatmul.bf16.vlgmr.msrb.gmra.mxu0 %v2182_v9  ;;  %v2305_v9 = vld [vmem:[%s334_s9] sm:$0x7] }
  0x85   : > { %848 = vmatmul.bf16.vlgmr.msrb.gmra.mxu1 %v2189_v49 }
  0x86   : > { %790 = vmatmul.bf16.vlgmr.msrb.gmra.mxu3 %v2189_v49 }
  0x93   : > { %766 = vmatmul.bf16.gmra.mxu2 %v2250_v51 }
  0x94   : > { %824 = vmatmul.bf16.gmra.mxu0 %v2250_v51 }
  0x95   : > { %853 = vmatmul.bf16.gmra.mxu1 %v2257_v13 }
  0x96   : > { %795 = vmatmul.bf16.gmra.mxu3 %v2257_v13 }
  0xa3   : > { %771 = vmatmul.bf16.gmra.mxu2 %v2184_v10 }
  0xa4   : > { %829 = vmatmul.bf16.gmra.mxu0 %v2184_v10  ;;  %v431_v10 = vld [vmem:[%s330_s13] sm:$0x7] }
  0xa5   : > { %858 = vmatmul.bf16.gmra.mxu1 %v2191_v54  ;;  %v433_v13 = vperm.slane %v431_v10, 0  ;;  %v2310_v6 = vperm.slane %v431_v10, 2 }
  0xa6   : > { %800 = vmatmul.bf16.gmra.mxu3 %v2191_v54 }
  0xb3   : > { %776 = vmatmul.bf16.gmra.mxu2 %v2252_v63 }
  0xb4   : > { %834 = vmatmul.bf16.gmra.mxu0 %v2252_v63 }
  0xb5   : > { %863 = vmatmul.bf16.gmra.mxu1 %v2259_v58 }
  0xb6   : > { %805 = vmatmul.bf16.gmra.mxu3 %v2259_v58 }
  0xe0   : > { %v704_v49 = vpop.f32.mrf.mxu0 }
  0xe1   : > { %v705_v54 = vadd.f32 %v704_v49, %v433_v13  ;;  %v733_v51 = vpop.f32.mrf.mxu1 }
  0xe3   : > { %v734_v7 = vadd.f32 %v733_v51, %v705_v54 }
  0xe5   : > { %869 = vst [vmem:[#allocation2] sm:$0xff] %v734_v7 }
  0xe6   : > { %v714_v63 = vpop.f32.mrf.mxu2 }
  0xe7   : > { %v715_v58 = vadd.f32 %v714_v63, %v433_v13 }
  0xe8   : > { %v706_v15 = vpop.f32.mrf.mxu0 }
  0xe9   : > { %v743_v11 = vpop.f32.mrf.mxu3  ;;  %v707_v14 = vadd.f32 %v706_v15, %v433_v13  ;;  %v735_v16 = vpop.f32.mrf.mxu1 }
  0xea   : > { %v744_v12 = vadd.f32 %v743_v11, %v715_v58  ;;  %v2313_v11 = vperm.slane %v431_v10, 1 }
  0xeb   : > { %v736_v57 = vadd.f32 %v735_v16, %v707_v14 }
  0xec   : > { %881 = vst [vmem:[#allocation2 + $0x60] sm:$0xff] %v744_v12 }
  0xed   : > { %872 = vst [vmem:[#allocation2 + $0x18] sm:$0xff] %v736_v57 }
  0xee   : > { %v716_v59 = vpop.f32.mrf.mxu2 }
  0xef   : > { %v717_v61 = vadd.f32 %v716_v59, %v433_v13 }
  0xf0   : > { %v709_v62 = vpop.f32.mrf.mxu0 }
  0xf1   : > { %v745_v60 = vpop.f32.mrf.mxu3  ;;  %v710_v52 = vadd.f32 %v709_v62, %v433_v13  ;;  %v738_v53 = vpop.f32.mrf.mxu1 }
  0xf2   : > { %v746_v48 = vadd.f32 %v745_v60, %v717_v61 }
  0xf3   : > { %v739_v56 = vadd.f32 %v738_v53, %v710_v52 }
  0xf4   : > { %884 = vst [vmem:[#allocation2 + $0x78] sm:$0xff] %v746_v48 }
  0xf5   : > { %875 = vst [vmem:[#allocation2 + $0x30] sm:$0xff] %v739_v56 }
  0xf6   : > { %v719_v55 = vpop.f32.mrf.mxu2 }
  0xf7   : > { %v720_v2 = vadd.f32 %v719_v55, %v433_v13 }
  0xf8   : > { %v711_v0 = vpop.f32.mrf.mxu0 }
  0xf9   : > { %v748_v5 = vpop.f32.mrf.mxu3  ;;  %v712_v8 = vadd.f32 %v711_v0, %v433_v13  ;;  %v740_v1 = vpop.f32.mrf.mxu1 }
  0xfa   : > { %v749_v3 = vadd.f32 %v748_v5, %v720_v2 }
  0xfb   : > { %v741_v17 = vadd.f32 %v740_v1, %v712_v8 }
  0xfc   : > { %887 = vst [vmem:[#allocation2 + $0x90] sm:$0xff] %v749_v3 }
  0xfd   : > { %878 = vst [vmem:[#allocation2 + $0x48] sm:$0xff] %v741_v17 }
  0xfe   : > { %v721_v4 = vpop.f32.mrf.mxu2 }
  0xff   : > { %v722_v49 = vadd.f32 %v721_v4, %v433_v13 }
 0x101   : > { %v750_v54 = vpop.f32.mrf.mxu3  ;;  %v820_v7 = vpop.f32.mrf.mxu0 }
 0x102   : > { %v751_v51 = vadd.f32 %v750_v54, %v722_v49  ;;  %v821_v63 = vadd.f32 %v820_v7, %v2310_v6  ;;  %v849_v58 = vpop.f32.mrf.mxu1 }
 0x104   : > { %890 = vst [vmem:[#allocation2 + $0xa8] sm:$0xff] %v751_v51  ;;  %v850_v15 = vadd.f32 %v849_v58, %v821_v63 }
 0x106   : > { %871 = vst [vmem:[#allocation2 + $0x10] sm:$0xff] %v850_v15  ;;  %v762_v12 = vpop.f32.mrf.mxu2 }
 0x107   : > { %v763_v14 = vadd.f32 %v762_v12, %v2313_v11 }
 0x109   : > { %v791_v16 = vpop.f32.mrf.mxu3  ;;  %v822_v59 = vpop.f32.mrf.mxu0 }
 0x10a   : > { %v792_v57 = vadd.f32 %v791_v16, %v763_v14  ;;  %v823_v61 = vadd.f32 %v822_v59, %v2310_v6  ;;  %v851_v13 = vpop.f32.mrf.mxu1 }
 0x10c   : > { %870 = vst [vmem:[#allocation2 + $0x8] sm:$0xff] %v792_v57  ;;  %v852_v60 = vadd.f32 %v851_v13, %v823_v61 }
 0x10e   : > { %874 = vst [vmem:[#allocation2 + $0x28] sm:$0xff] %v852_v60  ;;  %v764_v62 = vpop.f32.mrf.mxu2 }
 0x10f   : > { %v765_v48 = vadd.f32 %v764_v62, %v2313_v11 }
 0x111   : > { %v793_v52 = vpop.f32.mrf.mxu3  ;;  %v825_v53 = vpop.f32.mrf.mxu0 }
 0x112   : > { %v794_v10 = vadd.f32 %v793_v52, %v765_v48  ;;  %v826_v56 = vadd.f32 %v825_v53, %v2310_v6  ;;  %v854_v55 = vpop.f32.mrf.mxu1 }
 0x114   : > { %873 = vst [vmem:[#allocation2 + $0x20] sm:$0xff] %v794_v10  ;;  %v855_v2 = vadd.f32 %v854_v55, %v826_v56 }
 0x116   : > { %877 = vst [vmem:[#allocation2 + $0x40] sm:$0xff] %v855_v2  ;;  %v767_v5 = vpop.f32.mrf.mxu2 }
 0x117   : > { %v768_v0 = vadd.f32 %v767_v5, %v2313_v11 }
 0x119   : > { %v796_v3 = vpop.f32.mrf.mxu3  ;;  %v827_v1 = vpop.f32.mrf.mxu0 }
 0x11a   : > { %v797_v8 = vadd.f32 %v796_v3, %v768_v0  ;;  %v828_v17 = vadd.f32 %v827_v1, %v2310_v6  ;;  %v856_v4 = vpop.f32.mrf.mxu1 }
 0x11c   : > { %876 = vst [vmem:[#allocation2 + $0x38] sm:$0xff] %v797_v8  ;;  %v857_v49 = vadd.f32 %v856_v4, %v828_v17 }
 0x11e   : > { %880 = vst [vmem:[#allocation2 + $0x58] sm:$0xff] %v857_v49  ;;  %v769_v54 = vpop.f32.mrf.mxu2 }
 0x11f   : > { %v770_v51 = vadd.f32 %v769_v54, %v2313_v11 }
 0x121   : > { %v798_v7 = vpop.f32.mrf.mxu3  ;;  %v830_v58 = vpop.f32.mrf.mxu0 }
 0x122   : > { %v799_v63 = vadd.f32 %v798_v7, %v770_v51  ;;  %v831_v15 = vadd.f32 %v830_v58, %v2310_v6  ;;  %v859_v12 = vpop.f32.mrf.mxu1 }
 0x124   : > { %879 = vst [vmem:[#allocation2 + $0x50] sm:$0xff] %v799_v63  ;;  %v860_v14 = vadd.f32 %v859_v12, %v831_v15 }
 0x126   : > { %883 = vst [vmem:[#allocation2 + $0x70] sm:$0xff] %v860_v14  ;;  %v772_v16 = vpop.f32.mrf.mxu2 }
 0x127   : > { %v773_v57 = vadd.f32 %v772_v16, %v2313_v11 }
 0x129   : > { %v801_v59 = vpop.f32.mrf.mxu3  ;;  %v832_v13 = vpop.f32.mrf.mxu0 }
 0x12a   : > { %v802_v61 = vadd.f32 %v801_v59, %v773_v57  ;;  %v833_v60 = vadd.f32 %v832_v13, %v2310_v6  ;;  %v861_v62 = vpop.f32.mrf.mxu1 }
 0x12c   : > { %882 = vst [vmem:[#allocation2 + $0x68] sm:$0xff] %v802_v61  ;;  %v862_v48 = vadd.f32 %v861_v62, %v833_v60 }
 0x12e   : > { %886 = vst [vmem:[#allocation2 + $0x88] sm:$0xff] %v862_v48  ;;  %v774_v52 = vpop.f32.mrf.mxu2 }
 0x12f   : > { %v775_v10 = vadd.f32 %v774_v52, %v2313_v11 }
 0x131   : > { %v803_v53 = vpop.f32.mrf.mxu3  ;;  %v835_v55 = vpop.f32.mrf.mxu0 }
 0x132   : > { %v804_v56 = vadd.f32 %v803_v53, %v775_v10  ;;  %v836_v2 = vadd.f32 %v835_v55, %v2310_v6  ;;  %v864_v5 = vpop.f32.mrf.mxu1 }
 0x134   : > { %885 = vst [vmem:[#allocation2 + $0x80] sm:$0xff] %v804_v56  ;;  %v865_v0 = vadd.f32 %v864_v5, %v836_v2 }
 0x136   : > { %889 = vst [vmem:[#allocation2 + $0xa0] sm:$0xff] %v865_v0  ;;  %v777_v3 = vpop.f32.mrf.mxu2 }
 0x137   : > { %v778_v8 = vadd.f32 %v777_v3, %v2313_v11 }
 0x139   : > { %v806_v1 = vpop.f32.mrf.mxu3  ;;  %v837_v4 = vpop.f32.mrf.mxu0 }
 0x13a   : > { %v807_v17 = vadd.f32 %v806_v1, %v778_v8  ;;  %v838_v49 = vadd.f32 %v837_v4, %v2310_v6  ;;  %v866_v54 = vpop.f32.mrf.mxu1 }
 0x13c   : > { %888 = vst [vmem:[#allocation2 + $0x98] sm:$0xff] %v807_v17  ;;  %v867_v51 = vadd.f32 %v866_v54, %v838_v49 }
 0x13e   : > { %892 = vst [vmem:[#allocation2 + $0xb8] sm:$0xff] %v867_v51  ;;  %v779_v7 = vpop.f32.mrf.mxu2 }
 0x13f   : > { %v780_v63 = vadd.f32 %v779_v7, %v2313_v11 }
 0x141   : > { %v808_v58 = vpop.f32.mrf.mxu3 }
 0x142   : > { %v809_v15 = vadd.f32 %v808_v58, %v780_v63 }
 0x144   : > { %891 = vst [vmem:[#allocation2 + $0xb0] sm:$0xff] %v809_v15 }
 0x145 LB: >> { %v1583_v6 = vor.u32 %v2110_v46, %v2101_v43  ;;  %v1587_v11 = vor.u32 %v2098_v42, %v2107_v45  ;;  %v1571_v12 = vor.u32 %v2080_v40, %v2071_v37  ;;  %v1575_v14 = vor.u32 %v2068_v36, %v2077_v39  ;;  %v2449_v56 = vld [vmem:[#allocation19_spill] sm:$0xff]  ;;  %v2450_v55 = vld [vmem:[#allocation22_spill] sm:$0xff]  ;;  %v2451_v5 = vld [vmem:[#allocation21_spill] sm:$0xff]  ;;  %s1493_s14 = sshll.u32 %s1837_s24, 1  ;;  %s1837_s24 = sphi %s2333_s24, %s932_s24   ;;  %v1833_v50 = vphi %v2117_v50, %v2467_v50  }
 0x146   : >> { %v1591_v16 = vor.u32 %v2113_v47, %v2104_v44  ;;  %v1579_v57 = vor.u32 %v2083_v41, %v2074_v38  ;;  %v1559_v59 = vor.u32 %v2062_v34, %v2053_v31  ;;  %v1563_v61 = vor.u32 %v2050_v30, %v2059_v33  ;;  %v2452_v0 = vld [vmem:[#allocation18_spill] sm:$0xff]  ;;  %v2453_v8 = vld [vmem:[#allocation20_spill] sm:$0xff]  ;;  %v2454_v1 = vld [vmem:[#allocation23_spill] sm:$0xff]  ;;  %s935_s30 = ssub.s32 7, %s1493_s14 }
 0x147   : >> { %1083 = vmatpush.bf16.msra.mxu0 %v1583_v6  ;;  %1096 = vmatpush.bf16.msra.mxu1 %v1587_v11  ;;  %v1567_v13 = vor.u32 %v2065_v35, %v2056_v32  ;;  %v1547_v60 = vor.u32 %v2044_v28, %v2035_v25  ;;  %v1551_v62 = vor.u32 %v2032_v24, %v2041_v27  ;;  %v2455_v4 = vld [vmem:[#allocation13_spill] sm:$0xff]  ;;  %v2456_v49 = vld [vmem:[#allocation16_spill] sm:$0xff]  ;;  %v2457_v51 = vld [vmem:[#allocation15_spill] sm:$0xff]  ;;  %s936_s10 = smul.u32 %s1895_s25, %s935_s30 }
 0x148   : >> { %1109 = vmatpush.bf16.msra.mxu2 %v1591_v16  ;;  %v1555_v48 = vor.u32 %v2047_v29, %v2038_v26  ;;  %v1535_v52 = vor.u32 %v2026_v22, %v2017_v19  ;;  %v1539_v10 = vor.u32 %v2014_v18, %v2023_v21  ;;  %v1543_v53 = vor.u32 %v2029_v23, %v2020_v20  ;;  %v2458_v7 = vld [vmem:[#allocation12_spill] sm:$0xff]  ;;  %v2459_v58 = vld [vmem:[#allocation14_spill] sm:$0xff]  ;;  %v2460_v15 = vld [vmem:[#allocation17_spill] sm:$0xff] }
 0x149   : >> { %v1523_v2 = vor.u32 %v2450_v55, %v2449_v56  ;;  %v1527_v3 = vor.u32 %v2452_v0, %v2451_v5  ;;  %v1531_v17 = vor.u32 %v2454_v1, %v2453_v8  ;;  %v1511_v54 = vor.u32 %v2456_v49, %v2455_v4  ;;  %v2461_v11 = vld [vmem:[#allocation7_spill] sm:$0xff]  ;;  %v2463_v16 = vld [vmem:[#allocation9_spill] sm:$0xff]  ;;  %s937_s15 = sadd.s32 %s1837_s24, %s936_s10  ;;  %s932_s24 = sadd.s32 1, %s1837_s24  }
 0x14a   : >> { %v1515_v63 = vor.u32 %v2458_v7, %v2457_v51  ;;  %v1519_v6 = vor.u32 %v2460_v15, %v2459_v58  ;;  %s1494_s17 = sshll.u32 %s937_s15, 3  ;;  %p929_p7 = scmp.ge.s32.totalorder %s932_s24, 8  }
 0x14b   : >> { %1084 = vmatpush.bf16.msra.mxu0 %v1571_v12  ;;  %1097 = vmatpush.bf16.msra.mxu1 %v1575_v14  ;;  %v2462_v12 = vld [vmem:[#allocation10_spill] sm:$0xff]  ;;  %s939_s18 = sshra.s32 %s1494_s17, 3 }
 0x14c   : >> { %1110 = vmatpush.bf16.msra.mxu2 %v1579_v57  ;;  %v1499_v14 = vor.u32 %v2462_v12, %v2461_v11  ;;  %v2464_v57 = vld [vmem:[#allocation6_spill] sm:$0xff]  ;;  %s1668_s19 = smul.u32 24, %s939_s18 }
 0x14e   : >> { %s2396_s21 = scalar_lea.vmem [#allocation2], %s1668_s19 }
 0x14f   : >> { %1085 = vmatpush.bf16.msra.mxu0 %v1559_v59  ;;  %1098 = vmatpush.bf16.msra.mxu1 %v1563_v61  ;;  %v1503_v59 = vor.u32 %v2464_v57, %v2463_v16  ;;  %v2465_v61 = vld [vmem:[#allocation8_spill] sm:$0xff]  ;;  %v945_v56 = vld [vmem:[%s2396_s21 + $0x8] sm:$0xff] }
 0x150   : >> { %1111 = vmatpush.bf16.msra.mxu2 %v1567_v13  ;;  %v2466_v13 = vld [vmem:[#allocation11_spill] sm:$0xff] }
 0x153   : >> { %1086 = vmatpush.bf16.msra.mxu0 %v1547_v60  ;;  %1099 = vmatpush.bf16.msra.mxu1 %v1551_v62  ;;  %v1507_v60 = vor.u32 %v2466_v13, %v2465_v61  ;;  %v947_v62 = vpack.c.bf16 %v1833_v50, %v1833_v50 }
 0x154   : >> { %1112 = vmatpush.bf16.msra.mxu2 %v1555_v48  ;;  %v949_v48 = vperm.slane %v2305_v9, 0 }
 0x157   : >> { %1087 = vmatpush.bf16.msra.mxu0 %v1535_v52  ;;  %1100 = vmatpush.bf16.msra.mxu1 %v1539_v10  ;;  %v950_v52 = vperm.slane %v2305_v9, 1  ;;  %v944_v10 = vld [vmem:[%s2396_s21] sm:$0xff] }
 0x158   : >> { %1113 = vmatpush.bf16.msra.mxu2 %v1543_v53 }
 0x15b   : >> { %1088 = vmatpush.bf16.msra.mxu0 %v1523_v2  ;;  %1101 = vmatpush.bf16.msra.mxu1 %v1527_v3 }
 0x15c   : >> { %1114 = vmatpush.bf16.msra.mxu2 %v1531_v17 }
 0x15f   : >> { %1089 = vmatpush.bf16.msra.mxu0 %v1511_v54  ;;  %1102 = vmatpush.bf16.msra.mxu1 %v1515_v63 }
 0x160   : >> { %1115 = vmatpush.bf16.msra.mxu2 %v1519_v6 }
 0x163   : >> { %1090 = vmatpush.bf16.msra.mxu0 %v1499_v14  ;;  %1103 = vmatpush.bf16.msra.mxu1 %v1503_v59  ;;  %v951_v14 = vperm.slane %v2305_v9, 2 }
 0x164   : >> { %1116 = vmatpush.bf16.msra.mxu2 %v1507_v60 }
 0x166   : >> { %1091 = vmatmul.bf16.vlgmr.msra.gmra.mxu0 %v947_v62  ;;  %1104 = vmatmul.bf16.vlgmr.msra.gmra.mxu1 %v947_v62 }
 0x167   : >> { %1117 = vmatmul.bf16.vlgmr.msra.gmra.mxu2 %v947_v62 }
 0x1e3   : >> { %v1092_v53 = vpop.f32.mrf.mxu0  ;;  %v1105_v55 = vpop.f32.mrf.mxu1 }
 0x1e4   : >> { %v1093_v2 = vadd.f32 %v1092_v53, %v949_v48  ;;  %v1106_v5 = vadd.f32 %v1105_v55, %v950_v52  ;;  %v946_v53 = vld [vmem:[%s2396_s21 + $0x10] sm:$0xff] }
 0x1e6   : >> { %v1122_v0 = vadd.f32 %v1093_v2, %v944_v10  ;;  %v1142_v3 = vadd.f32 %v1106_v5, %v945_v56 }
 0x1e8   : >> { %v1592_v8 = vmul.f32 -1.442695, %v1122_v0  ;;  %v1593_v1 = vmul.f32 -1.442695, %v1142_v3 }
 0x1ea   : >> { %1747 = vpow2.f32 %v1592_v8  ;;  %v1118_v49 = vpop.f32.mrf.mxu2 }
 0x1eb   : >> { %1749 = vpow2.f32 %v1593_v1  ;;  %v1094_v17 = vpop.f32.mrf.mxu0  ;;  %v1107_v4 = vpop.f32.mrf.mxu1  ;;  %v1119_v62 = vadd.f32 %v1118_v49, %v951_v14 }
 0x1f0   : >> { %v1748_v54 = vpop.eup %1747 }
 0x1f1   : >> { %v1750_v51 = vpop.eup %1749  ;;  %v1126_v7 = vadd.f32 1.0, %v1748_v54 }
 0x1f2   : >> { %v1146_v63 = vadd.f32 1.0, %v1750_v51  ;;  %v1120_v58 = vpop.f32.mrf.mxu2 }
 0x1f3   : >> { %1751 = vrcp.f32 %v1126_v7  ;;  %v1138_v59 = vand.u32 2147483648, %v1126_v7  ;;  %v1136_v13 = vand.u32 2147483647, %v1126_v7  ;;  %vm1132_vm1 = vweird.f32 %v1126_v7 }
 0x1f4   : >> { %1753 = vrcp.f32 %v1146_v63  ;;  %vm1152_vm4 = vweird.f32 %v1146_v63  ;;  %v1158_v2 = vand.u32 2147483648, %v1146_v63  ;;  %v1156_v0 = vand.u32 2147483647, %v1146_v63 }
 0x1f5   : >> { %v1139_v52 = vor.u32 1.1754944e-38, %v1138_v59  ;;  %vm1137_vm3 = vcmp.eq.f32.partialorder %v1136_v13, 8.507059e+37 }
 0x1f6   : >> { %v1159_v1 = vor.u32 1.1754944e-38, %v1158_v2  ;;  %vm1157_vm7 = vcmp.eq.f32.partialorder %v1156_v0, 8.507059e+37 }
 0x1f9   : >> { %v1752_v15 = vpop.eup %1751 }
 0x1fa   : >> { %v1754_v6 = vpop.eup %1753  ;;  %v1128_v11 = vmul.f32 %v1752_v15, %v1126_v7  ;;  %vm1133_vm0 = vweird.f32 %v1752_v15 }
 0x1fb   : >> { %v1148_v12 = vmul.f32 %v1754_v6, %v1146_v63  ;;  %vm1134_vm2 = vmor %vm1132_vm1, %vm1133_vm0  ;;  %vm1153_vm5 = vweird.f32 %v1754_v6 }
 0x1fc   : >> { %v1129_v16 = vsub.f32 1.0, %v1128_v11  ;;  %vm1154_vm6 = vmor %vm1152_vm4, %vm1153_vm5 }
 0x1fd   : >> { %v1149_v57 = vsub.f32 1.0, %v1148_v12 }
 0x1fe   : >> { %v1130_v61 = vmul.f32 %v1752_v15, %v1129_v16 }
 0x1ff   : >> { %v1150_v60 = vmul.f32 %v1754_v6, %v1149_v57 }
 0x200   : >> { %v1131_v48 = vadd.f32 %v1752_v15, %v1130_v61 }
 0x201   : >> { %v1151_v55 = vadd.f32 %v1754_v6, %v1150_v60 }
 0x202   : >> { %v1135_v10 = vsel %vm1134_vm2, %v1752_v15, %v1131_v48 }
 0x203   : >> { %v1140_v56 = vsel %vm1137_vm3, %v1139_v52, %v1135_v10  ;;  %v1155_v8 = vsel %vm1154_vm6, %v1754_v6, %v1151_v55 }
 0x204   : >> { %v1162_v5 = vmul.f32 %v1140_v56, %v1119_v62  ;;  %v1160_v17 = vsel %vm1157_vm7, %v1159_v1, %v1155_v8 }
 0x205   : >> { %v1165_v4 = vsub.f32 1.0, %v1160_v17  ;;  %v1167_v51 = vmul.f32 %v1833_v50, %v1160_v17 }
 0x206   : >> { %v1163_v3 = vadd.f32 %v1162_v5, %v946_v53 }
 0x208   : >> { %1755 = vtanh.f32 %v1163_v3 }
 0x20e   : >> { %v1756_v49 = vpop.eup %1755 }
 0x20f   : >> { %v1166_v54 = vmul.f32 %v1756_v49, %v1165_v4  ;;  %931 = sbr.rel (!%p929_p7) target bundleno = 325 (0x145), region = 104 }
 0x211   : >> { %v1168_v7 = vadd.f32 %v1167_v51, %v1166_v54  }
 0x213   : >> { %v2467_v50 = vmov %v1168_v7  ;;  %1169 = vst [vmem:[%s1956_s16] sm:$0xff] (%p929_p7), %v1168_v7 }
 0x214 PF: > { %p16_p8 = scmp.ge.s32.totalorder %s1898_s26, 4   ;;  %s2468_s21 = smov %s1821_s22 }
 0x215   : > { %s2469_s22 = smov %s1825_s23  ;;  %s2470_s23 = smov %s1908_s29 }
 0x216   : > { %s2471_s24 = smov %s1898_s26  ;;  %18 = sbr.rel (!%p16_p8) target bundleno = 3 (0x3), region = 115 }
 0x21b   :  { %1189 = vsyncpa [#allocation4], 1 }
 0x21c   :  { %1191 = vsyncpa [#allocation4 + $0x1], 1 }

// kernel: _seq2seq_impl.9
= control target key start
LH: loop header
LB: loop body
LE: loop exit
PB: predicated region body
PF: predicated region fallthrough
CT: control target
= control target key end

     0   :  { %12 = vsyncpa [#allocation4], 0  ;;  %s991_s0 = inlined_call_operand.vmem [shape: f32[56,128], index: 0, kind: input, shape index: {}]   ;;  %s992_s1 = inlined_call_operand.hbm [shape: bf16[128,128], index: 1, kind: input, shape index: {}]   ;;  %s993_s2 = inlined_call_operand.vmem [shape: f32[1,128], index: 2, kind: input, shape index: {}]   ;;  %s994_s3 = inlined_call_operand.hbm [shape: bf16[128,256], index: 3, kind: input, shape index: {}]   ;;  %s995_s4 = inlined_call_operand.vmem [shape: f32[1,256], index: 4, kind: input, shape index: {}]   ;;  %s996_s5 = inlined_call_operand.hbm [shape: bf16[256,128], index: 5, kind: input, shape index: {}]   ;;  %s997_s6 = inlined_call_operand.vmem [shape: f32[1,128], index: 6, kind: input, shape index: {}]   ;;  %s998_s7 = inlined_call_operand.vmem [shape: f32[56,128], index: 7, kind: output, shape index: {}]  }
   0x1   :  { %13 = vsyncpa [#allocation6], 0  ;;  %s35_s26 = sshll.u32 %s994_s3, 4  ;;  %s884_s27 = smov [#allocation5]   ;;  %s36_s26 = int_to_ptr.hbm [resolvable:$true] %s35_s26 }
   0x2   :  { %s37_s28 = sshll.u32 %s884_s27, 4  ;;  %s20_s8 = sshll.u32 %s992_s1, 4  ;;  %s38_s28 = int_to_ptr.vmem [resolvable:$true] %s37_s28  ;;  %s21_s8 = int_to_ptr.hbm [resolvable:$true] %s20_s8 }
   0x3   :  { %s885_s9 = smov 128   ;;  %s886_s10 = smov 8  }
   0x4   :  { %43 = dma.hbm_to_vmem [thread:$0]  %s36_s26, 2048, %s38_s28, [#allocation6], %s885_s9, %s885_s9, %s886_s10  }
   0x5   :  { %s887_s11 = smov [#allocation3]   ;;  %s888_s13 = smov 64  }
   0x6   :  { %s22_s12 = sshll.u32 %s887_s11, 4  ;;  %s889_s14 = smov 4   ;;  %s23_s12 = int_to_ptr.vmem [resolvable:$true] %s22_s12 }
   0x7   :  { %28 = dma.hbm_to_vmem [thread:$0]  %s21_s8, 1024, %s23_s12, [#allocation4], %s888_s13, %s888_s13, %s889_s14  }
   0x8   :  { %s50_s16 = sshll.u32 %s996_s5, 4  ;;  %s890_s17 = smov [#allocation7]   ;;  %s51_s16 = int_to_ptr.hbm [resolvable:$true] %s50_s16 }
   0x9   :  { %s52_s18 = sshll.u32 %s890_s17, 4  ;;  %s53_s18 = int_to_ptr.vmem [resolvable:$true] %s52_s18 }
   0xa   :  { %58 = dma.hbm_to_vmem [thread:$0]  %s51_s16, 2048, %s53_s18, [#allocation6], %s888_s13, %s888_s13, %s889_s14  }
   0xb   :  { %880 = dma.done.wait [#allocation4], 1024  }
   0xc   :  { %881 = vsyncadd [#allocation4], 4294966272 }
   0xd   :  { %882 = dma.done.wait [#allocation6], 4096  }
   0xe   :  { %883 = vsyncadd [#allocation6], 4294963200  ;;  %v750_v0 = vld [vmem:[#allocation3 + $0x38] sm:$0xff]  ;;  %v749_v1 = vld [vmem:[#allocation3 + $0x30] sm:$0xff] }
   0xf   :  { %156 = vmatpush.bf16.msra.mxu0 %v750_v0  ;;  %783 = vmatpush.bf16.msra.mxu1 %v750_v0  ;;  %v748_v2 = vld [vmem:[#allocation3 + $0x28] sm:$0xff]  ;;  %v747_v3 = vld [vmem:[#allocation3 + $0x20] sm:$0xff]  ;;  %v746_v4 = vld [vmem:[#allocation3 + $0x18] sm:$0xff] }
  0x10   :  { %v745_v5 = vld [vmem:[#allocation3 + $0x10] sm:$0xff]  ;;  %v675_v7 = vld [vmem:[#allocation5 + $0x78] sm:$0xf0]  ;;  %v763_v9 = vld [vmem:[#allocation5 + $0x64] sm:$0xf] }
  0x11   :  { %v765_v6 = vld [vmem:[#allocation5 + $0x74] sm:$0xf]  ;;  %v667_v10 = vld [vmem:[#allocation5 + $0x68] sm:$0xf0]  ;;  %v673_v12 = vld [vmem:[#allocation5 + $0x70] sm:$0xf] }
  0x12   :  { %v678_v8 = vor.u32 %v765_v6, %v675_v7  ;;  %v744_v11 = vld [vmem:[#allocation3 + $0x8] sm:$0xff]  ;;  %v670_v13 = vor.u32 %v763_v9, %v667_v10  ;;  %v766_v14 = vld [vmem:[#allocation5 + $0x74] sm:$0xf0]  ;;  %v761_v15 = vld [vmem:[#allocation5 + $0x54] sm:$0xf] }
  0x13   :  { %157 = vmatpush.bf16.msra.mxu0 %v749_v1  ;;  %784 = vmatpush.bf16.msra.mxu1 %v749_v1  ;;  %v659_v16 = vld [vmem:[#allocation5 + $0x58] sm:$0xf0]  ;;  %v743_v17 = vld [vmem:[#allocation3] sm:$0xff]  ;;  %v78_v19 = vld [vmem:[%s991_s0 + $0x8] sm:$0xff]  ;;  %v674_v22 = vor.u32 %v766_v14, %v673_v12 }
  0x14   :  { %318 = vmatpush.bf16.msra.mxu2 %v678_v8  ;;  %v77_v18 = vld [vmem:[%s991_s0] sm:$0xff]  ;;  %v82_v21 = vld [vmem:[%s991_s0 + $0x28] sm:$0xff]  ;;  %v662_v24 = vor.u32 %v761_v15, %v659_v16  ;;  %v657_v31 = vld [vmem:[#allocation5 + $0x50] sm:$0xf] }
  0x15   :  { %v81_v20 = vld [vmem:[%s991_s0 + $0x20] sm:$0xff]  ;;  %v764_v25 = vld [vmem:[#allocation5 + $0x64] sm:$0xf0]  ;;  %v651_v27 = vld [vmem:[#allocation5 + $0x48] sm:$0xf0]  ;;  %v84_v28 = vpack.c.bf16 %v78_v19, %v77_v18 }
  0x16   :  { %v665_v23 = vld [vmem:[#allocation5 + $0x60] sm:$0xf]  ;;  %v759_v26 = vld [vmem:[#allocation5 + $0x44] sm:$0xf]  ;;  %v86_v29 = vpack.c.bf16 %v82_v21, %v81_v20  ;;  %v762_v33 = vld [vmem:[#allocation5 + $0x54] sm:$0xf0] }
  0x17   :  { %158 = vmatpush.bf16.msra.mxu0 %v748_v2  ;;  %785 = vmatpush.bf16.msra.mxu1 %v748_v2  ;;  %v666_v30 = vor.u32 %v764_v25, %v665_v23  ;;  %v654_v32 = vor.u32 %v759_v26, %v651_v27  ;;  %v757_v34 = vld [vmem:[#allocation5 + $0x34] sm:$0xf]  ;;  %v643_v35 = vld [vmem:[#allocation5 + $0x38] sm:$0xf0]  ;;  %v658_v36 = vor.u32 %v762_v33, %v657_v31  ;;  %v649_v38 = vld [vmem:[#allocation5 + $0x40] sm:$0xf] }
  0x18   :  { %319 = vmatpush.bf16.msra.mxu2 %v670_v13  ;;  %v646_v37 = vor.u32 %v757_v34, %v643_v35  ;;  %v760_v39 = vld [vmem:[#allocation5 + $0x44] sm:$0xf0]  ;;  %v641_v41 = vld [vmem:[#allocation5 + $0x30] sm:$0xf]  ;;  %v758_v42 = vld [vmem:[#allocation5 + $0x34] sm:$0xf0] }
  0x19   :  { %v650_v40 = vor.u32 %v760_v39, %v649_v38  ;;  %v79_v43 = vld [vmem:[%s991_s0 + $0x10] sm:$0xff]  ;;  %v80_v44 = vld [vmem:[%s991_s0 + $0x18] sm:$0xff]  ;;  %v642_v46 = vor.u32 %v758_v42, %v641_v41  ;;  %v633_v49 = vld [vmem:[#allocation5 + $0x20] sm:$0xf] }
  0x1a   :  { %v83_v45 = vld [vmem:[%s991_s0 + $0x30] sm:$0xff]  ;;  %v85_v47 = vpack.c.bf16 %v80_v44, %v79_v43  ;;  %v756_v50 = vld [vmem:[#allocation5 + $0x24] sm:$0xf0]  ;;  %v755_v51 = vld [vmem:[#allocation5 + $0x24] sm:$0xf] }
  0x1b   :  { %159 = vmatpush.bf16.msra.mxu0 %v747_v3  ;;  %786 = vmatpush.bf16.msra.mxu1 %v747_v3  ;;  %v87_v48 = vpack.c.bf16 %v83_v45, %v83_v45  ;;  %v634_v52 = vor.u32 %v756_v50, %v633_v49  ;;  %v635_v53 = vld [vmem:[#allocation5 + $0x28] sm:$0xf0]  ;;  %v625_v55 = vld [vmem:[#allocation5 + $0x10] sm:$0xf]  ;;  %v754_v56 = vld [vmem:[#allocation5 + $0x14] sm:$0xf0] }
  0x1c   :  { %320 = vmatpush.bf16.msra.mxu2 %v662_v24  ;;  %v638_v54 = vor.u32 %v755_v51, %v635_v53  ;;  %v753_v57 = vld [vmem:[#allocation5 + $0x14] sm:$0xf]  ;;  %v626_v58 = vor.u32 %v754_v56, %v625_v55  ;;  %v627_v59 = vld [vmem:[#allocation5 + $0x18] sm:$0xf0]  ;;  %v617_v61 = vld [vmem:[#allocation5] sm:$0xf] }
  0x1d   :  { %v630_v60 = vor.u32 %v753_v57, %v627_v59  ;;  %v752_v62 = vld [vmem:[#allocation5 + $0x4] sm:$0xf0]  ;;  %v751_v63 = vld [vmem:[#allocation5 + $0x4] sm:$0xf]  ;;  %v619_v1 = vld [vmem:[#allocation5 + $0x8] sm:$0xf0] }
  0x1e   :  { %v618_v0 = vor.u32 %v752_v62, %v617_v61  ;;  %v622_v2 = vor.u32 %v751_v63, %v619_v1  ;;  %v774_v18 = vld [vmem:[#allocation7 + $0x38] sm:$0xff]  ;;  %v773_v20 = vld [vmem:[#allocation7 + $0x30] sm:$0xff]  ;;  %v780_v23 = vld [vmem:[#allocation7 + $0x68] sm:$0xff] }
  0x1f   :  { %160 = vmatpush.bf16.msra.mxu0 %v746_v4  ;;  %787 = vmatpush.bf16.msra.mxu1 %v746_v4  ;;  %v782_v19 = vld [vmem:[#allocation7 + $0x78] sm:$0xff]  ;;  %v781_v21 = vld [vmem:[#allocation7 + $0x70] sm:$0xff]  ;;  %v771_v26 = vld [vmem:[#allocation7 + $0x20] sm:$0xff] }
  0x20   :  { %321 = vmatpush.bf16.msra.mxu2 %v654_v32  ;;  %514 = vmatpush.bf16.msra.mxu3 %v774_v18  ;;  %v779_v31 = vld [vmem:[#allocation7 + $0x60] sm:$0xff]  ;;  %v769_v32 = vld [vmem:[#allocation7 + $0x10] sm:$0xff]  ;;  %v778_v33 = vld [vmem:[#allocation7 + $0x58] sm:$0xff] }
  0x21   :  { %v768_v34 = vld [vmem:[#allocation7 + $0x8] sm:$0xff]  ;;  %v777_v35 = vld [vmem:[#allocation7 + $0x50] sm:$0xff]  ;;  %v775_v38 = vld [vmem:[#allocation7 + $0x40] sm:$0xff] }
  0x23   :  { %161 = vmatpush.bf16.msra.mxu0 %v745_v5  ;;  %788 = vmatpush.bf16.msra.mxu1 %v745_v5  ;;  %v806_v5 = vld [vmem:[%s993_s2] ss:$0 sm:$0xff] }
  0x24   :  { %322 = vmatpush.bf16.msra.mxu2 %v646_v37  ;;  %515 = vmatpush.bf16.msra.mxu3 %v773_v20  ;;  %v776_v37 = vld [vmem:[#allocation7 + $0x48] sm:$0xff] }
  0x27   :  { %162 = vmatpush.bf16.msra.mxu0 %v744_v11  ;;  %789 = vmatpush.bf16.msra.mxu1 %v744_v11 }
  0x28   :  { %323 = vmatpush.bf16.msra.mxu2 %v638_v54 }
  0x2b   :  { %163 = vmatpush.bf16.msra.mxu0 %v743_v17  ;;  %790 = vmatpush.bf16.msra.mxu1 %v743_v17 }
  0x2c   :  { %324 = vmatpush.bf16.msra.mxu2 %v630_v60 }
  0x2e   :  { %164 = vmatmul.bf16.vlgmr.msra.gmra.mxu0 %v84_v28  ;;  %174 = vmatmul.bf16.vlgmr.msra.gmra.mxu1 %v86_v29  ;;  %v770_v28 = vld [vmem:[#allocation7 + $0x18] sm:$0xff] }
  0x2f   :  { %290 = vmatpush.bf16.msrb.mxu1 %v674_v22  ;;  %542 = vmatpush.bf16.msrb.mxu0 %v782_v19  ;;  %v772_v22 = vld [vmem:[#allocation7 + $0x28] sm:$0xff] }
  0x30   :  { %325 = vmatpush.bf16.msra.mxu2 %v622_v2  ;;  %516 = vmatpush.bf16.msra.mxu3 %v772_v22 }
  0x33   :  { %291 = vmatpush.bf16.msrb.mxu1 %v666_v30  ;;  %543 = vmatpush.bf16.msrb.mxu0 %v781_v21 }
  0x34   :  { %791 = vmatpush.bf16.msrb.mxu2 %v782_v19  ;;  %517 = vmatpush.bf16.msra.mxu3 %v771_v26 }
  0x37   :  { %292 = vmatpush.bf16.msrb.mxu1 %v658_v36  ;;  %544 = vmatpush.bf16.msrb.mxu0 %v780_v23  ;;  %v767_v36 = vld [vmem:[#allocation7] sm:$0xff] }
  0x38   :  { %792 = vmatpush.bf16.msrb.mxu2 %v781_v21  ;;  %518 = vmatpush.bf16.msra.mxu3 %v770_v28 }
  0x3b   :  { %293 = vmatpush.bf16.msrb.mxu1 %v650_v40  ;;  %545 = vmatpush.bf16.msrb.mxu0 %v779_v31  ;;  %v204_v40 = vld [vmem:[%s995_s4] sm:$0x3] }
  0x3c   :  { %793 = vmatpush.bf16.msrb.mxu2 %v780_v23  ;;  %519 = vmatpush.bf16.msra.mxu3 %v769_v32  ;;  %v206_v41 = vperm.slane %v204_v40, 0 }
  0x3e   :  { %169 = vmatmul.bf16.gmra.mxu0 %v85_v47  ;;  %179 = vmatmul.bf16.gmra.mxu1 %v87_v48 }
  0x3f   :  { %294 = vmatpush.bf16.msrb.mxu1 %v642_v46  ;;  %546 = vmatpush.bf16.msrb.mxu0 %v778_v33  ;;  %v207_v46 = vperm.slane %v204_v40, 1 }
  0x40   :  { %794 = vmatpush.bf16.msrb.mxu2 %v779_v31  ;;  %520 = vmatpush.bf16.msra.mxu3 %v768_v34 }
  0x43   :  { %295 = vmatpush.bf16.msrb.mxu1 %v634_v52  ;;  %547 = vmatpush.bf16.msrb.mxu0 %v777_v35 }
  0x44   :  { %795 = vmatpush.bf16.msrb.mxu2 %v778_v33  ;;  %521 = vmatpush.bf16.msra.mxu3 %v767_v36 }
  0x47   :  { %296 = vmatpush.bf16.msrb.mxu1 %v626_v58  ;;  %548 = vmatpush.bf16.msrb.mxu0 %v776_v37 }
  0x48   :  { %796 = vmatpush.bf16.msrb.mxu2 %v777_v35 }
  0x4b   :  { %297 = vmatpush.bf16.msrb.mxu1 %v618_v0  ;;  %549 = vmatpush.bf16.msrb.mxu0 %v775_v38 }
  0x4c   :  { %797 = vmatpush.bf16.msrb.mxu2 %v776_v37 }
  0x50   :  { %798 = vmatpush.bf16.msrb.mxu2 %v775_v38 }
  0xab   :  { %v165_v3 = vpop.f32.mrf.mxu0  ;;  %v175_v4 = vpop.f32.mrf.mxu1 }
  0xac   :  { %v166_v8 = vadd.f32 %v806_v5, %v165_v3  ;;  %v176_v24 = vadd.f32 %v806_v5, %v175_v4 }
  0xb3   :  { %v167_v6 = vpop.f32.mrf.mxu0  ;;  %v177_v7 = vpop.f32.mrf.mxu1 }
  0xb4   :  { %v168_v9 = vadd.f32 %v806_v5, %v167_v6  ;;  %v178_v25 = vadd.f32 %v806_v5, %v177_v7 }
  0xb6   :  { %v184_v10 = vpack.c.bf16 %v168_v9, %v166_v8  ;;  %v186_v27 = vpack.c.bf16 %v178_v25, %v176_v24 }
  0xb8   :  { %298 = vmatmul.bf16.vlgmr.msrb.gmra.mxu1 %v184_v10  ;;  %326 = vmatmul.bf16.vlgmr.msra.gmra.mxu2 %v184_v10 }
  0xbb   :  { %v170_v11 = vpop.f32.mrf.mxu0  ;;  %v180_v12 = vpop.f32.mrf.mxu1 }
  0xbc   :  { %v171_v15 = vadd.f32 %v806_v5, %v170_v11  ;;  %v181_v29 = vadd.f32 %v806_v5, %v180_v12 }
  0xbe   :  { %v187_v30 = vpack.c.bf16 %v181_v29, %v181_v29 }
  0xc3   :  { %v172_v13 = vpop.f32.mrf.mxu0  ;;  %v182_v14 = vpop.f32.mrf.mxu1 }
  0xc4   :  { %v173_v16 = vadd.f32 %v806_v5, %v172_v13 }
  0xc6   :  { %v185_v17 = vpack.c.bf16 %v173_v16, %v171_v15  ;;  %v807_v16 = vld [vmem:[%s997_s6] ss:$0 sm:$0xff] }
  0xc8   :  { %303 = vmatmul.bf16.gmra.mxu1 %v185_v17  ;;  %331 = vmatmul.bf16.gmra.mxu2 %v185_v17 }
  0xd8   :  { %308 = vmatmul.bf16.gmra.mxu1 %v186_v27  ;;  %336 = vmatmul.bf16.gmra.mxu2 %v186_v27 }
  0xe8   :  { %313 = vmatmul.bf16.gmra.mxu1 %v187_v30  ;;  %341 = vmatmul.bf16.gmra.mxu2 %v187_v30 }
 0x135   :  { %v299_v39 = vpop.f32.mrf.mxu1 }
 0x136   :  { %v300_v44 = vadd.f32 %v299_v39, %v206_v41 }
 0x13b   :  { %v327_v42 = vpop.f32.mrf.mxu2 }
 0x13c   :  { %v328_v49 = vadd.f32 %v327_v42, %v207_v46 }
 0x13d   :  { %v301_v43 = vpop.f32.mrf.mxu1 }
 0x13e   :  { %v302_v45 = vadd.f32 %v301_v43, %v206_v41 }
 0x140   :  { %v374_v47 = vpack.c.bf16 %v302_v45, %v300_v44 }
 0x142   :  { %522 = vmatmul.bf16.vlgmr.msra.gmra.mxu3 %v374_v47 }
 0x143   :  { %v329_v48 = vpop.f32.mrf.mxu2 }
 0x144   :  { %v330_v50 = vadd.f32 %v329_v48, %v207_v46 }
 0x145   :  { %v304_v51 = vpop.f32.mrf.mxu1 }
 0x146   :  { %v375_v52 = vpack.c.bf16 %v330_v50, %v328_v49  ;;  %v305_v55 = vadd.f32 %v304_v51, %v206_v41 }
 0x148   :  { %550 = vmatmul.bf16.vlgmr.msrb.gmra.mxu0 %v375_v52 }
 0x14b   :  { %v332_v53 = vpop.f32.mrf.mxu2 }
 0x14c   :  { %v333_v59 = vadd.f32 %v332_v53, %v207_v46 }
 0x14d   :  { %v306_v54 = vpop.f32.mrf.mxu1 }
 0x14e   :  { %v307_v56 = vadd.f32 %v306_v54, %v206_v41 }
 0x150   :  { %v376_v57 = vpack.c.bf16 %v307_v56, %v305_v55 }
 0x152   :  { %527 = vmatmul.bf16.gmra.mxu3 %v376_v57 }
 0x153   :  { %v334_v58 = vpop.f32.mrf.mxu2 }
 0x154   :  { %v335_v60 = vadd.f32 %v334_v58, %v207_v46 }
 0x155   :  { %v309_v61 = vpop.f32.mrf.mxu1 }
 0x156   :  { %v377_v62 = vpack.c.bf16 %v335_v60, %v333_v59  ;;  %v310_v1 = vadd.f32 %v309_v61, %v206_v41 }
 0x158   :  { %555 = vmatmul.bf16.gmra.mxu0 %v377_v62 }
 0x15b   :  { %v337_v63 = vpop.f32.mrf.mxu2 }
 0x15c   :  { %v338_v5 = vadd.f32 %v337_v63, %v207_v46 }
 0x15d   :  { %v311_v0 = vpop.f32.mrf.mxu1 }
 0x15e   :  { %v312_v2 = vadd.f32 %v311_v0, %v206_v41 }
 0x160   :  { %v378_v3 = vpack.c.bf16 %v312_v2, %v310_v1 }
 0x162   :  { %532 = vmatmul.bf16.gmra.mxu3 %v378_v3 }
 0x163   :  { %v339_v4 = vpop.f32.mrf.mxu2 }
 0x164   :  { %v340_v6 = vadd.f32 %v339_v4, %v207_v46 }
 0x165   :  { %v314_v7 = vpop.f32.mrf.mxu1 }
 0x166   :  { %v379_v8 = vpack.c.bf16 %v340_v6, %v338_v5  ;;  %v315_v10 = vadd.f32 %v314_v7, %v206_v41 }
 0x168   :  { %560 = vmatmul.bf16.gmra.mxu0 %v379_v8  ;;  %v380_v14 = vpack.c.bf16 %v315_v10, %v315_v10 }
 0x16b   :  { %v342_v9 = vpop.f32.mrf.mxu2 }
 0x16c   :  { %v343_v11 = vadd.f32 %v342_v9, %v207_v46 }
 0x16d   :  { %v316_v12 = vpop.f32.mrf.mxu1 }
 0x16e   :  { %v381_v13 = vpack.c.bf16 %v343_v11, %v343_v11 }
 0x170   :  { %565 = vmatmul.bf16.vlgmr.msrb.gmra.mxu2 %v381_v13 }
 0x172   :  { %537 = vmatmul.bf16.gmra.mxu3 %v380_v14 }
 0x173   :  { %v344_v15 = vpop.f32.mrf.mxu2 }
 0x1c5   :  { %v523_v17 = vpop.f32.mrf.mxu3  ;;  %v551_v18 = vpop.f32.mrf.mxu0 }
 0x1c6   :  { %v524_v19 = vadd.f32 %v807_v16, %v523_v17 }
 0x1c8   :  { %v552_v20 = vadd.f32 %v551_v18, %v524_v19 }
 0x1ca   :  { %570 = vst [vmem:[%s998_s7] sm:$0xff] %v552_v20 }
 0x1cd   :  { %v525_v21 = vpop.f32.mrf.mxu3  ;;  %v553_v22 = vpop.f32.mrf.mxu0 }
 0x1ce   :  { %v526_v23 = vadd.f32 %v807_v16, %v525_v21 }
 0x1d0   :  { %v554_v24 = vadd.f32 %v553_v22, %v526_v23 }
 0x1d2   :  { %571 = vst [vmem:[%s998_s7 + $0x8] sm:$0xff] %v554_v24 }
 0x1d5   :  { %v528_v25 = vpop.f32.mrf.mxu3  ;;  %v556_v26 = vpop.f32.mrf.mxu0 }
 0x1d6   :  { %v529_v27 = vadd.f32 %v807_v16, %v528_v25 }
 0x1d8   :  { %v557_v28 = vadd.f32 %v556_v26, %v529_v27 }
 0x1da   :  { %572 = vst [vmem:[%s998_s7 + $0x10] sm:$0xff] %v557_v28 }
 0x1dd   :  { %v530_v29 = vpop.f32.mrf.mxu3  ;;  %v558_v30 = vpop.f32.mrf.mxu0 }
 0x1de   :  { %v531_v31 = vadd.f32 %v807_v16, %v530_v29 }
 0x1e0   :  { %v559_v32 = vadd.f32 %v558_v30, %v531_v31 }
 0x1e2   :  { %573 = vst [vmem:[%s998_s7 + $0x18] sm:$0xff] %v559_v32 }
 0x1e5   :  { %v533_v33 = vpop.f32.mrf.mxu3  ;;  %v561_v34 = vpop.f32.mrf.mxu0 }
 0x1e6   :  { %v534_v35 = vadd.f32 %v807_v16, %v533_v33 }
 0x1e8   :  { %v562_v36 = vadd.f32 %v561_v34, %v534_v35 }
 0x1ea   :  { %574 = vst [vmem:[%s998_s7 + $0x20] sm:$0xff] %v562_v36 }
 0x1ed   :  { %v535_v37 = vpop.f32.mrf.mxu3  ;;  %v563_v39 = vpop.f32.mrf.mxu0 }
 0x1ee   :  { %v536_v38 = vadd.f32 %v807_v16, %v535_v37 }
 0x1f0   :  { %v564_v40 = vadd.f32 %v563_v39, %v536_v38 }
 0x1f2   :  { %575 = vst [vmem:[%s998_s7 + $0x28] sm:$0xff] %v564_v40 }
 0x1f3   :  { %v566_v41 = vpop.f32.mrf.mxu2 }
 0x1f5   :  { %v538_v42 = vpop.f32.mrf.mxu3 }
 0x1f6   :  { %v539_v43 = vadd.f32 %v807_v16, %v538_v42 }
 0x1f8   :  { %v567_v44 = vadd.f32 %v566_v41, %v539_v43 }
 0x1fa   :  { %576 = vst [vmem:[%s998_s7 + $0x30] sm:$0xff] %v567_v44 }
 0x1fb   :  { %v568_v45 = vpop.f32.mrf.mxu2 }
 0x1fd   :  { %v540_v46 = vpop.f32.mrf.mxu3 }
 0x1fe   :  { %581 = vsyncpa [#allocation4], 1 }
 0x1ff   :  { %582 = vsyncpa [#allocation6], 1 }

</bundles_post_ra>
